<compile_context>
chip_gen: v6e
topology: v6e:2x2x1
jax: 0.10.0
libtpu: 0.0.40
codegen_flags: <defaults>
</compile_context>

<pallas_src>
import functools

import jax
import jax.numpy as jnp
import numpy as np
from jax.experimental import pallas as pl
from jax.experimental.pallas import tpu as pltpu


# ----------------------------------------------------------------------------
# In-kernel helpers
# ----------------------------------------------------------------------------
def _window_sum(x, k, axis):
    """Sliding-window sum of length k (stride 1, 'valid') along `axis`.

    Log-depth shift-and-add: floor(log2 k) + popcount(k) - 1 adds instead of
    k - 1.  Only static slices + adds, so it lowers cleanly in Mosaic.
    """
    n = x.shape[axis]

    def sl(a, start, length):
        idx = [slice(None)] * a.ndim
        idx[axis] = slice(start, start + length)
        return a[tuple(idx)]

    # power-of-two window sums by doubling: W_{2m}[i] = W_m[i] + W_m[i+m]
    pows = {1: x}
    m = 1
    while 2 * m <= k:
        wm = pows[m]
        out_len = n - 2 * m + 1
        pows[2 * m] = sl(wm, 0, out_len) + sl(wm, m, out_len)
        m *= 2

    # combine the set bits of k: W_{a+b}[i] = W_a[i] + W_b[i+a]
    bits = [1 << b for b in range(k.bit_length()) if (k >> b) & 1]
    bits.sort(reverse=True)
    acc = pows[bits[0]]
    acc_len = bits[0]
    for b in bits[1:]:
        new_len = acc_len + b
        out_len = n - new_len + 1
        acc = sl(acc, 0, out_len) + sl(pows[b], acc_len, out_len)
        acc_len = new_len
    return acc


def _box_mean(x, k):
    """k x k sliding-window mean over the spatial axes (0, 1) of (H, W, lanes)."""
    return _window_sum(_window_sum(x, k, axis=0), k, axis=1) * (1.0 / (k * k))


def _regrid_y_to_x(z, hx, wx):
    """Re-index a (hy, wy, L) map so result[r, c, l] == z.reshape(-1, L)[r*wx + c, l].

    I.e. the row-major (spatial) flattening of the result over the (hx, wx)
    grid equals the row-major flattening of z over its own (hy, wy) grid —
    exactly the flat-index pairing the PyTorch code performs when adding the
    H- and W-gradient norm maps.  Requires hy == hx + 1, wy == wx - 1 (H==W).

    Implemented as a log-depth per-row rotation along the *sublane* axis using
    only static slices / concat / iota / select / jnp.roll (static shifts), all
    of which lower cleanly.  (pltpu.roll would hit the XLU vrot slot directly,
    but the 2*wy sublane extent is generally not tile-aligned, so the robust
    slice/concat lowering is kept.)
    """
    hy, wy, _ = z.shape
    # Flat row r spans z rows r and r+1, starting at column r of row r.
    a = jnp.concatenate([z[:hx], z[1:hy]], axis=1)                 # (hx, 2*wy, L)
    row = jax.lax.broadcasted_iota(jnp.int32, a.shape, 0)
    for b in range((hx - 1).bit_length()):                         # rotate row r left by r
        s = 1 << b
        a = jnp.where((row & s) != 0, jnp.roll(a, -s, axis=1), a)
    return a[:, :wx, :]


# ----------------------------------------------------------------------------
# Fused kernel: one (H, W, lanes) channel block per grid step -> per-lane sums
# ----------------------------------------------------------------------------
def _ktv_kernel(out_l_ref, out_r_ref, inp_ref, part_ref, *, kernel_size, eps):
    k = kernel_size
    f32 = jnp.float32
    ol = out_l_ref[...].astype(f32)      # (H, W, L), channels in lanes
    orr = out_r_ref[...].astype(f32)
    ii = inp_ref[...].astype(f32)

    def sum_hw(x):
        # per-lane (per-channel) partial sum over the two spatial axes
        return jnp.sum(jnp.sum(x, axis=0, keepdims=True), axis=1, keepdims=True)

    # ---- phase 1: H-direction gradients (x path) ---------------------------
    olx = ol[1:] - ol[:-1]
    orx = orr[1:] - orr[:-1]
    inx = ii[1:] - ii[:-1]
    gdx_p = sum_hw(jnp.abs(olx + orx - inx))                 # (1, 1, L)
    sx = _box_mean(jnp.abs(olx) + jnp.abs(orx), k)           # (hx, wx, L)  box-mean linearity
    tx = _box_mean(jnp.abs(inx), k)

    # ---- phase 2: W-direction gradients (y path) ---------------------------
    oly = ol[:, 1:] - ol[:, :-1]
    ory = orr[:, 1:] - orr[:, :-1]
    iny = ii[:, 1:] - ii[:, :-1]
    gdy_p = sum_hw(jnp.abs(oly + ory - iny))                 # (1, 1, L)
    sy = _box_mean(jnp.abs(oly) + jnp.abs(ory), k)           # (hy, wy, L)
    ty = _box_mean(jnp.abs(iny), k)

    # Pair the two spatial grids by *flat* index, exactly as the PyTorch code.
    hx, wx = sx.shape[0], sx.shape[1]
    sy = _regrid_y_to_x(sy, hx, wx)
    ty = _regrid_y_to_x(ty, hx, wx)

    denom_inv = pl.reciprocal(tx + ty + eps, approx=True)    # EUP slot, off the VALU
    norm_p = sum_hw((sx + sy) * denom_inv)                   # (1, 1, L)

    # Lane-dense output: 3 rows of per-lane partial sums.
    part_ref[...] = jnp.concatenate([norm_p, gdx_p, gdy_p], axis=1)   # (1, 3, L)


# ----------------------------------------------------------------------------
# Wrapper
# ----------------------------------------------------------------------------
def ktv_loss(out_l, out_r, input_i, kernel_size=10, eps=1e-6):
    B, C, H, W = out_l.shape
    k = kernel_size
    if H != W:
        # The PyTorch module adds flattened norm maps of lengths
        # (H-k)*(W-k+1) and (H-k+1)*(W-k); these only match when H == W.
        raise ValueError("KTVLoss requires H == W (as does the PyTorch original).")
    if H < k + 1:
        raise ValueError("spatial size must be at least kernel_size + 1")

    bc = B * C
    LANE = 128
    # Lane block (multiple of 128): grow toward ~1 MiB f32 input blocks while
    # keeping the ~20-25x-block live footprint (3 inputs x 2 pipeline buffers
    # + gradient/box-sum temporaries) well inside v7x's 64 MiB VMEM.
    lanes = LANE
    while lanes * 2 <= max(LANE, bc) and H * W * (lanes * 2) * 4 <= (1 << 20):
        lanes *= 2
    bc_pad = ((bc + lanes - 1) // lanes) * lanes
    num_blocks = bc_pad // lanes

    def to_lane_last(x):
        # (B, C, H, W) -> (H, W, B*C), channel axis zero-padded to bc_pad.
        # Padded channels are all-zero -> contribute exactly 0 to every sum.
        x = jnp.transpose(x.reshape(bc, H, W), (1, 2, 0))
        if bc_pad != bc:
            x = jnp.pad(x, ((0, 0), (0, 0), (0, bc_pad - bc)))
        return x

    xl = to_lane_last(out_l)
    xr = to_lane_last(out_r)
    xi = to_lane_last(input_i)

    in_spec = pl.BlockSpec((H, W, lanes), lambda i: (0, 0, i))
    out_spec = pl.BlockSpec((1, 3, lanes), lambda i: (i, 0, 0))

    block_bytes = H * W * lanes * 4
    # Explicit VMEM budget (v5e's scoped default is only 16 MiB); capped at
    # 64 MiB so the same setting is legal on v7x.
    vmem_limit = int(min(64 << 20, max(32 << 20, 24 * block_bytes)))

    partials = pl.pallas_call(
        functools.partial(_ktv_kernel, kernel_size=k, eps=eps),
        out_shape=jax.ShapeDtypeStruct((num_blocks, 3, lanes), jnp.float32),
        grid=(num_blocks,),
        in_specs=[in_spec, in_spec, in_spec],
        out_specs=out_spec,
        compiler_params=pltpu.CompilerParams(
            dimension_semantics=("parallel",),
            vmem_limit_bytes=vmem_limit),
    )(xl, xr, xi)

    # Tiny cross-lane / cross-block reduction + division by the true global
    # element counts (padded channels contributed exactly 0).
    norm_sum = jnp.sum(partials[:, 0, :])
    gdx_sum = jnp.sum(partials[:, 1, :])
    gdy_sum = jnp.sum(partials[:, 2, :])

    n_norm = bc * (H - k) * (W - k + 1)
    n_gx = bc * (H - 1) * W
    n_gy = bc * H * (W - 1)

    norm_loss = norm_sum / n_norm
    grad_loss = gdx_sum / n_gx + gdy_sum / n_gy
    return norm_loss * 0.0001 + grad_loss


# ----------------------------------------------------------------------------
# Pure-JAX reference mirroring the PyTorch forward (naive box filter)
# ----------------------------------------------------------------------------
def _grads4(x):
    gx = x[:, :, 1:, :] - x[:, :, :-1, :]
    gy = x[:, :, :, 1:] - x[:, :, :, :-1]
    return gx, gy


def _box_mean_naive(x, k):
    hout = x.shape[2] - k + 1
    wout = x.shape[3] - k + 1
    row = x[:, :, 0:hout, :]
    for i in range(1, k):
        row = row + x[:, :, i:i + hout, :]
    out = row[:, :, :, 0:wout]
    for j in range(1, k):
        out = out + row[:, :, :, j:j + wout]
    return out * (1.0 / (k * k))


def ktv_loss_ref(out_l, out_r, input_i, kernel_size=10, eps=1e-6):
    k = kernel_size
    B, C = out_l.shape[:2]

    def norm_maps(x):
        gx, gy = _grads4(x)
        return (_box_mean_naive(jnp.abs(gx), k).reshape(B, C, -1),
                _box_mean_naive(jnp.abs(gy), k).reshape(B, C, -1))

    nlx, nly = norm_maps(out_l)
    nrx, nry = norm_maps(out_r)
    nix, niy = norm_maps(input_i)
    norm_l = nlx + nly
    norm_r = nrx + nry
    norm_t = nix + niy + eps
    norm_loss = jnp.mean(norm_l / norm_t + norm_r / norm_t)

    olx, oly = _grads4(out_l)
    orx, ory = _grads4(out_r)
    inx, iny = _grads4(input_i)
    grad_loss = (jnp.mean(jnp.abs(olx + orx - inx))
                 + jnp.mean(jnp.abs(oly + ory - iny)))
    return norm_loss * 0.0001 + grad_loss


if __name__ == "__main__":
    # KTVLoss has no learnable parameters (only kernel_size / eps constants).
    key = jax.random.PRNGKey(0)
    k1, k2, k3 = jax.random.split(key, 3)
    B, C, H, W = 2, 4, 16, 16
    KSIZE = 10  # module default

    out_l = jax.random.normal(k1, (B, C, H, W), dtype=jnp.float32)
    out_r = jax.random.normal(k2, (B, C, H, W), dtype=jnp.float32)
    input_i = jax.random.normal(k3, (B, C, H, W), dtype=jnp.float32)

    loss_fn = jax.jit(functools.partial(ktv_loss, kernel_size=KSIZE))
    loss = loss_fn(out_l, out_r, input_i)
    jax.block_until_ready(loss)

    ref = ktv_loss_ref(out_l, out_r, input_i, kernel_size=KSIZE)
    np.testing.assert_allclose(np.asarray(loss), np.asarray(ref),
                               rtol=1e-4, atol=1e-5)
    print("KERNEL_OK")
</pallas_src>

<mosaic_0001>
module attributes {stable_mosaic.version = 11 : i64} {
  func.func @_ktv_kernel(%arg0: i32, %arg1: memref<16x16x128xf32, #tpu.memory_space<vmem>>, %arg2: memref<16x16x128xf32, #tpu.memory_space<vmem>>, %arg3: memref<16x16x128xf32, #tpu.memory_space<vmem>>, %arg4: memref<1x3x128xf32, #tpu.memory_space<vmem>>) attributes {dimension_semantics = [#tpu.dimension_semantics<parallel>], iteration_bounds = array<i64: 1>, scalar_prefetch = 0 : i64, scratch_operands = 0 : i64, tpu.core_type = #tpu.core_type<tc>, window_params = [{transform_indices = @transform_0, window_bounds = array<i64: 16, 16, 128>}, {transform_indices = @transform_1, window_bounds = array<i64: 16, 16, 128>}, {transform_indices = @transform_2, window_bounds = array<i64: 16, 16, 128>}, {transform_indices = @transform_3, window_bounds = array<i64: 1, 3, 128>}]} {
    %c0 = arith.constant 0 : index
    %c0_0 = arith.constant 0 : index
    %c0_1 = arith.constant 0 : index
    %0 = vector.load %arg1[%c0, %c0_0, %c0_1] : memref<16x16x128xf32, #tpu.memory_space<vmem>>, vector<16x16x128xf32>
    %c0_2 = arith.constant 0 : index
    %c0_3 = arith.constant 0 : index
    %c0_4 = arith.constant 0 : index
    %1 = vector.load %arg2[%c0_2, %c0_3, %c0_4] : memref<16x16x128xf32, #tpu.memory_space<vmem>>, vector<16x16x128xf32>
    %c0_5 = arith.constant 0 : index
    %c0_6 = arith.constant 0 : index
    %c0_7 = arith.constant 0 : index
    %2 = vector.load %arg3[%c0_5, %c0_6, %c0_7] : memref<16x16x128xf32, #tpu.memory_space<vmem>>, vector<16x16x128xf32>
    %3 = vector.extract_strided_slice %0 {offsets = [1, 0, 0], sizes = [15, 16, 128], strides = [1, 1, 1]} : vector<16x16x128xf32> to vector<15x16x128xf32>
    %4 = vector.extract_strided_slice %0 {offsets = [0, 0, 0], sizes = [15, 16, 128], strides = [1, 1, 1]} : vector<16x16x128xf32> to vector<15x16x128xf32>
    %5 = arith.subf %3, %4 : vector<15x16x128xf32>
    %6 = vector.extract_strided_slice %1 {offsets = [1, 0, 0], sizes = [15, 16, 128], strides = [1, 1, 1]} : vector<16x16x128xf32> to vector<15x16x128xf32>
    %7 = vector.extract_strided_slice %1 {offsets = [0, 0, 0], sizes = [15, 16, 128], strides = [1, 1, 1]} : vector<16x16x128xf32> to vector<15x16x128xf32>
    %8 = arith.subf %6, %7 : vector<15x16x128xf32>
    %9 = vector.extract_strided_slice %2 {offsets = [1, 0, 0], sizes = [15, 16, 128], strides = [1, 1, 1]} : vector<16x16x128xf32> to vector<15x16x128xf32>
    %10 = vector.extract_strided_slice %2 {offsets = [0, 0, 0], sizes = [15, 16, 128], strides = [1, 1, 1]} : vector<16x16x128xf32> to vector<15x16x128xf32>
    %11 = arith.subf %9, %10 : vector<15x16x128xf32>
    %12 = arith.addf %5, %8 : vector<15x16x128xf32>
    %13 = arith.subf %12, %11 : vector<15x16x128xf32>
    %14 = math.absf %13 : vector<15x16x128xf32>
    %cst = arith.constant dense<0.000000e+00> : vector<16x128xf32>
    %15 = vector.multi_reduction <add>, %14, %cst [0] : vector<15x16x128xf32> to vector<16x128xf32>
    %16 = vector.shape_cast %15 : vector<16x128xf32> to vector<1x16x128xf32>
    %cst_8 = arith.constant dense<0.000000e+00> : vector<1x128xf32>
    %17 = vector.multi_reduction <add>, %16, %cst_8 [1] : vector<1x16x128xf32> to vector<1x128xf32>
    %18 = vector.shape_cast %17 : vector<1x128xf32> to vector<1x1x128xf32>
    %19 = math.absf %5 : vector<15x16x128xf32>
    %20 = math.absf %8 : vector<15x16x128xf32>
    %21 = arith.addf %19, %20 : vector<15x16x128xf32>
    %22 = vector.extract_strided_slice %21 {offsets = [0, 0, 0], sizes = [14, 16, 128], strides = [1, 1, 1]} : vector<15x16x128xf32> to vector<14x16x128xf32>
    %23 = vector.extract_strided_slice %21 {offsets = [1, 0, 0], sizes = [14, 16, 128], strides = [1, 1, 1]} : vector<15x16x128xf32> to vector<14x16x128xf32>
    %24 = arith.addf %22, %23 : vector<14x16x128xf32>
    %25 = vector.extract_strided_slice %24 {offsets = [0, 0, 0], sizes = [12, 16, 128], strides = [1, 1, 1]} : vector<14x16x128xf32> to vector<12x16x128xf32>
    %26 = vector.extract_strided_slice %24 {offsets = [2, 0, 0], sizes = [12, 16, 128], strides = [1, 1, 1]} : vector<14x16x128xf32> to vector<12x16x128xf32>
    %27 = arith.addf %25, %26 : vector<12x16x128xf32>
    %28 = vector.extract_strided_slice %27 {offsets = [0, 0, 0], sizes = [8, 16, 128], strides = [1, 1, 1]} : vector<12x16x128xf32> to vector<8x16x128xf32>
    %29 = vector.extract_strided_slice %27 {offsets = [4, 0, 0], sizes = [8, 16, 128], strides = [1, 1, 1]} : vector<12x16x128xf32> to vector<8x16x128xf32>
    %30 = arith.addf %28, %29 : vector<8x16x128xf32>
    %31 = vector.extract_strided_slice %30 {offsets = [0, 0, 0], sizes = [6, 16, 128], strides = [1, 1, 1]} : vector<8x16x128xf32> to vector<6x16x128xf32>
    %32 = vector.extract_strided_slice %24 {offsets = [8, 0, 0], sizes = [6, 16, 128], strides = [1, 1, 1]} : vector<14x16x128xf32> to vector<6x16x128xf32>
    %33 = arith.addf %31, %32 : vector<6x16x128xf32>
    %34 = vector.extract_strided_slice %33 {offsets = [0, 0, 0], sizes = [6, 15, 128], strides = [1, 1, 1]} : vector<6x16x128xf32> to vector<6x15x128xf32>
    %35 = vector.extract_strided_slice %33 {offsets = [0, 1, 0], sizes = [6, 15, 128], strides = [1, 1, 1]} : vector<6x16x128xf32> to vector<6x15x128xf32>
    %36 = arith.addf %34, %35 : vector<6x15x128xf32>
    %37 = vector.extract_strided_slice %36 {offsets = [0, 0, 0], sizes = [6, 13, 128], strides = [1, 1, 1]} : vector<6x15x128xf32> to vector<6x13x128xf32>
    %38 = vector.extract_strided_slice %36 {offsets = [0, 2, 0], sizes = [6, 13, 128], strides = [1, 1, 1]} : vector<6x15x128xf32> to vector<6x13x128xf32>
    %39 = arith.addf %37, %38 : vector<6x13x128xf32>
    %40 = vector.extract_strided_slice %39 {offsets = [0, 0, 0], sizes = [6, 9, 128], strides = [1, 1, 1]} : vector<6x13x128xf32> to vector<6x9x128xf32>
    %41 = vector.extract_strided_slice %39 {offsets = [0, 4, 0], sizes = [6, 9, 128], strides = [1, 1, 1]} : vector<6x13x128xf32> to vector<6x9x128xf32>
    %42 = arith.addf %40, %41 : vector<6x9x128xf32>
    %43 = vector.extract_strided_slice %42 {offsets = [0, 0, 0], sizes = [6, 7, 128], strides = [1, 1, 1]} : vector<6x9x128xf32> to vector<6x7x128xf32>
    %44 = vector.extract_strided_slice %36 {offsets = [0, 8, 0], sizes = [6, 7, 128], strides = [1, 1, 1]} : vector<6x15x128xf32> to vector<6x7x128xf32>
    %45 = arith.addf %43, %44 : vector<6x7x128xf32>
    %cst_9 = arith.constant 0.00999999977 : f32
    %46 = vector.broadcast %cst_9 : f32 to vector<6x7x128xf32>
    %47 = arith.mulf %45, %46 : vector<6x7x128xf32>
    %48 = math.absf %11 : vector<15x16x128xf32>
    %49 = vector.extract_strided_slice %48 {offsets = [0, 0, 0], sizes = [14, 16, 128], strides = [1, 1, 1]} : vector<15x16x128xf32> to vector<14x16x128xf32>
    %50 = vector.extract_strided_slice %48 {offsets = [1, 0, 0], sizes = [14, 16, 128], strides = [1, 1, 1]} : vector<15x16x128xf32> to vector<14x16x128xf32>
    %51 = arith.addf %49, %50 : vector<14x16x128xf32>
    %52 = vector.extract_strided_slice %51 {offsets = [0, 0, 0], sizes = [12, 16, 128], strides = [1, 1, 1]} : vector<14x16x128xf32> to vector<12x16x128xf32>
    %53 = vector.extract_strided_slice %51 {offsets = [2, 0, 0], sizes = [12, 16, 128], strides = [1, 1, 1]} : vector<14x16x128xf32> to vector<12x16x128xf32>
    %54 = arith.addf %52, %53 : vector<12x16x128xf32>
    %55 = vector.extract_strided_slice %54 {offsets = [0, 0, 0], sizes = [8, 16, 128], strides = [1, 1, 1]} : vector<12x16x128xf32> to vector<8x16x128xf32>
    %56 = vector.extract_strided_slice %54 {offsets = [4, 0, 0], sizes = [8, 16, 128], strides = [1, 1, 1]} : vector<12x16x128xf32> to vector<8x16x128xf32>
    %57 = arith.addf %55, %56 : vector<8x16x128xf32>
    %58 = vector.extract_strided_slice %57 {offsets = [0, 0, 0], sizes = [6, 16, 128], strides = [1, 1, 1]} : vector<8x16x128xf32> to vector<6x16x128xf32>
    %59 = vector.extract_strided_slice %51 {offsets = [8, 0, 0], sizes = [6, 16, 128], strides = [1, 1, 1]} : vector<14x16x128xf32> to vector<6x16x128xf32>
    %60 = arith.addf %58, %59 : vector<6x16x128xf32>
    %61 = vector.extract_strided_slice %60 {offsets = [0, 0, 0], sizes = [6, 15, 128], strides = [1, 1, 1]} : vector<6x16x128xf32> to vector<6x15x128xf32>
    %62 = vector.extract_strided_slice %60 {offsets = [0, 1, 0], sizes = [6, 15, 128], strides = [1, 1, 1]} : vector<6x16x128xf32> to vector<6x15x128xf32>
    %63 = arith.addf %61, %62 : vector<6x15x128xf32>
    %64 = vector.extract_strided_slice %63 {offsets = [0, 0, 0], sizes = [6, 13, 128], strides = [1, 1, 1]} : vector<6x15x128xf32> to vector<6x13x128xf32>
    %65 = vector.extract_strided_slice %63 {offsets = [0, 2, 0], sizes = [6, 13, 128], strides = [1, 1, 1]} : vector<6x15x128xf32> to vector<6x13x128xf32>
    %66 = arith.addf %64, %65 : vector<6x13x128xf32>
    %67 = vector.extract_strided_slice %66 {offsets = [0, 0, 0], sizes = [6, 9, 128], strides = [1, 1, 1]} : vector<6x13x128xf32> to vector<6x9x128xf32>
    %68 = vector.extract_strided_slice %66 {offsets = [0, 4, 0], sizes = [6, 9, 128], strides = [1, 1, 1]} : vector<6x13x128xf32> to vector<6x9x128xf32>
    %69 = arith.addf %67, %68 : vector<6x9x128xf32>
    %70 = vector.extract_strided_slice %69 {offsets = [0, 0, 0], sizes = [6, 7, 128], strides = [1, 1, 1]} : vector<6x9x128xf32> to vector<6x7x128xf32>
    %71 = vector.extract_strided_slice %63 {offsets = [0, 8, 0], sizes = [6, 7, 128], strides = [1, 1, 1]} : vector<6x15x128xf32> to vector<6x7x128xf32>
    %72 = arith.addf %70, %71 : vector<6x7x128xf32>
    %cst_10 = arith.constant 0.00999999977 : f32
    %73 = vector.broadcast %cst_10 : f32 to vector<6x7x128xf32>
    %74 = arith.mulf %72, %73 : vector<6x7x128xf32>
    %75 = vector.extract_strided_slice %0 {offsets = [0, 1, 0], sizes = [16, 15, 128], strides = [1, 1, 1]} : vector<16x16x128xf32> to vector<16x15x128xf32>
    %76 = vector.extract_strided_slice %0 {offsets = [0, 0, 0], sizes = [16, 15, 128], strides = [1, 1, 1]} : vector<16x16x128xf32> to vector<16x15x128xf32>
    %77 = arith.subf %75, %76 : vector<16x15x128xf32>
    %78 = vector.extract_strided_slice %1 {offsets = [0, 1, 0], sizes = [16, 15, 128], strides = [1, 1, 1]} : vector<16x16x128xf32> to vector<16x15x128xf32>
    %79 = vector.extract_strided_slice %1 {offsets = [0, 0, 0], sizes = [16, 15, 128], strides = [1, 1, 1]} : vector<16x16x128xf32> to vector<16x15x128xf32>
    %80 = arith.subf %78, %79 : vector<16x15x128xf32>
    %81 = vector.extract_strided_slice %2 {offsets = [0, 1, 0], sizes = [16, 15, 128], strides = [1, 1, 1]} : vector<16x16x128xf32> to vector<16x15x128xf32>
    %82 = vector.extract_strided_slice %2 {offsets = [0, 0, 0], sizes = [16, 15, 128], strides = [1, 1, 1]} : vector<16x16x128xf32> to vector<16x15x128xf32>
    %83 = arith.subf %81, %82 : vector<16x15x128xf32>
    %84 = arith.addf %77, %80 : vector<16x15x128xf32>
    %85 = arith.subf %84, %83 : vector<16x15x128xf32>
    %86 = math.absf %85 : vector<16x15x128xf32>
    %cst_11 = arith.constant dense<0.000000e+00> : vector<15x128xf32>
    %87 = vector.multi_reduction <add>, %86, %cst_11 [0] : vector<16x15x128xf32> to vector<15x128xf32>
    %88 = vector.shape_cast %87 : vector<15x128xf32> to vector<1x15x128xf32>
    %cst_12 = arith.constant dense<0.000000e+00> : vector<1x128xf32>
    %89 = vector.multi_reduction <add>, %88, %cst_12 [1] : vector<1x15x128xf32> to vector<1x128xf32>
    %90 = vector.shape_cast %89 : vector<1x128xf32> to vector<1x1x128xf32>
    %91 = math.absf %77 : vector<16x15x128xf32>
    %92 = math.absf %80 : vector<16x15x128xf32>
    %93 = arith.addf %91, %92 : vector<16x15x128xf32>
    %94 = vector.extract_strided_slice %93 {offsets = [0, 0, 0], sizes = [15, 15, 128], strides = [1, 1, 1]} : vector<16x15x128xf32> to vector<15x15x128xf32>
    %95 = vector.extract_strided_slice %93 {offsets = [1, 0, 0], sizes = [15, 15, 128], strides = [1, 1, 1]} : vector<16x15x128xf32> to vector<15x15x128xf32>
    %96 = arith.addf %94, %95 : vector<15x15x128xf32>
    %97 = vector.extract_strided_slice %96 {offsets = [0, 0, 0], sizes = [13, 15, 128], strides = [1, 1, 1]} : vector<15x15x128xf32> to vector<13x15x128xf32>
    %98 = vector.extract_strided_slice %96 {offsets = [2, 0, 0], sizes = [13, 15, 128], strides = [1, 1, 1]} : vector<15x15x128xf32> to vector<13x15x128xf32>
    %99 = arith.addf %97, %98 : vector<13x15x128xf32>
    %100 = vector.extract_strided_slice %99 {offsets = [0, 0, 0], sizes = [9, 15, 128], strides = [1, 1, 1]} : vector<13x15x128xf32> to vector<9x15x128xf32>
    %101 = vector.extract_strided_slice %99 {offsets = [4, 0, 0], sizes = [9, 15, 128], strides = [1, 1, 1]} : vector<13x15x128xf32> to vector<9x15x128xf32>
    %102 = arith.addf %100, %101 : vector<9x15x128xf32>
    %103 = vector.extract_strided_slice %102 {offsets = [0, 0, 0], sizes = [7, 15, 128], strides = [1, 1, 1]} : vector<9x15x128xf32> to vector<7x15x128xf32>
    %104 = vector.extract_strided_slice %96 {offsets = [8, 0, 0], sizes = [7, 15, 128], strides = [1, 1, 1]} : vector<15x15x128xf32> to vector<7x15x128xf32>
    %105 = arith.addf %103, %104 : vector<7x15x128xf32>
    %106 = vector.extract_strided_slice %105 {offsets = [0, 0, 0], sizes = [7, 14, 128], strides = [1, 1, 1]} : vector<7x15x128xf32> to vector<7x14x128xf32>
    %107 = vector.extract_strided_slice %105 {offsets = [0, 1, 0], sizes = [7, 14, 128], strides = [1, 1, 1]} : vector<7x15x128xf32> to vector<7x14x128xf32>
    %108 = arith.addf %106, %107 : vector<7x14x128xf32>
    %109 = vector.extract_strided_slice %108 {offsets = [0, 0, 0], sizes = [7, 12, 128], strides = [1, 1, 1]} : vector<7x14x128xf32> to vector<7x12x128xf32>
    %110 = vector.extract_strided_slice %108 {offsets = [0, 2, 0], sizes = [7, 12, 128], strides = [1, 1, 1]} : vector<7x14x128xf32> to vector<7x12x128xf32>
    %111 = arith.addf %109, %110 : vector<7x12x128xf32>
    %112 = vector.extract_strided_slice %111 {offsets = [0, 0, 0], sizes = [7, 8, 128], strides = [1, 1, 1]} : vector<7x12x128xf32> to vector<7x8x128xf32>
    %113 = vector.extract_strided_slice %111 {offsets = [0, 4, 0], sizes = [7, 8, 128], strides = [1, 1, 1]} : vector<7x12x128xf32> to vector<7x8x128xf32>
    %114 = arith.addf %112, %113 : vector<7x8x128xf32>
    %115 = vector.extract_strided_slice %114 {offsets = [0, 0, 0], sizes = [7, 6, 128], strides = [1, 1, 1]} : vector<7x8x128xf32> to vector<7x6x128xf32>
    %116 = vector.extract_strided_slice %108 {offsets = [0, 8, 0], sizes = [7, 6, 128], strides = [1, 1, 1]} : vector<7x14x128xf32> to vector<7x6x128xf32>
    %117 = arith.addf %115, %116 : vector<7x6x128xf32>
    %cst_13 = arith.constant 0.00999999977 : f32
    %118 = vector.broadcast %cst_13 : f32 to vector<7x6x128xf32>
    %119 = arith.mulf %117, %118 : vector<7x6x128xf32>
    %120 = math.absf %83 : vector<16x15x128xf32>
    %121 = vector.extract_strided_slice %120 {offsets = [0, 0, 0], sizes = [15, 15, 128], strides = [1, 1, 1]} : vector<16x15x128xf32> to vector<15x15x128xf32>
    %122 = vector.extract_strided_slice %120 {offsets = [1, 0, 0], sizes = [15, 15, 128], strides = [1, 1, 1]} : vector<16x15x128xf32> to vector<15x15x128xf32>
    %123 = arith.addf %121, %122 : vector<15x15x128xf32>
    %124 = vector.extract_strided_slice %123 {offsets = [0, 0, 0], sizes = [13, 15, 128], strides = [1, 1, 1]} : vector<15x15x128xf32> to vector<13x15x128xf32>
    %125 = vector.extract_strided_slice %123 {offsets = [2, 0, 0], sizes = [13, 15, 128], strides = [1, 1, 1]} : vector<15x15x128xf32> to vector<13x15x128xf32>
    %126 = arith.addf %124, %125 : vector<13x15x128xf32>
    %127 = vector.extract_strided_slice %126 {offsets = [0, 0, 0], sizes = [9, 15, 128], strides = [1, 1, 1]} : vector<13x15x128xf32> to vector<9x15x128xf32>
    %128 = vector.extract_strided_slice %126 {offsets = [4, 0, 0], sizes = [9, 15, 128], strides = [1, 1, 1]} : vector<13x15x128xf32> to vector<9x15x128xf32>
    %129 = arith.addf %127, %128 : vector<9x15x128xf32>
    %130 = vector.extract_strided_slice %129 {offsets = [0, 0, 0], sizes = [7, 15, 128], strides = [1, 1, 1]} : vector<9x15x128xf32> to vector<7x15x128xf32>
    %131 = vector.extract_strided_slice %123 {offsets = [8, 0, 0], sizes = [7, 15, 128], strides = [1, 1, 1]} : vector<15x15x128xf32> to vector<7x15x128xf32>
    %132 = arith.addf %130, %131 : vector<7x15x128xf32>
    %133 = vector.extract_strided_slice %132 {offsets = [0, 0, 0], sizes = [7, 14, 128], strides = [1, 1, 1]} : vector<7x15x128xf32> to vector<7x14x128xf32>
    %134 = vector.extract_strided_slice %132 {offsets = [0, 1, 0], sizes = [7, 14, 128], strides = [1, 1, 1]} : vector<7x15x128xf32> to vector<7x14x128xf32>
    %135 = arith.addf %133, %134 : vector<7x14x128xf32>
    %136 = vector.extract_strided_slice %135 {offsets = [0, 0, 0], sizes = [7, 12, 128], strides = [1, 1, 1]} : vector<7x14x128xf32> to vector<7x12x128xf32>
    %137 = vector.extract_strided_slice %135 {offsets = [0, 2, 0], sizes = [7, 12, 128], strides = [1, 1, 1]} : vector<7x14x128xf32> to vector<7x12x128xf32>
    %138 = arith.addf %136, %137 : vector<7x12x128xf32>
    %139 = vector.extract_strided_slice %138 {offsets = [0, 0, 0], sizes = [7, 8, 128], strides = [1, 1, 1]} : vector<7x12x128xf32> to vector<7x8x128xf32>
    %140 = vector.extract_strided_slice %138 {offsets = [0, 4, 0], sizes = [7, 8, 128], strides = [1, 1, 1]} : vector<7x12x128xf32> to vector<7x8x128xf32>
    %141 = arith.addf %139, %140 : vector<7x8x128xf32>
    %142 = vector.extract_strided_slice %141 {offsets = [0, 0, 0], sizes = [7, 6, 128], strides = [1, 1, 1]} : vector<7x8x128xf32> to vector<7x6x128xf32>
    %143 = vector.extract_strided_slice %135 {offsets = [0, 8, 0], sizes = [7, 6, 128], strides = [1, 1, 1]} : vector<7x14x128xf32> to vector<7x6x128xf32>
    %144 = arith.addf %142, %143 : vector<7x6x128xf32>
    %cst_14 = arith.constant 0.00999999977 : f32
    %145 = vector.broadcast %cst_14 : f32 to vector<7x6x128xf32>
    %146 = arith.mulf %144, %145 : vector<7x6x128xf32>
    %147 = vector.extract_strided_slice %119 {offsets = [0, 0, 0], sizes = [6, 6, 128], strides = [1, 1, 1]} : vector<7x6x128xf32> to vector<6x6x128xf32>
    %148 = vector.extract_strided_slice %119 {offsets = [1, 0, 0], sizes = [6, 6, 128], strides = [1, 1, 1]} : vector<7x6x128xf32> to vector<6x6x128xf32>
    %149 = tpu.concatenate %147, %148 in 1 : vector<6x6x128xf32>, vector<6x6x128xf32> -> vector<6x12x128xf32>
    %150 = tpu.iota {dimensions = array<i32: 0>} : vector<6x12x128xi32>
    %c1_i32 = arith.constant 1 : i32
    %151 = vector.broadcast %c1_i32 : i32 to vector<6x12x128xi32>
    %152 = arith.andi %150, %151 : vector<6x12x128xi32>
    %c0_i32 = arith.constant 0 : i32
    %153 = vector.broadcast %c0_i32 : i32 to vector<6x12x128xi32>
    %154 = arith.cmpi ne, %152, %153 : vector<6x12x128xi32>
    %155 = vector.extract_strided_slice %149 {offsets = [0, 1, 0], sizes = [6, 11, 128], strides = [1, 1, 1]} : vector<6x12x128xf32> to vector<6x11x128xf32>
    %156 = vector.extract_strided_slice %149 {offsets = [0, 0, 0], sizes = [6, 1, 128], strides = [1, 1, 1]} : vector<6x12x128xf32> to vector<6x1x128xf32>
    %157 = tpu.concatenate %155, %156 in 1 : vector<6x11x128xf32>, vector<6x1x128xf32> -> vector<6x12x128xf32>
    %158 = arith.select %154, %157, %149 : vector<6x12x128xi1>, vector<6x12x128xf32>
    %c2_i32 = arith.constant 2 : i32
    %159 = vector.broadcast %c2_i32 : i32 to vector<6x12x128xi32>
    %160 = arith.andi %150, %159 : vector<6x12x128xi32>
    %c0_i32_15 = arith.constant 0 : i32
    %161 = vector.broadcast %c0_i32_15 : i32 to vector<6x12x128xi32>
    %162 = arith.cmpi ne, %160, %161 : vector<6x12x128xi32>
    %163 = vector.extract_strided_slice %158 {offsets = [0, 2, 0], sizes = [6, 10, 128], strides = [1, 1, 1]} : vector<6x12x128xf32> to vector<6x10x128xf32>
    %164 = vector.extract_strided_slice %158 {offsets = [0, 0, 0], sizes = [6, 2, 128], strides = [1, 1, 1]} : vector<6x12x128xf32> to vector<6x2x128xf32>
    %165 = tpu.concatenate %163, %164 in 1 : vector<6x10x128xf32>, vector<6x2x128xf32> -> vector<6x12x128xf32>
    %166 = arith.select %162, %165, %158 : vector<6x12x128xi1>, vector<6x12x128xf32>
    %c4_i32 = arith.constant 4 : i32
    %167 = vector.broadcast %c4_i32 : i32 to vector<6x12x128xi32>
    %168 = arith.andi %150, %167 : vector<6x12x128xi32>
    %c0_i32_16 = arith.constant 0 : i32
    %169 = vector.broadcast %c0_i32_16 : i32 to vector<6x12x128xi32>
    %170 = arith.cmpi ne, %168, %169 : vector<6x12x128xi32>
    %171 = vector.extract_strided_slice %166 {offsets = [0, 4, 0], sizes = [6, 8, 128], strides = [1, 1, 1]} : vector<6x12x128xf32> to vector<6x8x128xf32>
    %172 = vector.extract_strided_slice %166 {offsets = [0, 0, 0], sizes = [6, 4, 128], strides = [1, 1, 1]} : vector<6x12x128xf32> to vector<6x4x128xf32>
    %173 = tpu.concatenate %171, %172 in 1 : vector<6x8x128xf32>, vector<6x4x128xf32> -> vector<6x12x128xf32>
    %174 = arith.select %170, %173, %166 : vector<6x12x128xi1>, vector<6x12x128xf32>
    %175 = vector.extract_strided_slice %174 {offsets = [0, 0, 0], sizes = [6, 7, 128], strides = [1, 1, 1]} : vector<6x12x128xf32> to vector<6x7x128xf32>
    %176 = vector.extract_strided_slice %146 {offsets = [0, 0, 0], sizes = [6, 6, 128], strides = [1, 1, 1]} : vector<7x6x128xf32> to vector<6x6x128xf32>
    %177 = vector.extract_strided_slice %146 {offsets = [1, 0, 0], sizes = [6, 6, 128], strides = [1, 1, 1]} : vector<7x6x128xf32> to vector<6x6x128xf32>
    %178 = tpu.concatenate %176, %177 in 1 : vector<6x6x128xf32>, vector<6x6x128xf32> -> vector<6x12x128xf32>
    %179 = tpu.iota {dimensions = array<i32: 0>} : vector<6x12x128xi32>
    %c1_i32_17 = arith.constant 1 : i32
    %180 = vector.broadcast %c1_i32_17 : i32 to vector<6x12x128xi32>
    %181 = arith.andi %179, %180 : vector<6x12x128xi32>
    %c0_i32_18 = arith.constant 0 : i32
    %182 = vector.broadcast %c0_i32_18 : i32 to vector<6x12x128xi32>
    %183 = arith.cmpi ne, %181, %182 : vector<6x12x128xi32>
    %184 = vector.extract_strided_slice %178 {offsets = [0, 1, 0], sizes = [6, 11, 128], strides = [1, 1, 1]} : vector<6x12x128xf32> to vector<6x11x128xf32>
    %185 = vector.extract_strided_slice %178 {offsets = [0, 0, 0], sizes = [6, 1, 128], strides = [1, 1, 1]} : vector<6x12x128xf32> to vector<6x1x128xf32>
    %186 = tpu.concatenate %184, %185 in 1 : vector<6x11x128xf32>, vector<6x1x128xf32> -> vector<6x12x128xf32>
    %187 = arith.select %183, %186, %178 : vector<6x12x128xi1>, vector<6x12x128xf32>
    %c2_i32_19 = arith.constant 2 : i32
    %188 = vector.broadcast %c2_i32_19 : i32 to vector<6x12x128xi32>
    %189 = arith.andi %179, %188 : vector<6x12x128xi32>
    %c0_i32_20 = arith.constant 0 : i32
    %190 = vector.broadcast %c0_i32_20 : i32 to vector<6x12x128xi32>
    %191 = arith.cmpi ne, %189, %190 : vector<6x12x128xi32>
    %192 = vector.extract_strided_slice %187 {offsets = [0, 2, 0], sizes = [6, 10, 128], strides = [1, 1, 1]} : vector<6x12x128xf32> to vector<6x10x128xf32>
    %193 = vector.extract_strided_slice %187 {offsets = [0, 0, 0], sizes = [6, 2, 128], strides = [1, 1, 1]} : vector<6x12x128xf32> to vector<6x2x128xf32>
    %194 = tpu.concatenate %192, %193 in 1 : vector<6x10x128xf32>, vector<6x2x128xf32> -> vector<6x12x128xf32>
    %195 = arith.select %191, %194, %187 : vector<6x12x128xi1>, vector<6x12x128xf32>
    %c4_i32_21 = arith.constant 4 : i32
    %196 = vector.broadcast %c4_i32_21 : i32 to vector<6x12x128xi32>
    %197 = arith.andi %179, %196 : vector<6x12x128xi32>
    %c0_i32_22 = arith.constant 0 : i32
    %198 = vector.broadcast %c0_i32_22 : i32 to vector<6x12x128xi32>
    %199 = arith.cmpi ne, %197, %198 : vector<6x12x128xi32>
    %200 = vector.extract_strided_slice %195 {offsets = [0, 4, 0], sizes = [6, 8, 128], strides = [1, 1, 1]} : vector<6x12x128xf32> to vector<6x8x128xf32>
    %201 = vector.extract_strided_slice %195 {offsets = [0, 0, 0], sizes = [6, 4, 128], strides = [1, 1, 1]} : vector<6x12x128xf32> to vector<6x4x128xf32>
    %202 = tpu.concatenate %200, %201 in 1 : vector<6x8x128xf32>, vector<6x4x128xf32> -> vector<6x12x128xf32>
    %203 = arith.select %199, %202, %195 : vector<6x12x128xi1>, vector<6x12x128xf32>
    %204 = vector.extract_strided_slice %203 {offsets = [0, 0, 0], sizes = [6, 7, 128], strides = [1, 1, 1]} : vector<6x12x128xf32> to vector<6x7x128xf32>
    %205 = arith.addf %74, %204 : vector<6x7x128xf32>
    %cst_23 = arith.constant 9.99999997E-7 : f32
    %206 = vector.broadcast %cst_23 : f32 to vector<6x7x128xf32>
    %207 = arith.addf %205, %206 : vector<6x7x128xf32>
    %208 = tpu.reciprocal %207 {approx = true} : vector<6x7x128xf32> -> vector<6x7x128xf32>
    %209 = arith.addf %47, %175 : vector<6x7x128xf32>
    %210 = arith.mulf %209, %208 : vector<6x7x128xf32>
    %cst_24 = arith.constant dense<0.000000e+00> : vector<7x128xf32>
    %211 = vector.multi_reduction <add>, %210, %cst_24 [0] : vector<6x7x128xf32> to vector<7x128xf32>
    %212 = vector.shape_cast %211 : vector<7x128xf32> to vector<1x7x128xf32>
    %cst_25 = arith.constant dense<0.000000e+00> : vector<1x128xf32>
    %213 = vector.multi_reduction <add>, %212, %cst_25 [1] : vector<1x7x128xf32> to vector<1x128xf32>
    %214 = vector.shape_cast %213 : vector<1x128xf32> to vector<1x1x128xf32>
    %215 = tpu.concatenate %214, %18, %90 in 1 : vector<1x1x128xf32>, vector<1x1x128xf32>, vector<1x1x128xf32> -> vector<1x3x128xf32>
    %c0_26 = arith.constant 0 : index
    %c0_27 = arith.constant 0 : index
    %c0_28 = arith.constant 0 : index
    %216 = vector.load %arg4[%c0_26, %c0_27, %c0_28] : memref<1x3x128xf32, #tpu.memory_space<vmem>>, vector<1x3x128xf32>
    tpu.vector_store %arg4[%c0_26, %c0_27, %c0_28], %215 {strides = array<i32>} : memref<1x3x128xf32, #tpu.memory_space<vmem>>, vector<1x3x128xf32>,
    return
  }
  func.func @transform_0(%arg0: i32) -> (i32, i32, i32) {
    %c0_i32 = arith.constant 0 : i32
    %c0_i32_0 = arith.constant 0 : i32
    %c0_i32_1 = arith.constant 0 : i32
    return %c0_i32, %c0_i32_0, %arg0 : i32, i32, i32
  }
  func.func @transform_1(%arg0: i32) -> (i32, i32, i32) {
    %c0_i32 = arith.constant 0 : i32
    %c0_i32_0 = arith.constant 0 : i32
    %c0_i32_1 = arith.constant 0 : i32
    return %c0_i32, %c0_i32_0, %arg0 : i32, i32, i32
  }
  func.func @transform_2(%arg0: i32) -> (i32, i32, i32) {
    %c0_i32 = arith.constant 0 : i32
    %c0_i32_0 = arith.constant 0 : i32
    %c0_i32_1 = arith.constant 0 : i32
    return %c0_i32, %c0_i32_0, %arg0 : i32, i32, i32
  }
  func.func @transform_3(%arg0: i32) -> (i32, i32, i32) {
    %c0_i32 = arith.constant 0 : i32
    %c0_i32_0 = arith.constant 0 : i32
    %c0_i32_1 = arith.constant 0 : i32
    return %arg0, %c0_i32, %c0_i32_0 : i32, i32, i32
  }
}

</mosaic_0001>

<bundles_post_ra>
// kernel: ktv_loss.1
= control target key start
LH: loop header
LB: loop body
LE: loop exit
PB: predicated region body
PF: predicated region fallthrough
CT: control target
= control target key end

     0   :  { %vm499_vm0 = vcmask 1046528   ;;  %vm554_vm1 = vcmask 1045504   ;;  %vm609_vm2 = vcmask 1043456   ;;  %vm948_vm3 = vcmask 1040384   ;;  %s5448_s0 = inlined_call_operand.vmem [shape: f32[16,16,128], index: 0, kind: input, shape index: {}]   ;;  %s5449_s1 = inlined_call_operand.vmem [shape: f32[16,16,128], index: 1, kind: input, shape index: {}]   ;;  %s5450_s2 = inlined_call_operand.vmem [shape: f32[16,16,128], index: 2, kind: input, shape index: {}]   ;;  %s5451_s3 = inlined_call_operand.vmem [shape: f32[1,3,128], index: 3, kind: output, shape index: {}]  }
   0x1   :  { %v14_v0 = vld [vmem:[%s5448_s0] sm:$0xff]  ;;  %v16_v1 = vld [vmem:[%s5448_s0 + $0x10] sm:$0xff]  ;;  %v15_v2 = vld [vmem:[%s5448_s0 + $0x8] sm:$0xff]  ;;  %vm1445_vm4 = vcmask 1047553   ;;  %vm2258_vm5 = vcmask 1042432   ;;  %vm2331_vm6 = vcmask 1041408  }
   0x2   :  { %v17_v3 = vld [vmem:[%s5448_s0 + $0x18] sm:$0xff]  ;;  %v2804_v4 = vsub.f32 %v16_v1, %v14_v0  ;;  %v18_v5 = vld [vmem:[%s5448_s0 + $0x20] sm:$0xff]  ;;  %v19_v6 = vld [vmem:[%s5448_s0 + $0x28] sm:$0xff] }
   0x3   :  { %v2812_v7 = vsub.f32 %v17_v3, %v15_v2  ;;  %v20_v8 = vld [vmem:[%s5448_s0 + $0x30] sm:$0xff]  ;;  %v21_v9 = vld [vmem:[%s5448_s0 + $0x38] sm:$0xff]  ;;  %v22_v10 = vld [vmem:[%s5448_s0 + $0x40] sm:$0xff]  ;;  %v2823_v11 = vsub.f32 %v18_v5, %v16_v1  ;;  %v2834_v15 = vsub.f32 %v19_v6, %v17_v3 }
   0x4   :  { %5706 = vst [vmem:[#allocation2_spill] sm:$0xff] %v2804_v4  ;;  %v23_v12 = vld [vmem:[%s5448_s0 + $0x48] sm:$0xff]  ;;  %v24_v13 = vld [vmem:[%s5448_s0 + $0x50] sm:$0xff]  ;;  %v25_v14 = vld [vmem:[%s5448_s0 + $0x58] sm:$0xff]  ;;  %v2836_v16 = vsub.f32 %v20_v8, %v18_v5  ;;  %v2847_v20 = vsub.f32 %v21_v9, %v19_v6  ;;  %v2849_v21 = vsub.f32 %v22_v10, %v20_v8 }
   0x5   :  { %5707 = vst [vmem:[#allocation3_spill] sm:$0xff] %v2812_v7  ;;  %5708 = vst [vmem:[#allocation4_spill] sm:$0xff] %v2823_v11  ;;  %v26_v17 = vld [vmem:[%s5448_s0 + $0x60] sm:$0xff]  ;;  %v27_v18 = vld [vmem:[%s5448_s0 + $0x68] sm:$0xff]  ;;  %v2851_v22 = vsub.f32 %v23_v12, %v21_v9  ;;  %v2863_v27 = vsub.f32 %v24_v13, %v22_v10  ;;  %v2865_v28 = vsub.f32 %v25_v14, %v23_v12 }
   0x6   :  { %5709 = vst [vmem:[#allocation5_spill] sm:$0xff] %v2834_v15  ;;  %5710 = vst [vmem:[#allocation6_spill] sm:$0xff] %v2836_v16  ;;  %v28_v19 = vld [vmem:[%s5448_s0 + $0x70] sm:$0xff]  ;;  %v29_v24 = vld [vmem:[%s5448_s0 + $0x78] sm:$0xff]  ;;  %v2867_v29 = vsub.f32 %v26_v17, %v24_v13  ;;  %v2879_v34 = vsub.f32 %v27_v18, %v25_v14 }
   0x7   :  { %5711 = vst [vmem:[#allocation7_spill] sm:$0xff] %v2847_v20  ;;  %5712 = vst [vmem:[#allocation8_spill] sm:$0xff] %v2849_v21  ;;  %v30_v25 = vld [vmem:[%s5448_s0 + $0x80] sm:$0xff]  ;;  %v31_v26 = vld [vmem:[%s5448_s0 + $0x88] sm:$0xff]  ;;  %v2881_v35 = vsub.f32 %v28_v19, %v26_v17  ;;  %v2883_v36 = vsub.f32 %v29_v24, %v27_v18 }
   0x8   :  { %5713 = vst [vmem:[#allocation9_spill] sm:$0xff] %v2851_v22  ;;  %5714 = vst [vmem:[#allocation10_spill] sm:$0xff] %v2863_v27  ;;  %v32_v31 = vld [vmem:[%s5448_s0 + $0x90] sm:$0xff]  ;;  %v33_v32 = vld [vmem:[%s5448_s0 + $0x98] sm:$0xff]  ;;  %v2895_v41 = vsub.f32 %v30_v25, %v28_v19  ;;  %v2897_v42 = vsub.f32 %v31_v26, %v29_v24 }
   0x9   :  { %5715 = vst [vmem:[#allocation11_spill] sm:$0xff] %v2865_v28  ;;  %5716 = vst [vmem:[#allocation12_spill] sm:$0xff] %v2867_v29  ;;  %v34_v33 = vld [vmem:[%s5448_s0 + $0xa0] sm:$0xff]  ;;  %v35_v38 = vld [vmem:[%s5448_s0 + $0xa8] sm:$0xff]  ;;  %v2899_v43 = vsub.f32 %v32_v31, %v30_v25  ;;  %v2911_v48 = vsub.f32 %v33_v32, %v31_v26 }
   0xa   :  { %5717 = vst [vmem:[#allocation13_spill] sm:$0xff] %v2879_v34  ;;  %5718 = vst [vmem:[#allocation14_spill] sm:$0xff] %v2881_v35  ;;  %v36_v39 = vld [vmem:[%s5448_s0 + $0xb0] sm:$0xff]  ;;  %v37_v40 = vld [vmem:[%s5448_s0 + $0xb8] sm:$0xff]  ;;  %v2913_v49 = vsub.f32 %v34_v33, %v32_v31  ;;  %v2915_v50 = vsub.f32 %v35_v38, %v33_v32 }
   0xb   :  { %5719 = vst [vmem:[#allocation15_spill] sm:$0xff] %v2883_v36  ;;  %5720 = vst [vmem:[#allocation16_spill] sm:$0xff] %v2895_v41  ;;  %v38_v45 = vld [vmem:[%s5448_s0 + $0xc0] sm:$0xff]  ;;  %v39_v46 = vld [vmem:[%s5448_s0 + $0xc8] sm:$0xff]  ;;  %v2927_v55 = vsub.f32 %v36_v39, %v34_v33  ;;  %v2929_v56 = vsub.f32 %v37_v40, %v35_v38 }
   0xc   :  { %5721 = vst [vmem:[#allocation17_spill] sm:$0xff] %v2897_v42  ;;  %5722 = vst [vmem:[#allocation18_spill] sm:$0xff] %v2899_v43  ;;  %v40_v47 = vld [vmem:[%s5448_s0 + $0xd0] sm:$0xff]  ;;  %v41_v52 = vld [vmem:[%s5448_s0 + $0xd8] sm:$0xff]  ;;  %v2931_v57 = vsub.f32 %v38_v45, %v36_v39  ;;  %v2943_v62 = vsub.f32 %v39_v46, %v37_v40 }
   0xd   :  { %v42_v53 = vld [vmem:[%s5448_s0 + $0xe0] sm:$0xff]  ;;  %v43_v54 = vld [vmem:[%s5448_s0 + $0xe8] sm:$0xff]  ;;  %v44_v59 = vld [vmem:[%s5448_s0 + $0xf0] sm:$0xff]  ;;  %v2945_v63 = vsub.f32 %v40_v47, %v38_v45  ;;  %v2947_v0 = vsub.f32 %v41_v52, %v39_v46 }
   0xe   :  { %v45_v60 = vld [vmem:[%s5448_s0 + $0xf8] sm:$0xff]  ;;  %v46_v61 = vld [vmem:[%s5449_s1] sm:$0xff]  ;;  %v47_v2 = vld [vmem:[%s5449_s1 + $0x8] sm:$0xff]  ;;  %v2959_v6 = vsub.f32 %v42_v53, %v40_v47  ;;  %v2961_v8 = vsub.f32 %v43_v54, %v41_v52  ;;  %v2963_v9 = vsub.f32 %v44_v59, %v42_v53 }
   0xf   :  { %v48_v3 = vld [vmem:[%s5449_s1 + $0x10] sm:$0xff]  ;;  %v49_v5 = vld [vmem:[%s5449_s1 + $0x18] sm:$0xff]  ;;  %v50_v12 = vld [vmem:[%s5449_s1 + $0x20] sm:$0xff]  ;;  %v2975_v17 = vsub.f32 %v45_v60, %v43_v54 }
  0x10   :  { %5723 = vst [vmem:[#allocation19_spill] sm:$0xff] %v2959_v6  ;;  %5724 = vst [vmem:[#allocation20_spill] sm:$0xff] %v2961_v8  ;;  %v51_v13 = vld [vmem:[%s5449_s1 + $0x28] sm:$0xff]  ;;  %v52_v14 = vld [vmem:[%s5449_s1 + $0x30] sm:$0xff]  ;;  %v2977_v18 = vsub.f32 %v48_v3, %v46_v61  ;;  %v2979_v19 = vsub.f32 %v49_v5, %v47_v2  ;;  %v2991_v32 = vsub.f32 %v50_v12, %v48_v3 }
  0x11   :  { %5725 = vst [vmem:[#allocation21_spill] sm:$0xff] %v2963_v9  ;;  %5726 = vst [vmem:[#allocation22_spill] sm:$0xff] %v2975_v17  ;;  %v53_v25 = vld [vmem:[%s5449_s1 + $0x38] sm:$0xff]  ;;  %v54_v26 = vld [vmem:[%s5449_s1 + $0x40] sm:$0xff]  ;;  %v2993_v33 = vsub.f32 %v51_v13, %v49_v5  ;;  %v2995_v38 = vsub.f32 %v52_v14, %v50_v12 }
  0x12   :  { %5727 = vst [vmem:[#allocation23_spill] sm:$0xff] %v2977_v18  ;;  %5728 = vst [vmem:[#allocation24_spill] sm:$0xff] %v2979_v19  ;;  %v55_v31 = vld [vmem:[%s5449_s1 + $0x48] sm:$0xff]  ;;  %v56_v40 = vld [vmem:[%s5449_s1 + $0x50] sm:$0xff]  ;;  %v3007_v47 = vsub.f32 %v53_v25, %v51_v13  ;;  %v3009_v52 = vsub.f32 %v54_v26, %v52_v14  ;;  %v3031_v12 = vadd.f32 %v2977_v18, %v2804_v4 }
  0x13   :  { %5729 = vst [vmem:[#allocation25_spill] sm:$0xff] %v2991_v32  ;;  %5730 = vst [vmem:[#allocation26_spill] sm:$0xff] %v2993_v33  ;;  %v57_v45 = vld [vmem:[%s5449_s1 + $0x58] sm:$0xff]  ;;  %v58_v46 = vld [vmem:[%s5449_s1 + $0x60] sm:$0xff]  ;;  %v3011_v53 = vsub.f32 %v55_v31, %v53_v25  ;;  %v3023_v2 = vsub.f32 %v56_v40, %v54_v26  ;;  %v3050_v54 = vadd.f32 %v2979_v19, %v2812_v7 }
  0x14   :  { %5731 = vst [vmem:[#allocation27_spill] sm:$0xff] %v2995_v38  ;;  %5732 = vst [vmem:[#allocation28_spill] sm:$0xff] %v3007_v47  ;;  %v59_v59 = vld [vmem:[%s5449_s1 + $0x68] sm:$0xff]  ;;  %v60_v60 = vld [vmem:[%s5449_s1 + $0x70] sm:$0xff]  ;;  %v3025_v3 = vsub.f32 %v57_v45, %v55_v31  ;;  %v3027_v5 = vsub.f32 %v58_v46, %v56_v40  ;;  %v3069_v1 = vadd.f32 %v2991_v32, %v2823_v11 }
  0x15   :  { %5733 = vst [vmem:[#allocation29_spill] sm:$0xff] %v3009_v52  ;;  %5734 = vst [vmem:[#allocation30_spill] sm:$0xff] %v3011_v53  ;;  %v61_v61 = vld [vmem:[%s5449_s1 + $0x78] sm:$0xff]  ;;  %v62_v13 = vld [vmem:[%s5449_s1 + $0x80] sm:$0xff]  ;;  %v3042_v26 = vsub.f32 %v59_v59, %v57_v45  ;;  %v3044_v31 = vsub.f32 %v60_v60, %v58_v46  ;;  %v3088_v37 = vadd.f32 %v2993_v33, %v2834_v15 }
  0x16   :  { %5735 = vst [vmem:[#allocation31_spill] sm:$0xff] %v3023_v2  ;;  %5736 = vst [vmem:[#allocation32_spill] sm:$0xff] %v3025_v3  ;;  %v63_v14 = vld [vmem:[%s5449_s1 + $0x88] sm:$0xff]  ;;  %v64_v25 = vld [vmem:[%s5449_s1 + $0x90] sm:$0xff]  ;;  %v3046_v40 = vsub.f32 %v61_v61, %v59_v59  ;;  %v3061_v46 = vsub.f32 %v62_v13, %v60_v60  ;;  %v3107_v15 = vadd.f32 %v2995_v38, %v2836_v16 }
  0x17   :  { %5737 = vst [vmem:[#allocation33_spill] sm:$0xff] %v3027_v5  ;;  %5738 = vst [vmem:[#allocation34_spill] sm:$0xff] %v3042_v26  ;;  %v65_v39 = vld [vmem:[%s5449_s1 + $0x98] sm:$0xff]  ;;  %v66_v24 = vld [vmem:[%s5449_s1 + $0xa0] sm:$0xff]  ;;  %v3063_v59 = vsub.f32 %v63_v14, %v61_v61  ;;  %v3065_v10 = vsub.f32 %v64_v25, %v62_v13  ;;  %v3126_v16 = vadd.f32 %v3007_v47, %v2847_v20 }
  0x18   :  { %5739 = vst [vmem:[#allocation35_spill] sm:$0xff] %v3044_v31  ;;  %5740 = vst [vmem:[#allocation36_spill] sm:$0xff] %v3046_v40  ;;  %v67_v45 = vld [vmem:[%s5449_s1 + $0xa8] sm:$0xff]  ;;  %v68_v58 = vld [vmem:[%s5449_s1 + $0xb0] sm:$0xff]  ;;  %v3080_v61 = vsub.f32 %v65_v39, %v63_v14  ;;  %v3082_v13 = vsub.f32 %v66_v24, %v64_v25  ;;  %v3145_v20 = vadd.f32 %v3009_v52, %v2849_v21 }
  0x19   :  { %5741 = vst [vmem:[#allocation37_spill] sm:$0xff] %v3061_v46  ;;  %5742 = vst [vmem:[#allocation38_spill] sm:$0xff] %v3063_v59  ;;  %v69_v51 = vld [vmem:[%s5449_s1 + $0xb8] sm:$0xff]  ;;  %v70_v60 = vld [vmem:[%s5449_s1 + $0xc0] sm:$0xff]  ;;  %v3084_v44 = vsub.f32 %v67_v45, %v65_v39  ;;  %v3099_v25 = vsub.f32 %v68_v58, %v66_v24  ;;  %v3168_v21 = vadd.f32 %v3025_v3, %v2865_v28 }
  0x1a   :  { %5743 = vst [vmem:[#allocation39_spill] sm:$0xff] %v3065_v10  ;;  %5744 = vst [vmem:[#allocation40_spill] sm:$0xff] %v3080_v61  ;;  %v71_v30 = vld [vmem:[%s5449_s1 + $0xc8] sm:$0xff]  ;;  %v72_v23 = vld [vmem:[%s5449_s1 + $0xd0] sm:$0xff]  ;;  %v3101_v39 = vsub.f32 %v69_v51, %v67_v45  ;;  %v3103_v11 = vsub.f32 %v70_v60, %v68_v58  ;;  %v3187_v28 = vadd.f32 %v3027_v5, %v2867_v29 }
  0x1b   :  { %5745 = vst [vmem:[#allocation41_spill] sm:$0xff] %v3082_v13  ;;  %v73_v14 = vld [vmem:[%s5449_s1 + $0xd8] sm:$0xff]  ;;  %v74_v7 = vld [vmem:[%s5449_s1 + $0xe0] sm:$0xff]  ;;  %v75_v4 = vld [vmem:[%s5449_s1 + $0xe8] sm:$0xff]  ;;  %v3118_v45 = vsub.f32 %v71_v30, %v69_v51  ;;  %v3120_v58 = vsub.f32 %v72_v23, %v70_v60  ;;  %v3206_v29 = vadd.f32 %v3042_v26, %v2879_v34  ;;  %v3225_v26 = vadd.f32 %v3044_v31, %v2881_v35 }
  0x1c   :  { %5746 = vst [vmem:[#allocation42_spill] sm:$0xff] %v3103_v11  ;;  %v76_v24 = vld [vmem:[%s5449_s1 + $0xf0] sm:$0xff]  ;;  %v3122_v33 = vsub.f32 %v73_v14, %v71_v30  ;;  %v77_v38 = vld [vmem:[%s5449_s1 + $0xf8] sm:$0xff]  ;;  %v78_v32 = vld [vmem:[%s5450_s2] sm:$0xff]  ;;  %v3137_v60 = vsub.f32 %v74_v7, %v72_v23  ;;  %v3139_v30 = vsub.f32 %v75_v4, %v73_v14  ;;  %v3244_v31 = vadd.f32 %v3046_v40, %v2883_v36 }
  0x1d   :  { %5747 = vst [vmem:[#allocation43_spill] sm:$0xff] %v3118_v45  ;;  %5748 = vst [vmem:[#allocation44_spill] sm:$0xff] %v3120_v58  ;;  %v79_v51 = vld [vmem:[%s5450_s2 + $0x8] sm:$0xff]  ;;  %v3141_v19 = vsub.f32 %v76_v24, %v74_v7  ;;  %v80_v47 = vld [vmem:[%s5450_s2 + $0x10] sm:$0xff]  ;;  %v3156_v14 = vsub.f32 %v77_v38, %v75_v4  ;;  %v3160_v7 = vadd.f32 %v3011_v53, %v2851_v22 }
  0x1e   :  { %5749 = vst [vmem:[#allocation45_spill] sm:$0xff] %v3122_v33  ;;  %5750 = vst [vmem:[#allocation46_spill] sm:$0xff] %v3137_v60  ;;  %v81_v18 = vld [vmem:[%s5450_s2 + $0x18] sm:$0xff]  ;;  %v82_v23 = vld [vmem:[%s5450_s2 + $0x20] sm:$0xff]  ;;  %v3164_v24 = vadd.f32 %v3023_v2, %v2863_v27  ;;  %v3179_v22 = vsub.f32 %v80_v47, %v78_v32  ;;  %v3263_v40 = vadd.f32 %v3061_v46, %v2895_v41 }
  0x1f   :  { %5751 = vst [vmem:[#allocation47_spill] sm:$0xff] %v3139_v30  ;;  %5752 = vst [vmem:[#allocation48_spill] sm:$0xff] %v3141_v19  ;;  %v83_v52 = vld [vmem:[%s5450_s2 + $0x28] sm:$0xff]  ;;  %v84_v4 = vld [vmem:[%s5450_s2 + $0x30] sm:$0xff]  ;;  %v3181_v27 = vsub.f32 %v81_v18, %v79_v51  ;;  %v3183_v2 = vsub.f32 %v82_v23, %v80_v47  ;;  %v3282_v46 = vadd.f32 %v3063_v59, %v2897_v42 }
  0x20   :  { %5753 = vst [vmem:[#allocation49_spill] sm:$0xff] %v3156_v14  ;;  %5754 = vst [vmem:[#allocation50_spill] sm:$0xff] %v3164_v24  ;;  %v85_v38 = vld [vmem:[%s5450_s2 + $0x38] sm:$0xff]  ;;  %v86_v3 = vld [vmem:[%s5450_s2 + $0x40] sm:$0xff]  ;;  %v3198_v51 = vsub.f32 %v83_v52, %v81_v18  ;;  %v3200_v47 = vsub.f32 %v84_v4, %v82_v23  ;;  %v3301_v59 = vadd.f32 %v3065_v10, %v2899_v43 }
  0x21   :  { %5755 = vst [vmem:[#allocation51_spill] sm:$0xff] %v3168_v21  ;;  %5756 = vst [vmem:[#allocation52_spill] sm:$0xff] %v3179_v22  ;;  %v87_v53 = vld [vmem:[%s5450_s2 + $0x48] sm:$0xff]  ;;  %v88_v32 = vld [vmem:[%s5450_s2 + $0x50] sm:$0xff]  ;;  %v3202_v21 = vsub.f32 %v85_v38, %v83_v52  ;;  %v3217_v23 = vsub.f32 %v86_v3, %v84_v4  ;;  %v3320_v10 = vadd.f32 %v3080_v61, %v2911_v48 }
  0x22   :  { %5757 = vst [vmem:[#allocation53_spill] sm:$0xff] %v3181_v27  ;;  %5758 = vst [vmem:[#allocation54_spill] sm:$0xff] %v3183_v2  ;;  %v89_v5 = vld [vmem:[%s5450_s2 + $0x58] sm:$0xff]  ;;  %v91_v18 = vld [vmem:[%s5450_s2 + $0x68] sm:$0xff]  ;;  %v3219_v52 = vsub.f32 %v87_v53, %v85_v38  ;;  %v3221_v24 = vsub.f32 %v88_v32, %v86_v3 }
  0x23   :  { %5759 = vst [vmem:[#allocation55_spill] sm:$0xff] %v3187_v28  ;;  %5760 = vst [vmem:[#allocation56_spill] sm:$0xff] %v3198_v51  ;;  %v90_v28 = vld [vmem:[%s5450_s2 + $0x60] sm:$0xff]  ;;  %v92_v34 = vld [vmem:[%s5450_s2 + $0x70] sm:$0xff]  ;;  %v3236_v38 = vsub.f32 %v89_v5, %v87_v53 }
  0x24   :  { %5761 = vst [vmem:[#allocation57_spill] sm:$0xff] %v3200_v47  ;;  %5762 = vst [vmem:[#allocation58_spill] sm:$0xff] %v3202_v21  ;;  %v94_v4 = vld [vmem:[%s5450_s2 + $0x80] sm:$0xff]  ;;  %v3238_v3 = vsub.f32 %v90_v28, %v88_v32  ;;  %v95_v35 = vld [vmem:[%s5450_s2 + $0x88] sm:$0xff]  ;;  %v3255_v32 = vsub.f32 %v92_v34, %v90_v28 }
  0x25   :  { %5763 = vst [vmem:[#allocation59_spill] sm:$0xff] %v3206_v29  ;;  %5764 = vst [vmem:[#allocation60_spill] sm:$0xff] %v3217_v23  ;;  %v93_v29 = vld [vmem:[%s5450_s2 + $0x78] sm:$0xff]  ;;  %v98_v36 = vld [vmem:[%s5450_s2 + $0xa0] sm:$0xff] }
  0x26   :  { %5765 = vst [vmem:[#allocation61_spill] sm:$0xff] %v3219_v52  ;;  %5766 = vst [vmem:[#allocation62_spill] sm:$0xff] %v3221_v24  ;;  %v3240_v24 = vsub.f32 %v91_v18, %v89_v5  ;;  %v97_v53 = vld [vmem:[%s5450_s2 + $0x98] sm:$0xff]  ;;  %v3257_v5 = vsub.f32 %v93_v29, %v91_v18  ;;  %v100_v28 = vld [vmem:[%s5450_s2 + $0xb0] sm:$0xff]  ;;  %v3274_v18 = vsub.f32 %v95_v35, %v93_v29 }
  0x27   :  { %5767 = vst [vmem:[#allocation63_spill] sm:$0xff] %v3225_v26  ;;  %5768 = vst [vmem:[#allocation64_spill] sm:$0xff] %v3236_v38  ;;  %v96_v26 = vld [vmem:[%s5450_s2 + $0x90] sm:$0xff]  ;;  %v101_v41 = vld [vmem:[%s5450_s2 + $0xb8] sm:$0xff] }
  0x28   :  { %5769 = vst [vmem:[#allocation65_spill] sm:$0xff] %v3238_v3  ;;  %5770 = vst [vmem:[#allocation66_spill] sm:$0xff] %v3240_v24  ;;  %v3259_v24 = vsub.f32 %v94_v4, %v92_v34  ;;  %v3276_v34 = vsub.f32 %v96_v26, %v94_v4  ;;  %v103_v29 = vld [vmem:[%s5450_s2 + $0xc8] sm:$0xff]  ;;  %v3293_v4 = vsub.f32 %v98_v36, %v96_v26  ;;  %v104_v42 = vld [vmem:[%s5450_s2 + $0xd0] sm:$0xff] }
  0x29   :  { %5771 = vst [vmem:[#allocation67_spill] sm:$0xff] %v3244_v31  ;;  %5772 = vst [vmem:[#allocation68_spill] sm:$0xff] %v3255_v32  ;;  %v99_v31 = vld [vmem:[%s5450_s2 + $0xa8] sm:$0xff]  ;;  %v106_v26 = vld [vmem:[%s5450_s2 + $0xe0] sm:$0xff] }
  0x2a   :  { %5773 = vst [vmem:[#allocation69_spill] sm:$0xff] %v3257_v5  ;;  %5774 = vst [vmem:[#allocation70_spill] sm:$0xff] %v3259_v24  ;;  %v3278_v24 = vsub.f32 %v97_v53, %v95_v35  ;;  %v3295_v35 = vsub.f32 %v99_v31, %v97_v53  ;;  %v3312_v53 = vsub.f32 %v101_v41, %v99_v31  ;;  %v107_v43 = vld [vmem:[%s5450_s2 + $0xe8] sm:$0xff] }
  0x2b   :  { %5775 = vst [vmem:[#allocation71_spill] sm:$0xff] %v3263_v40  ;;  %5776 = vst [vmem:[#allocation72_spill] sm:$0xff] %v3274_v18  ;;  %v102_v40 = vld [vmem:[%s5450_s2 + $0xc0] sm:$0xff]  ;;  %v3333_v31 = vadd.f32 %v3082_v13, %v2913_v49 }
  0x2c   :  { %5777 = vst [vmem:[#allocation73_spill] sm:$0xff] %v3276_v34  ;;  %5778 = vst [vmem:[#allocation74_spill] sm:$0xff] %v3278_v24  ;;  %v3297_v24 = vsub.f32 %v100_v28, %v98_v36  ;;  %v105_v34 = vld [vmem:[%s5450_s2 + $0xd8] sm:$0xff]  ;;  %v3314_v36 = vsub.f32 %v102_v40, %v100_v28  ;;  %v5861_v18 = vld [vmem:[#allocation2_spill] sm:$0xff] }
  0x2d   :  { %5779 = vst [vmem:[#allocation75_spill] sm:$0xff] %v3282_v46  ;;  %5780 = vst [vmem:[#allocation76_spill] sm:$0xff] %v3293_v4  ;;  %v3327_v4 = vsub.f32 %v105_v34, %v103_v29  ;;  %v109_v28 = vld [vmem:[%s5450_s2 + $0xf8] sm:$0xff]  ;;  %v3341_v61 = vsub.f32 %v107_v43, %v105_v34  ;;  %v3361_v34 = vadd.f32 %v3101_v39, %v2929_v56 }
  0x2e   :  { %5781 = vst [vmem:[#allocation77_spill] sm:$0xff] %v3295_v35  ;;  %5782 = vst [vmem:[#allocation78_spill] sm:$0xff] %v3297_v24  ;;  %v3316_v24 = vsub.f32 %v103_v29, %v101_v41  ;;  %v3325_v35 = vsub.f32 %v104_v42, %v102_v40  ;;  %v108_v41 = vld [vmem:[%s5450_s2 + $0xf0] sm:$0xff]  ;;  %v3345_v40 = vadd.f32 %v3084_v44, %v2915_v50 }
  0x2f   :  { %5783 = vst [vmem:[#allocation79_spill] sm:$0xff] %v3301_v59  ;;  %5784 = vst [vmem:[#allocation80_spill] sm:$0xff] %v3312_v53  ;;  %v3329_v59 = vsub.f32 %v106_v26, %v104_v42  ;;  %v230_v42 = vsub.f32 %v3031_v12, %v3179_v22  ;;  %v232_v29 = vsub.f32 %v3069_v1, %v3183_v2 }
  0x30   :  { %5785 = vst [vmem:[#allocation81_spill] sm:$0xff] %v3314_v36  ;;  %5786 = vst [vmem:[#allocation82_spill] sm:$0xff] %v3316_v24  ;;  %v3353_v13 = vsub.f32 %v109_v28, %v107_v43  ;;  %v3369_v12 = vadd.f32 %v3118_v45, %v2943_v62  ;;  %v3373_v43 = vadd.f32 %v3120_v58, %v2945_v63  ;;  %v5844_v24 = vld [vmem:[#allocation37_spill] sm:$0xff] }
  0x31   :  { %5787 = vst [vmem:[#allocation83_spill] sm:$0xff] %v3320_v10  ;;  %5788 = vst [vmem:[#allocation84_spill] sm:$0xff] %v3325_v35  ;;  %v3377_v1 = vadd.f32 %v3122_v33, %v2947_v0  ;;  %v231_v28 = vsub.f32 %v3050_v54, %v3181_v27  ;;  %v233_v2 = vsub.f32 %v3088_v37, %v3198_v51  ;;  %v5806_v51 = vld [vmem:[#allocation62_spill] sm:$0xff]  ;;  %v5843_v10 = vld [vmem:[#allocation36_spill] sm:$0xff] }
  0x32   :  { %5789 = vst [vmem:[#allocation85_spill] sm:$0xff] %v3327_v4  ;;  %5790 = vst [vmem:[#allocation86_spill] sm:$0xff] %v3329_v59  ;;  %v3351_v59 = vsub.f32 %v108_v41, %v106_v26  ;;  %v3357_v4 = vadd.f32 %v3099_v25, %v2927_v55  ;;  %v3381_v26 = vadd.f32 %v3137_v60, %v2959_v6  ;;  %v262_v60 = vand.u32 2147483647, %v232_v29  ;;  %v5807_v27 = vld [vmem:[#allocation50_spill] sm:$0xff]  ;;  %v5809_v29 = vld [vmem:[#allocation55_spill] sm:$0xff] }
  0x33   :  { %5791 = vst [vmem:[#allocation87_spill] sm:$0xff] %v3333_v31  ;;  %5792 = vst [vmem:[#allocation88_spill] sm:$0xff] %v3341_v61  ;;  %v3365_v61 = vadd.f32 %v3103_v11, %v2931_v57  ;;  %v3385_v41 = vadd.f32 %v3139_v30, %v2961_v8  ;;  %v3393_v22 = vadd.f32 %v3141_v19, %v2963_v9  ;;  %v261_v30 = vand.u32 2147483647, %v231_v28  ;;  %v5815_v58 = vld [vmem:[#allocation71_spill] sm:$0xff]  ;;  %v5824_v28 = vld [vmem:[#allocation14_spill] sm:$0xff] }
  0x34   :  { %5793 = vst [vmem:[#allocation89_spill] sm:$0xff] %v3345_v40  ;;  %5794 = vst [vmem:[#allocation90_spill] sm:$0xff] %v3351_v59  ;;  %v260_v59 = vand.u32 2147483647, %v230_v42  ;;  %v3399_v33 = vadd.f32 %v3156_v14, %v2975_v17  ;;  %v236_v54 = vsub.f32 %v3145_v20, %v3217_v23  ;;  %v237_v37 = vsub.f32 %v3160_v7, %v3219_v52  ;;  %v5810_v14 = vld [vmem:[#allocation66_spill] sm:$0xff]  ;;  %v5813_v20 = vld [vmem:[#allocation67_spill] sm:$0xff] }
  0x35   :  { %5795 = vst [vmem:[#allocation91_spill] sm:$0xff] %v3353_v13  ;;  %5796 = vst [vmem:[#allocation92_spill] sm:$0xff] %v3357_v4  ;;  %v234_v13 = vsub.f32 %v3107_v15, %v3200_v47  ;;  %v5808_v15 = vld [vmem:[#allocation51_spill] sm:$0xff]  ;;  %v240_v47 = vsub.f32 %v5809_v29, %v3238_v3  ;;  %v243_v23 = vsub.f32 %v5813_v20, %v3257_v5  ;;  %v263_v7 = vand.u32 2147483647, %v233_v2  ;;  %v5814_v52 = vld [vmem:[#allocation70_spill] sm:$0xff] }
  0x36   :  { %5797 = vst [vmem:[#allocation93_spill] sm:$0xff] %v3361_v34  ;;  %5798 = vst [vmem:[#allocation94_spill] sm:$0xff] %v3365_v61  ;;  %v239_v42 = vsub.f32 %v5808_v15, %v3236_v38  ;;  %v267_v2 = vand.u32 2147483647, %v237_v37  ;;  %v5835_v4 = vld [vmem:[#allocation28_spill] sm:$0xff]  ;;  %v5841_v61 = vld [vmem:[#allocation34_spill] sm:$0xff] }
  0x37   :  { %5799 = vst [vmem:[#allocation95_spill] sm:$0xff] %v3369_v12  ;;  %5800 = vst [vmem:[#allocation96_spill] sm:$0xff] %v3373_v43  ;;  %v264_v38 = vand.u32 2147483647, %v234_v13  ;;  %v3433_v13 = vand.u32 2147483647, %v243_v23 }
  0x38   :  { %5801 = vst [vmem:[#allocation97_spill] sm:$0xff] %v3377_v1  ;;  %5802 = vst [vmem:[#allocation98_spill] sm:$0xff] %v3381_v26  ;;  %v269_v5 = vand.u32 2147483647, %v239_v42  ;;  %v5847_v3 = vld [vmem:[#allocation40_spill] sm:$0xff]  ;;  %v5855_v35 = vld [vmem:[#allocation45_spill] sm:$0xff] }
  0x39   :  { %5803 = vst [vmem:[#allocation99_spill] sm:$0xff] %v3385_v41  ;;  %5804 = vst [vmem:[#allocation100_spill] sm:$0xff] %v3393_v22  ;;  %v235_v41 = vsub.f32 %v3126_v16, %v3202_v21  ;;  %v238_v22 = vsub.f32 %v5807_v27, %v5806_v51  ;;  %v5812_v16 = vld [vmem:[#allocation63_spill] sm:$0xff]  ;;  %v244_v27 = vsub.f32 %v5815_v58, %v5814_v52  ;;  %v270_v58 = vand.u32 2147483647, %v240_v47  ;;  %v5826_v47 = vld [vmem:[#allocation16_spill] sm:$0xff] }
  0x3a   :  { %5805 = vst [vmem:[#allocation101_spill] sm:$0xff] %v3399_v33  ;;  %v5811_v33 = vld [vmem:[#allocation59_spill] sm:$0xff]  ;;  %v242_v21 = vsub.f32 %v5812_v16, %v3255_v32  ;;  %v290_v51 = vadd.f32 %v262_v60, %v260_v59  ;;  %v266_v32 = vand.u32 2147483647, %v236_v54  ;;  %v304_v59 = vadd.f32 %v263_v7, %v261_v30  ;;  %5820 = vst [vmem:[#allocation50_spill] sm:$0xff] %v3433_v13  ;;  %v5828_v30 = vld [vmem:[#allocation17_spill] sm:$0xff] }
  0x3b   :  { %v241_v19 = vsub.f32 %v5811_v33, %v5810_v14  ;;  %v265_v16 = vand.u32 2147483647, %v235_v41  ;;  %v268_v20 = vand.u32 2147483647, %v238_v22  ;;  %v3435_v60 = vand.u32 2147483647, %v244_v27 }
  0x3c   :  { %v3431_v15 = vand.u32 2147483647, %v242_v21  ;;  %v291_v45 = vadd.f32 %v290_v51, %v264_v38  ;;  %v5822_v14 = vld [vmem:[#allocation13_spill] sm:$0xff]  ;;  %v5825_v22 = vld [vmem:[#allocation15_spill] sm:$0xff]  ;;  %v5829_v7 = vld [vmem:[#allocation18_spill] sm:$0xff] }
  0x3d   :  { %v3429_v52 = vand.u32 2147483647, %v241_v19  ;;  %5821 = vst [vmem:[#allocation51_spill] sm:$0xff] %v3435_v60  ;;  %v305_v38 = vadd.f32 %v304_v59, %v265_v16  ;;  %v5830_v21 = vld [vmem:[#allocation23_spill] sm:$0xff]  ;;  %v5831_v41 = vld [vmem:[#allocation24_spill] sm:$0xff]  ;;  %v5832_v51 = vld [vmem:[#allocation25_spill] sm:$0xff] }
  0x3e   :  { %v292_v54 = vadd.f32 %v291_v45, %v266_v32  ;;  %v355_v37 = vand.u32 2147483647, %v5830_v21  ;;  %v356_v23 = vand.u32 2147483647, %v5831_v41  ;;  %v357_v27 = vand.u32 2147483647, %v5832_v51 }
  0x3f   :  { %v306_v42 = vadd.f32 %v305_v38, %v267_v2  ;;  %v5833_v16 = vld [vmem:[#allocation26_spill] sm:$0xff]  ;;  %v5834_v59 = vld [vmem:[#allocation27_spill] sm:$0xff]  ;;  %v360_v33 = vand.u32 2147483647, %v5835_v4  ;;  %v5836_v32 = vld [vmem:[#allocation29_spill] sm:$0xff] }
  0x40   :  { %v293_v53 = vadd.f32 %v292_v54, %v268_v20  ;;  %v358_v34 = vand.u32 2147483647, %v5833_v16  ;;  %v359_v11 = vand.u32 2147483647, %v5834_v59  ;;  %v361_v36 = vand.u32 2147483647, %v5836_v32 }
  0x41   :  { %v5837_v19 = vld [vmem:[#allocation30_spill] sm:$0xff]  ;;  %v5838_v38 = vld [vmem:[#allocation31_spill] sm:$0xff]  ;;  %v5839_v51 = vld [vmem:[#allocation32_spill] sm:$0xff]  ;;  %v366_v59 = vand.u32 2147483647, %v5841_v61  ;;  %v307_v40 = vadd.f32 %v306_v42, %v269_v5 }
  0x42   :  { %v362_v2 = vand.u32 2147483647, %v5837_v19  ;;  %v363_v21 = vand.u32 2147483647, %v5838_v38  ;;  %v364_v20 = vand.u32 2147483647, %v5839_v51  ;;  %v294_v12 = vadd.f32 %v293_v53, %v270_v58 }
  0x43   :  { %v5840_v54 = vld [vmem:[#allocation33_spill] sm:$0xff]  ;;  %v5842_v4 = vld [vmem:[#allocation35_spill] sm:$0xff]  ;;  %v368_v45 = vand.u32 2147483647, %v5843_v10  ;;  %v369_v32 = vand.u32 2147483647, %v5844_v24 }
  0x44   :  { %v365_v16 = vand.u32 2147483647, %v5840_v54  ;;  %v367_v31 = vand.u32 2147483647, %v5842_v4  ;;  %v5845_v19 = vld [vmem:[#allocation38_spill] sm:$0xff]  ;;  %v5846_v38 = vld [vmem:[#allocation39_spill] sm:$0xff] }
  0x45   :  { %v370_v60 = vand.u32 2147483647, %v5845_v19  ;;  %v371_v29 = vand.u32 2147483647, %v5846_v38  ;;  %v372_v41 = vand.u32 2147483647, %v5847_v3  ;;  %v3497_v3 = vadd.f32 %v307_v40, %v3429_v52 }
  0x46   :  { %v5849_v54 = vld [vmem:[#allocation41_spill] sm:$0xff]  ;;  %v374_v61 = vand.u32 2147483647, %v3084_v44  ;;  %v375_v5 = vand.u32 2147483647, %v3099_v25  ;;  %v5851_v53 = vld [vmem:[#allocation42_spill] sm:$0xff]  ;;  %v3503_v25 = vadd.f32 %v294_v12, %v3431_v15 }
  0x47   :  { %v373_v43 = vand.u32 2147483647, %v5849_v54  ;;  %v376_v24 = vand.u32 2147483647, %v3101_v39  ;;  %v377_v58 = vand.u32 2147483647, %v5851_v53 }
  0x48   :  { %v5852_v4 = vld [vmem:[#allocation43_spill] sm:$0xff]  ;;  %5853 = vst [vmem:[#allocation55_spill] sm:$0xff] %v3497_v3  ;;  %v5854_v38 = vld [vmem:[#allocation44_spill] sm:$0xff]  ;;  %v380_v54 = vand.u32 2147483647, %v5855_v35  ;;  %v5856_v1 = vld [vmem:[#allocation46_spill] sm:$0xff] }
  0x49   :  { %v378_v19 = vand.u32 2147483647, %v5852_v4  ;;  %v379_v51 = vand.u32 2147483647, %v5854_v38  ;;  %v381_v44 = vand.u32 2147483647, %v5856_v1 }
  0x4a   :  { %5857 = vst [vmem:[#allocation59_spill] sm:$0xff] %v3503_v25  ;;  %v5858_v13 = vld [vmem:[#allocation47_spill] sm:$0xff]  ;;  %v5862_v4 = vand.u32 2147483647, %v5861_v18  ;;  %v5865_v38 = vld [vmem:[#allocation4_spill] sm:$0xff]  ;;  %v5867_v9 = vld [vmem:[#allocation5_spill] sm:$0xff] }
  0x4b   :  { %v382_v10 = vand.u32 2147483647, %v5858_v13  ;;  %v5863_v52 = vld [vmem:[#allocation3_spill] sm:$0xff]  ;;  %v5866_v17 = vand.u32 2147483647, %v5865_v38  ;;  %v5869_v12 = vld [vmem:[#allocation6_spill] sm:$0xff] }
  0x4c   :  { %v385_v46 = vadd.f32 %v355_v37, %v5862_v4  ;;  %v5864_v40 = vand.u32 2147483647, %v5863_v52  ;;  %v5868_v1 = vand.u32 2147483647, %v5867_v9  ;;  %v5870_v15 = vand.u32 2147483647, %v5869_v12 }
  0x4d   :  { %v387_v35 = vadd.f32 %v357_v27, %v5866_v17  ;;  %v5871_v13 = vld [vmem:[#allocation7_spill] sm:$0xff]  ;;  %v5873_v42 = vld [vmem:[#allocation8_spill] sm:$0xff]  ;;  %v5875_v18 = vld [vmem:[#allocation9_spill] sm:$0xff] }
  0x4e   :  { %v386_v3 = vadd.f32 %v356_v23, %v5864_v40  ;;  %v388_v8 = vadd.f32 %v358_v34, %v5868_v1  ;;  %v389_v25 = vadd.f32 %v359_v11, %v5870_v15  ;;  %v5872_v6 = vand.u32 2147483647, %v5871_v13  ;;  %v5877_v52 = vld [vmem:[#allocation10_spill] sm:$0xff]  ;;  %v5879_v38 = vld [vmem:[#allocation11_spill] sm:$0xff]  ;;  %v5881_v9 = vld [vmem:[#allocation12_spill] sm:$0xff] }
  0x4f   :  { %v5874_v53 = vand.u32 2147483647, %v5873_v42  ;;  %v5876_v37 = vand.u32 2147483647, %v5875_v18  ;;  %v5878_v23 = vand.u32 2147483647, %v5877_v52 }
  0x50   :  { %v390_v39 = vadd.f32 %v360_v33, %v5872_v6  ;;  %v5880_v17 = vand.u32 2147483647, %v5879_v38  ;;  %v5882_v34 = vand.u32 2147483647, %v5881_v9  ;;  %v5883_v11 = vand.u32 2147483647, %v5822_v14 }
  0x51   :  { %v391_v26 = vadd.f32 %v361_v36, %v5874_v53  ;;  %v392_v4 = vadd.f32 %v362_v2, %v5876_v37  ;;  %v393_v40 = vadd.f32 %v363_v21, %v5878_v23  ;;  %v5884_v6 = vand.u32 2147483647, %v5824_v28 }
  0x52   :  { %v394_v27 = vadd.f32 %v364_v20, %v5880_v17  ;;  %v395_v1 = vadd.f32 %v365_v16, %v5882_v34  ;;  %v396_v12 = vadd.f32 %v366_v59, %v5883_v11  ;;  %v5885_v36 = vand.u32 2147483647, %v5825_v22 }
  0x53   :  { %v397_v33 = vadd.f32 %v367_v31, %v5884_v6  ;;  %v5886_v2 = vand.u32 2147483647, %v5826_v47  ;;  %v5887_v21 = vand.u32 2147483647, %v5828_v30  ;;  %v5888_v20 = vand.u32 2147483647, %v5829_v7 }
  0x54   :  { %v398_v42 = vadd.f32 %v368_v45, %v5885_v36  ;;  %v5889_v16 = vand.u32 2147483647, %v2911_v48  ;;  %v5890_v14 = vand.u32 2147483647, %v2913_v49  ;;  %v5891_v31 = vand.u32 2147483647, %v2915_v50 }
  0x55   :  { %v399_v53 = vadd.f32 %v369_v32, %v5886_v2  ;;  %v400_v15 = vadd.f32 %v370_v60, %v5887_v21  ;;  %v401_v13 = vadd.f32 %v371_v29, %v5888_v20  ;;  %v5892_v22 = vand.u32 2147483647, %v2927_v55  ;;  %v5898_v50 = vld [vmem:[#allocation19_spill] sm:$0xff]  ;;  %v5900_v55 = vld [vmem:[#allocation20_spill] sm:$0xff] }
  0x56   :  { %v402_v18 = vadd.f32 %v372_v41, %v5889_v16  ;;  %v403_v59 = vadd.f32 %v373_v43, %v5890_v14  ;;  %v404_v28 = vadd.f32 %v374_v61, %v5891_v31  ;;  %v5893_v47 = vand.u32 2147483647, %v2929_v56  ;;  %v5902_v16 = vld [vmem:[#allocation21_spill] sm:$0xff]  ;;  %v5904_v14 = vld [vmem:[#allocation48_spill] sm:$0xff] }
  0x57   :  { %v405_v45 = vadd.f32 %v375_v5, %v5892_v22  ;;  %v5894_v60 = vand.u32 2147483647, %v2931_v57  ;;  %v5895_v29 = vand.u32 2147483647, %v2943_v62  ;;  %v5896_v48 = vand.u32 2147483647, %v2945_v63 }
  0x58   :  { %v406_v32 = vadd.f32 %v376_v24, %v5893_v47  ;;  %v5897_v49 = vand.u32 2147483647, %v2947_v0  ;;  %v5899_v61 = vand.u32 2147483647, %v5898_v50  ;;  %v5901_v5 = vand.u32 2147483647, %v5900_v55 }
  0x59   :  { %v407_v30 = vadd.f32 %v377_v58, %v5894_v60  ;;  %v408_v7 = vadd.f32 %v378_v19, %v5895_v29  ;;  %v409_v41 = vadd.f32 %v379_v51, %v5896_v48  ;;  %v415_v56 = vadd.f32 %v387_v35, %v385_v46 }
  0x5a   :  { %v410_v43 = vadd.f32 %v380_v54, %v5897_v49  ;;  %v411_v37 = vadd.f32 %v381_v44, %v5899_v61  ;;  %v412_v52 = vadd.f32 %v382_v10, %v5901_v5  ;;  %v416_v24 = vadd.f32 %v388_v8, %v386_v3 }
  0x5b   :  { %v417_v23 = vadd.f32 %v389_v25, %v387_v35  ;;  %v418_v57 = vadd.f32 %v390_v39, %v388_v8  ;;  %v419_v58 = vadd.f32 %v391_v26, %v389_v25  ;;  %v420_v38 = vadd.f32 %v392_v4, %v390_v39 }
  0x5c   :  { %v421_v62 = vadd.f32 %v393_v40, %v391_v26  ;;  %v422_v19 = vadd.f32 %v394_v27, %v392_v4  ;;  %v423_v17 = vadd.f32 %v395_v1, %v393_v40  ;;  %v424_v63 = vadd.f32 %v396_v12, %v394_v27 }
  0x5d   :  { %v427_v51 = vadd.f32 %v399_v53, %v397_v33  ;;  %v428_v9 = vadd.f32 %v400_v15, %v398_v42  ;;  %v425_v0 = vadd.f32 %v397_v33, %v395_v1  ;;  %v426_v54 = vadd.f32 %v398_v42, %v396_v12 }
  0x5e   :  { %v429_v34 = vadd.f32 %v401_v13, %v399_v53  ;;  %v430_v11 = vadd.f32 %v402_v18, %v400_v15  ;;  %v431_v44 = vadd.f32 %v403_v59, %v401_v13  ;;  %v432_v6 = vadd.f32 %v404_v28, %v402_v18 }
  0x5f   :  { %v433_v36 = vadd.f32 %v405_v45, %v403_v59  ;;  %v434_v10 = vadd.f32 %v406_v32, %v404_v28  ;;  %v435_v46 = vadd.f32 %v407_v30, %v405_v45  ;;  %v436_v3 = vadd.f32 %v408_v7, %v406_v32  ;;  %v5906_v28 = vld [vmem:[#allocation22_spill] sm:$0xff]  ;;  %v5908_v45 = vld [vmem:[#allocation49_spill] sm:$0xff] }
  0x60   :  { %v437_v35 = vadd.f32 %v409_v41, %v407_v30  ;;  %v438_v8 = vadd.f32 %v410_v43, %v408_v7  ;;  %v443_v25 = vadd.f32 %v419_v58, %v415_v56  ;;  %v444_v39 = vadd.f32 %v420_v38, %v416_v24 }
  0x61   :  { %v451_v26 = vadd.f32 %v427_v51, %v423_v17  ;;  %v452_v4 = vadd.f32 %v428_v9, %v424_v63  ;;  %v445_v40 = vadd.f32 %v421_v62, %v417_v23  ;;  %v446_v27 = vadd.f32 %v422_v19, %v418_v57 }
  0x62   :  { %v447_v2 = vadd.f32 %v423_v17, %v419_v58  ;;  %v448_v21 = vadd.f32 %v424_v63, %v420_v38  ;;  %v449_v1 = vadd.f32 %v425_v0, %v421_v62  ;;  %v450_v12 = vadd.f32 %v426_v54, %v422_v19 }
  0x63   :  { %v453_v33 = vadd.f32 %v429_v34, %v425_v0  ;;  %v454_v42 = vadd.f32 %v430_v11, %v426_v54  ;;  %v455_v53 = vadd.f32 %v431_v44, %v427_v51  ;;  %v456_v15 = vadd.f32 %v432_v6, %v428_v9  ;;  %v5910_v0 = vld [vmem:[#allocation75_spill] sm:$0xff]  ;;  %v5911_v54 = vld [vmem:[#allocation72_spill] sm:$0xff] }
  0x64   :  { %v457_v20 = vadd.f32 %v433_v36, %v429_v34  ;;  %v458_v13 = vadd.f32 %v434_v10, %v430_v11  ;;  %v5903_v18 = vand.u32 2147483647, %v5902_v16  ;;  %v5905_v59 = vand.u32 2147483647, %v5904_v14  ;;  %v5914_v11 = vld [vmem:[#allocation55_spill] sm:$0xff] }
  0x65   :  { %v5907_v22 = vand.u32 2147483647, %v5906_v28  ;;  %v5909_v47 = vand.u32 2147483647, %v5908_v45  ;;  %v463_v60 = vadd.f32 %v451_v26, %v443_v25  ;;  %v464_v30 = vadd.f32 %v452_v4, %v444_v39  ;;  %v5920_v16 = vld [vmem:[#allocation83_spill] sm:$0xff]  ;;  %v5923_v28 = vld [vmem:[#allocation88_spill] sm:$0xff] }
  0x66   :  { %v413_v31 = vadd.f32 %v5905_v59, %v5903_v18  ;;  %v459_v29 = vadd.f32 %v435_v46, %v431_v44  ;;  %v460_v7 = vadd.f32 %v436_v3, %v432_v6  ;;  %v461_v48 = vadd.f32 %v437_v35, %v433_v36 }
  0x67   :  { %v414_v32 = vadd.f32 %v5909_v47, %v5907_v22  ;;  %v462_v49 = vadd.f32 %v438_v8, %v434_v10  ;;  %v439_v50 = vadd.f32 %v411_v37, %v409_v41  ;;  %v440_v61 = vadd.f32 %v412_v52, %v410_v43  ;;  %v5913_v43 = vld [vmem:[#allocation50_spill] sm:$0xff]  ;;  %v5924_v22 = vld [vmem:[#allocation99_spill] sm:$0xff] }
  0x68   :  { %v465_v55 = vadd.f32 %v453_v33, %v445_v40  ;;  %v466_v5 = vadd.f32 %v454_v42, %v446_v27  ;;  %v467_v56 = vadd.f32 %v455_v53, %v447_v2  ;;  %v468_v24 = vadd.f32 %v456_v15, %v448_v21  ;;  %v5925_v47 = vld [vmem:[#allocation87_spill] sm:$0xff] }
  0x69   :  { %v469_v23 = vadd.f32 %v457_v20, %v449_v1  ;;  %v470_v57 = vadd.f32 %v458_v13, %v450_v12  ;;  %v441_v58 = vadd.f32 %v413_v31, %v411_v37  ;;  %v442_v38 = vadd.f32 %v414_v32, %v412_v52  ;;  %v5915_v52 = vld [vmem:[#allocation79_spill] sm:$0xff]  ;;  %v5926_v32 = vld [vmem:[#allocation76_spill] sm:$0xff] }
  0x6a   :  { %v475_v62 = vadd.f32 %v463_v60, %v431_v44  ;;  %v476_v19 = vadd.f32 %v464_v30, %v432_v6  ;;  %v471_v17 = vadd.f32 %v459_v29, %v451_v26  ;;  %v472_v63 = vadd.f32 %v460_v7, %v452_v4  ;;  %v5916_v44 = vld [vmem:[#allocation73_spill] sm:$0xff]  ;;  %v5918_v4 = vld [vmem:[#allocation51_spill] sm:$0xff] }
  0x6b   :  { %v473_v51 = vadd.f32 %v461_v48, %v453_v33  ;;  %v474_v9 = vadd.f32 %v462_v49, %v454_v42  ;;  %v5912_v34 = vsub.f32 %v5910_v0, %v5911_v54  ;;  %v309_v25 = vadd.f32 %v5914_v11, %v5913_v43  ;;  %v5919_v1 = vld [vmem:[#allocation59_spill] sm:$0xff]  ;;  %v5936_v0 = vld [vmem:[#allocation78_spill] sm:$0xff] }
  0x6c   :  { %v477_v39 = vadd.f32 %v465_v55, %v433_v36  ;;  %v478_v40 = vadd.f32 %v466_v5, %v434_v10  ;;  %v479_v27 = vadd.f32 %v467_v56, %v435_v46  ;;  %v480_v2 = vadd.f32 %v468_v24, %v436_v3  ;;  %v5921_v36 = vld [vmem:[#allocation74_spill] sm:$0xff]  ;;  %v5930_v24 = vld [vmem:[#allocation91_spill] sm:$0xff] }
  0x6d   :  { %v275_v41 = vand.u32 2147483647, %v5912_v34  ;;  %v481_v21 = vadd.f32 %v469_v23, %v437_v35  ;;  %v482_v37 = vadd.f32 %v470_v57, %v438_v8  ;;  %v5917_v6 = vsub.f32 %v5915_v52, %v5916_v44  ;;  %v5928_v55 = vld [vmem:[#allocation90_spill] sm:$0xff]  ;;  %v5938_v52 = vld [vmem:[#allocation93_spill] sm:$0xff] }
  0x6e   :  { %v296_v12 = vadd.f32 %v5919_v1, %v5918_v4  ;;  %v500_v33 = vrot.slane %v475_v62, 1  ;;  %v501_v42 = vrot.slane %v476_v19, 1  ;;  %v483_v53 = vadd.f32 %v471_v17, %v439_v50  ;;  %v5974_v56 = vld [vmem:[#allocation62_spill] sm:$0xff] }
  0x6f   :  { %v276_v26 = vand.u32 2147483647, %v5917_v6  ;;  %v484_v15 = vadd.f32 %v472_v63, %v440_v61  ;;  %v485_v20 = vadd.f32 %v473_v51, %v441_v58  ;;  %v486_v13 = vadd.f32 %v474_v9, %v442_v38  ;;  %v5932_v58 = vld [vmem:[#allocation89_spill] sm:$0xff]  ;;  %v5935_v9 = vld [vmem:[#allocation92_spill] sm:$0xff] }
  0x70   :  { %v5922_v10 = vsub.f32 %v5920_v16, %v5921_v36  ;;  %v310_v3 = vadd.f32 %v309_v25, %v275_v41  ;;  %v503_v35 = vrot.slane %v477_v39, 1  ;;  %v504_v8 = vrot.slane %v478_v40, 1  ;;  %v5933_v38 = vld [vmem:[#allocation77_spill] sm:$0xff]  ;;  %v5939_v6 = vld [vmem:[#allocation80_spill] sm:$0xff] }
  0x71   :  { %v506_v18 = vrot.slane %v479_v27, 1  ;;  %v507_v14 = vrot.slane %v480_v2, 1  ;;  %v509_v59 = vrot.slane %v481_v21, 1  ;;  %v510_v31 = vrot.slane %v482_v37, 1 }
  0x72   :  { %v277_v46 = vand.u32 2147483647, %v5922_v10  ;;  %v257_v45 = vsub.f32 %v5924_v22, %v5923_v28  ;;  %v5927_v60 = vsub.f32 %v5925_v47, %v5926_v32  ;;  %v297_v29 = vadd.f32 %v296_v12, %v276_v26  ;;  %v5942_v47 = vld [vmem:[#allocation94_spill] sm:$0xff] }
  0x73   :  { %v502_v7 = vsel %vm499_vm0, %v500_v33, %v501_v42  ;;  %v512_v48 = vrot.slane %v483_v53, 1  ;;  %v513_v49 = vrot.slane %v484_v15, 1  ;;  %v515_v50 = vrot.slane %v485_v20, 1 }
  0x74   :  { %v278_v30 = vand.u32 2147483647, %v5927_v60  ;;  %v516_v61 = vrot.slane %v486_v13, 1  ;;  %v5934_v17 = vsub.f32 %v5932_v58, %v5933_v38  ;;  %v505_v51 = vsel %vm499_vm0, %v503_v35, %v504_v8  ;;  %v5945_v60 = vld [vmem:[#allocation95_spill] sm:$0xff] }
  0x75   :  { %v5937_v34 = vsub.f32 %v5935_v9, %v5936_v0  ;;  %v311_v43 = vadd.f32 %v310_v3, %v277_v46  ;;  %v508_v11 = vsel %vm499_vm0, %v506_v18, %v507_v14  ;;  %v511_v25 = vsel %vm499_vm0, %v509_v59, %v510_v31 }
  0x76   :  { %v279_v63 = vand.u32 2147483647, %v5934_v17  ;;  %v5940_v26 = vsub.f32 %v5938_v52, %v5939_v6  ;;  %v298_v1 = vadd.f32 %v297_v29, %v278_v30  ;;  %v530_v12 = vadd.f32 %v502_v7, %v475_v62  ;;  %v5943_v62 = vld [vmem:[#allocation81_spill] sm:$0xff]  ;;  %v5946_v30 = vld [vmem:[#allocation82_spill] sm:$0xff] }
  0x77   :  { %v280_v41 = vand.u32 2147483647, %v5937_v34  ;;  %v3607_v33 = vadd.f32 %v501_v42, %v476_v19  ;;  %v514_v16 = vsel %vm499_vm0, %v512_v48, %v513_v49  ;;  %v517_v10 = vsel %vm499_vm0, %v515_v50, %v516_v61  ;;  %v5953_v34 = vld [vmem:[#allocation97_spill] sm:$0xff] }
  0x78   :  { %v281_v4 = vand.u32 2147483647, %v5940_v26  ;;  %v3611_v35 = vadd.f32 %v505_v51, %v477_v39  ;;  %v3613_v46 = vadd.f32 %v504_v8, %v478_v40  ;;  %v3615_v3 = vadd.f32 %v508_v11, %v479_v27  ;;  %v5949_v39 = vld [vmem:[#allocation96_spill] sm:$0xff] }
  0x79   :  { %v3617_v18 = vadd.f32 %v507_v14, %v480_v2  ;;  %v3619_v59 = vadd.f32 %v511_v25, %v481_v21  ;;  %v3621_v22 = vadd.f32 %v510_v31, %v482_v37  ;;  %v5944_v19 = vsub.f32 %v5942_v47, %v5943_v62  ;;  %v5950_v40 = vld [vmem:[#allocation84_spill] sm:$0xff] }
  0x7a   :  { %v5947_v29 = vsub.f32 %v5945_v60, %v5946_v30  ;;  %v5951_v8 = vsub.f32 %v5949_v39, %v5950_v40  ;;  %v312_v2 = vadd.f32 %v311_v43, %v279_v63  ;;  %v299_v14 = vadd.f32 %v298_v1, %v280_v41  ;;  %v5954_v41 = vld [vmem:[#allocation85_spill] sm:$0xff]  ;;  %v5964_v47 = vld [vmem:[#allocation52_spill] sm:$0xff] }
  0x7b   :  { %5941 = vst [vmem:[#allocation63_spill] sm:$0xff] %v3621_v22  ;;  %v282_v42 = vand.u32 2147483647, %v5944_v19  ;;  %v3636_v21 = vadd.f32 %v514_v16, %v483_v53  ;;  %v555_v37 = vrot.slane %v530_v12, 2  ;;  %v5560_v31 = vrot.slane %v3607_v33, 2 }
  0x7c   :  { %v3629_v7 = vand.u32 2147483647, %v5947_v29  ;;  %v3634_v27 = vand.u32 2147483647, %v5951_v8  ;;  %v3639_v48 = vadd.f32 %v513_v49, %v484_v15  ;;  %v3641_v50 = vadd.f32 %v517_v10, %v485_v20  ;;  %v5957_v15 = vld [vmem:[#allocation98_spill] sm:$0xff]  ;;  %v5965_v29 = vld [vmem:[#allocation53_spill] sm:$0xff] }
  0x7d   :  { %v558_v58 = vrot.slane %v3611_v35, 2  ;;  %v5559_v17 = vrot.slane %v3613_v46, 2  ;;  %v561_v51 = vrot.slane %v3615_v3, 2  ;;  %v5558_v9 = vrot.slane %v3617_v18, 2  ;;  %v5958_v20 = vld [vmem:[#allocation86_spill] sm:$0xff]  ;;  %v5979_v8 = vld [vmem:[#allocation69_spill] sm:$0xff] }
  0x7e   :  { %5948 = vst [vmem:[#allocation67_spill] sm:$0xff] %v3629_v7  ;;  %5952 = vst [vmem:[#allocation71_spill] sm:$0xff] %v3634_v27  ;;  %v564_v63 = vrot.slane %v3619_v59, 2  ;;  %v5557_v53 = vrot.slane %v3621_v22, 2  ;;  %v5955_v43 = vsub.f32 %v5953_v34, %v5954_v41  ;;  %v5959_v49 = vsub.f32 %v5957_v15, %v5958_v20 }
  0x7f   :  { %v3659_v52 = vand.u32 2147483647, %v257_v45  ;;  %v3661_v26 = vadd.f32 %v516_v61, %v486_v13  ;;  %v3663_v1 = vadd.f32 %v299_v14, %v282_v42  ;;  %v3665_v16 = vadd.f32 %v312_v2, %v281_v4  ;;  %v5966_v61 = vld [vmem:[#allocation54_spill] sm:$0xff]  ;;  %v5976_v2 = vld [vmem:[#allocation65_spill] sm:$0xff]  ;;  %v5978_v45 = vld [vmem:[#allocation68_spill] sm:$0xff] }
  0x80   :  { %v3652_v11 = vand.u32 2147483647, %v5955_v43  ;;  %v3657_v25 = vand.u32 2147483647, %v5959_v49  ;;  %v557_v10 = vsel %vm554_vm1, %v555_v37, %v5560_v31  ;;  %v652_v19 = vand.u32 2147483647, %v5964_v47 }
  0x81   :  { %5961 = vst [vmem:[#allocation15_spill] sm:$0xff] %v3659_v52  ;;  %5962 = vst [vmem:[#allocation16_spill] sm:$0xff] %v3663_v1  ;;  %v3674_v60 = vsel %vm554_vm1, %v558_v58, %v5559_v17  ;;  %v653_v13 = vand.u32 2147483647, %v5965_v29  ;;  %v654_v42 = vand.u32 2147483647, %v5966_v61  ;;  %v3682_v4 = vsel %vm554_vm1, %v561_v51, %v5558_v9 }
  0x82   :  { %5956 = vst [vmem:[#allocation13_spill] sm:$0xff] %v3652_v11  ;;  %5960 = vst [vmem:[#allocation14_spill] sm:$0xff] %v3657_v25  ;;  %v3687_v39 = vsel %vm554_vm1, %v564_v63, %v5557_v53  ;;  %v3692_v37 = vadd.f32 %v557_v10, %v530_v12  ;;  %v5969_v58 = vld [vmem:[#allocation56_spill] sm:$0xff]  ;;  %v5970_v43 = vld [vmem:[#allocation57_spill] sm:$0xff]  ;;  %v660_v53 = vand.u32 2147483647, %v5974_v56 }
  0x83   :  { %5963 = vst [vmem:[#allocation17_spill] sm:$0xff] %v3665_v16  ;;  %5967 = vst [vmem:[#allocation18_spill] sm:$0xff] %v3687_v39  ;;  %v655_v34 = vand.u32 2147483647, %v5969_v58  ;;  %v656_v15 = vand.u32 2147483647, %v5970_v43  ;;  %v682_v63 = vadd.f32 %v654_v42, %v652_v19 }
  0x84   :  { %5968 = vst [vmem:[#allocation23_spill] sm:$0xff] %v3692_v37  ;;  %v5971_v49 = vld [vmem:[#allocation58_spill] sm:$0xff]  ;;  %v5972_v47 = vld [vmem:[#allocation60_spill] sm:$0xff]  ;;  %v5973_v61 = vld [vmem:[#allocation61_spill] sm:$0xff]  ;;  %v662_v31 = vand.u32 2147483647, %v5976_v2 }
  0x85   :  { %v657_v51 = vand.u32 2147483647, %v5971_v49  ;;  %v658_v29 = vand.u32 2147483647, %v5972_v47  ;;  %v659_v57 = vand.u32 2147483647, %v5973_v61  ;;  %v683_v14 = vadd.f32 %v655_v34, %v653_v13 }
  0x86   :  { %v5975_v9 = vld [vmem:[#allocation64_spill] sm:$0xff]  ;;  %v5977_v12 = vld [vmem:[#allocation66_spill] sm:$0xff]  ;;  %v664_v58 = vand.u32 2147483647, %v5978_v45  ;;  %v665_v43 = vand.u32 2147483647, %v5979_v8  ;;  %v684_v52 = vadd.f32 %v656_v15, %v654_v42 }
  0x87   :  { %v661_v17 = vand.u32 2147483647, %v5975_v9  ;;  %v663_v10 = vand.u32 2147483647, %v5977_v12  ;;  %v5980_v49 = vld [vmem:[#allocation70_spill] sm:$0xff]  ;;  %v685_v61 = vadd.f32 %v657_v51, %v655_v34  ;;  %v686_v2 = vadd.f32 %v658_v29, %v656_v15 }
  0x88   :  { %v666_v25 = vand.u32 2147483647, %v5980_v49  ;;  %v667_v47 = vand.u32 2147483647, %v5911_v54  ;;  %v668_v19 = vand.u32 2147483647, %v5916_v44  ;;  %v687_v8 = vadd.f32 %v659_v57, %v657_v51 }
  0x89   :  { %v669_v56 = vand.u32 2147483647, %v5921_v36  ;;  %v670_v9 = vand.u32 2147483647, %v5926_v32  ;;  %v671_v13 = vand.u32 2147483647, %v5933_v38  ;;  %v688_v34 = vadd.f32 %v660_v53, %v658_v29 }
  0x8a   :  { %v672_v12 = vand.u32 2147483647, %v5936_v0  ;;  %v673_v45 = vand.u32 2147483647, %v5939_v6  ;;  %v674_v42 = vand.u32 2147483647, %v5943_v62  ;;  %v689_v15 = vadd.f32 %v661_v17, %v659_v57 }
  0x8b   :  { %v675_v49 = vand.u32 2147483647, %v5946_v30  ;;  %v676_v54 = vand.u32 2147483647, %v5950_v40  ;;  %v677_v44 = vand.u32 2147483647, %v5954_v41  ;;  %v690_v6 = vadd.f32 %v662_v31, %v660_v53 }
  0x8c   :  { %v678_v36 = vand.u32 2147483647, %v5958_v20  ;;  %v679_v32 = vand.u32 2147483647, %v5923_v28  ;;  %v680_v38 = vand.u32 2147483647, %v5928_v55  ;;  %v691_v11 = vadd.f32 %v663_v10, %v661_v17 }
  0x8d   :  { %v681_v0 = vand.u32 2147483647, %v5930_v24  ;;  %v692_v62 = vadd.f32 %v664_v58, %v662_v31  ;;  %v693_v51 = vadd.f32 %v665_v43, %v663_v10  ;;  %v694_v23 = vadd.f32 %v666_v25, %v664_v58 }
  0x8e   :  { %v695_v30 = vadd.f32 %v667_v47, %v665_v43  ;;  %v696_v1 = vadd.f32 %v668_v19, %v666_v25  ;;  %v697_v40 = vadd.f32 %v669_v56, %v667_v47  ;;  %v698_v27 = vadd.f32 %v670_v9, %v668_v19 }
  0x8f   :  { %v699_v41 = vadd.f32 %v671_v13, %v669_v56  ;;  %v700_v29 = vadd.f32 %v672_v12, %v670_v9  ;;  %v701_v16 = vadd.f32 %v673_v45, %v671_v13  ;;  %v702_v20 = vadd.f32 %v674_v42, %v672_v12 }
  0x90   :  { %v703_v7 = vadd.f32 %v675_v49, %v673_v45  ;;  %v704_v28 = vadd.f32 %v676_v54, %v674_v42  ;;  %v705_v5 = vadd.f32 %v677_v44, %v675_v49  ;;  %v706_v55 = vadd.f32 %v678_v36, %v676_v54 }
  0x91   :  { %v707_v57 = vadd.f32 %v679_v32, %v677_v44  ;;  %v708_v37 = vadd.f32 %v680_v38, %v678_v36  ;;  %v709_v24 = vadd.f32 %v681_v0, %v679_v32  ;;  %v710_v53 = vadd.f32 %v686_v2, %v682_v63 }
  0x92   :  { %v711_v17 = vadd.f32 %v687_v8, %v683_v14  ;;  %v712_v31 = vadd.f32 %v688_v34, %v684_v52  ;;  %v713_v10 = vadd.f32 %v689_v15, %v685_v61  ;;  %v714_v58 = vadd.f32 %v690_v6, %v686_v2 }
  0x93   :  { %v715_v43 = vadd.f32 %v691_v11, %v687_v8  ;;  %v716_v25 = vadd.f32 %v692_v62, %v688_v34  ;;  %v717_v47 = vadd.f32 %v693_v51, %v689_v15  ;;  %v718_v19 = vadd.f32 %v694_v23, %v690_v6 }
  0x94   :  { %v719_v56 = vadd.f32 %v695_v30, %v691_v11  ;;  %v720_v9 = vadd.f32 %v696_v1, %v692_v62  ;;  %v721_v13 = vadd.f32 %v697_v40, %v693_v51  ;;  %v722_v12 = vadd.f32 %v698_v27, %v694_v23 }
  0x95   :  { %v723_v45 = vadd.f32 %v699_v41, %v695_v30  ;;  %v724_v42 = vadd.f32 %v700_v29, %v696_v1  ;;  %v725_v49 = vadd.f32 %v701_v16, %v697_v40  ;;  %v726_v54 = vadd.f32 %v702_v20, %v698_v27 }
  0x96   :  { %v727_v44 = vadd.f32 %v703_v7, %v699_v41  ;;  %v728_v36 = vadd.f32 %v704_v28, %v700_v29  ;;  %v729_v32 = vadd.f32 %v705_v5, %v701_v16  ;;  %v730_v63 = vadd.f32 %v718_v19, %v710_v53 }
  0x97   :  { %v731_v14 = vadd.f32 %v719_v56, %v711_v17  ;;  %v732_v52 = vadd.f32 %v720_v9, %v712_v31  ;;  %v733_v61 = vadd.f32 %v721_v13, %v713_v10  ;;  %v734_v2 = vadd.f32 %v722_v12, %v714_v58 }
  0x98   :  { %v735_v8 = vadd.f32 %v723_v45, %v715_v43  ;;  %v736_v34 = vadd.f32 %v724_v42, %v716_v25  ;;  %v737_v38 = vadd.f32 %v725_v49, %v717_v47  ;;  %v738_v15 = vadd.f32 %v726_v54, %v718_v19 }
  0x99   :  { %v739_v11 = vadd.f32 %v727_v44, %v719_v56  ;;  %v740_v0 = vadd.f32 %v728_v36, %v720_v9  ;;  %v741_v6 = vadd.f32 %v729_v32, %v721_v13  ;;  %v742_v23 = vadd.f32 %v730_v63, %v698_v27 }
  0x9a   :  { %v743_v62 = vadd.f32 %v731_v14, %v699_v41  ;;  %v744_v1 = vadd.f32 %v732_v52, %v700_v29  ;;  %v745_v51 = vadd.f32 %v733_v61, %v701_v16  ;;  %v746_v30 = vadd.f32 %v734_v2, %v702_v20 }
  0x9b   :  { %v747_v40 = vadd.f32 %v735_v8, %v703_v7  ;;  %v748_v22 = vadd.f32 %v736_v34, %v704_v28  ;;  %v749_v39 = vadd.f32 %v737_v38, %v705_v5  ;;  %v750_v53 = vadd.f32 %v738_v15, %v706_v55 }
  0x9c   :  { %v751_v17 = vadd.f32 %v739_v11, %v707_v57  ;;  %v752_v31 = vadd.f32 %v740_v0, %v708_v37  ;;  %v753_v10 = vadd.f32 %v741_v6, %v709_v24  ;;  %v766_v58 = vrot.slane %v742_v23, 1 }
  0x9d   :  { %v767_v43 = vrot.slane %v743_v62, 1  ;;  %v769_v25 = vrot.slane %v744_v1, 1  ;;  %v770_v47 = vrot.slane %v745_v51, 1  ;;  %v772_v19 = vrot.slane %v746_v30, 1 }
  0x9e   :  { %v773_v56 = vrot.slane %v747_v40, 1  ;;  %v775_v9 = vrot.slane %v748_v22, 1  ;;  %v776_v41 = vrot.slane %v749_v39, 1  ;;  %v778_v29 = vrot.slane %v750_v53, 1 }
  0x9f   :  { %v768_v27 = vsel %vm499_vm0, %v766_v58, %v767_v43  ;;  %v779_v16 = vrot.slane %v751_v17, 1  ;;  %v771_v7 = vsel %vm499_vm0, %v769_v25, %v770_v47  ;;  %v781_v55 = vrot.slane %v752_v31, 1  ;;  %v5989_v58 = vld [vmem:[#allocation63_spill] sm:$0xff] }
  0xa0   :  { %v774_v5 = vsel %vm499_vm0, %v772_v19, %v773_v56  ;;  %v782_v20 = vrot.slane %v753_v10, 1  ;;  %v5981_v24 = vrot.slane %v3639_v48, 2  ;;  %v5982_v37 = vrot.slane %v3636_v21, 2 }
  0xa1   :  { %v5983_v57 = vrot.slane %v3607_v33, 2  ;;  %v777_v12 = vsel %vm499_vm0, %v775_v9, %v776_v41  ;;  %v780_v45 = vsel %vm499_vm0, %v778_v29, %v779_v16  ;;  %v3738_v42 = vadd.f32 %v3674_v60, %v3611_v35 }
  0xa2   :  { %v569_v28 = vsel %vm554_vm1, %v5982_v37, %v5981_v24  ;;  %v783_v49 = vsel %vm499_vm0, %v781_v55, %v782_v20  ;;  %v796_v54 = vadd.f32 %v768_v27, %v742_v23  ;;  %v3741_v44 = vadd.f32 %v767_v43, %v743_v62 }
  0xa3   :  { %v3732_v13 = vadd.f32 %v5983_v57, %v3607_v33  ;;  %v798_v36 = vadd.f32 %v771_v7, %v744_v1  ;;  %v3743_v32 = vadd.f32 %v770_v47, %v745_v51  ;;  %v800_v63 = vadd.f32 %v774_v5, %v746_v30  ;;  %v5993_v7 = vld [vmem:[#allocation23_spill] sm:$0xff] }
  0xa4   :  { %v3745_v14 = vadd.f32 %v773_v56, %v747_v40  ;;  %v802_v52 = vadd.f32 %v777_v12, %v748_v22  ;;  %v3747_v61 = vadd.f32 %v776_v41, %v749_v39  ;;  %v804_v2 = vadd.f32 %v780_v45, %v750_v53 }
  0xa5   :  { %v3749_v8 = vadd.f32 %v779_v16, %v751_v17  ;;  %v5984_v35 = vrot.slane %v3661_v26, 2  ;;  %v5985_v60 = vrot.slane %v3641_v50, 2  ;;  %v5986_v38 = vrot.slane %v3613_v46, 2 }
  0xa6   :  { %v806_v11 = vadd.f32 %v783_v49, %v752_v31  ;;  %v3761_v0 = vadd.f32 %v782_v20, %v753_v10  ;;  %v3765_v22 = vadd.f32 %v3682_v4, %v3615_v3  ;;  %v5987_v39 = vrot.slane %v3617_v18, 2  ;;  %v5988_v4 = vld [vmem:[#allocation18_spill] sm:$0xff] }
  0xa7   :  { %v572_v34 = vsel %vm554_vm1, %v5985_v60, %v5984_v35  ;;  %v3759_v15 = vadd.f32 %v5986_v38, %v3613_v46  ;;  %v820_v23 = vrot.slane %v796_v54, 2  ;;  %v821_v62 = vrot.slane %v3741_v44, 2 }
  0xa8   :  { %v3770_v6 = vadd.f32 %v5987_v39, %v3617_v18  ;;  %v823_v1 = vrot.slane %v798_v36, 2  ;;  %v824_v51 = vrot.slane %v3743_v32, 2  ;;  %v826_v30 = vrot.slane %v800_v63, 2 }
  0xa9   :  { %v827_v40 = vrot.slane %v3745_v14, 2  ;;  %v829_v53 = vrot.slane %v802_v52, 2  ;;  %v830_v17 = vrot.slane %v3747_v61, 2  ;;  %v832_v31 = vrot.slane %v804_v2, 2 }
  0xaa   :  { %v833_v3 = vrot.slane %v3749_v8, 2  ;;  %v3779_v10 = vadd.f32 %v5988_v4, %v3619_v59  ;;  %v5990_v43 = vrot.slane %v5989_v58, 2  ;;  %v835_v47 = vrot.slane %v806_v11, 2 }
  0xab   :  { %v836_v19 = vrot.slane %v3761_v0, 2  ;;  %v3788_v56 = vadd.f32 %v569_v28, %v3636_v21  ;;  %v5991_v9 = vmov %v5981_v24  ;;  %v3794_v41 = vadd.f32 %v572_v34, %v3641_v50 }
  0xac   :  { %v3784_v25 = vadd.f32 %v5990_v43, %v5989_v58  ;;  %v594_v27 = vadd.f32 %v5991_v9, %v3639_v48  ;;  %v822_v59 = vsel %vm554_vm1, %v820_v23, %v821_v62  ;;  %v5992_v29 = vmov %v5984_v35  ;;  %v5995_v9 = vld [vmem:[#allocation90_spill] sm:$0xff] }
  0xad   :  { %v596_v16 = vadd.f32 %v5992_v29, %v3661_v26  ;;  %v610_v5 = vrot.slane %v5993_v7, 4  ;;  %v825_v55 = vsel %vm554_vm1, %v823_v1, %v824_v51  ;;  %v828_v21 = vsel %vm554_vm1, %v826_v30, %v827_v40 }
  0xae   :  { %v611_v20 = vrot.slane %v3732_v13, 4  ;;  %v613_v24 = vrot.slane %v3738_v42, 4  ;;  %v831_v37 = vsel %vm554_vm1, %v829_v53, %v830_v17  ;;  %v834_v50 = vsel %vm554_vm1, %v832_v31, %v833_v3 }
  0xaf   :  { %v614_v28 = vrot.slane %v3759_v15, 4  ;;  %v837_v57 = vsel %vm554_vm1, %v835_v47, %v836_v19  ;;  %v850_v12 = vadd.f32 %v822_v59, %v796_v54  ;;  %v851_v45 = vadd.f32 %v821_v62, %v3741_v44 }
  0xb0   :  { %v852_v49 = vadd.f32 %v825_v55, %v798_v36  ;;  %v853_v35 = vadd.f32 %v824_v51, %v3743_v32  ;;  %v854_v60 = vadd.f32 %v828_v21, %v800_v63  ;;  %v855_v13 = vadd.f32 %v827_v40, %v3745_v14  ;;  %v5999_v55 = vld [vmem:[#allocation17_spill] sm:$0xff] }
  0xb1   :  { %v856_v34 = vadd.f32 %v831_v37, %v802_v52  ;;  %v857_v38 = vadd.f32 %v830_v17, %v3747_v61  ;;  %v858_v39 = vadd.f32 %v834_v50, %v804_v2  ;;  %v859_v23 = vadd.f32 %v833_v3, %v3749_v8 }
  0xb2   :  { %v616_v1 = vrot.slane %v3765_v22, 4  ;;  %v617_v15 = vrot.slane %v3770_v6, 4  ;;  %v860_v30 = vadd.f32 %v837_v57, %v806_v11  ;;  %v861_v54 = vadd.f32 %v836_v19, %v3761_v0  ;;  %v5994_v19 = vld [vmem:[#allocation100_spill] sm:$0xff]  ;;  %v6000_v57 = vld [vmem:[#allocation71_spill] sm:$0xff] }
  0xb3   :  { %v619_v36 = vrot.slane %v3779_v10, 4  ;;  %v620_v62 = vrot.slane %v3784_v25, 4  ;;  %v874_v63 = vrot.slane %v850_v12, 4  ;;  %v875_v51 = vrot.slane %v851_v45, 4  ;;  %v5998_v25 = vld [vmem:[#allocation67_spill] sm:$0xff]  ;;  %v6001_v45 = vld [vmem:[#allocation16_spill] sm:$0xff] }
  0xb4   :  { %v877_v40 = vrot.slane %v852_v49, 4  ;;  %v878_v52 = vrot.slane %v853_v35, 4  ;;  %v880_v53 = vrot.slane %v854_v60, 4  ;;  %v881_v17 = vrot.slane %v855_v13, 4 }
  0xb5   :  { %v883_v2 = vrot.slane %v856_v34, 4  ;;  %v884_v31 = vrot.slane %v857_v38, 4  ;;  %v886_v3 = vrot.slane %v858_v39, 4  ;;  %v887_v4 = vrot.slane %v859_v23, 4 }
  0xb6   :  { %v622_v43 = vrot.slane %v3788_v56, 4  ;;  %v623_v6 = vrot.slane %v594_v27, 4  ;;  %v889_v11 = vrot.slane %v860_v30, 4  ;;  %v890_v47 = vrot.slane %v861_v54, 4 }
  0xb7   :  { %v5996_v59 = vsub.f32 %v5994_v19, %v5995_v9  ;;  %v314_v21 = vadd.f32 %v5999_v55, %v5998_v25  ;;  %v625_v37 = vrot.slane %v3794_v41, 4  ;;  %v626_v50 = vrot.slane %v596_v16, 4 }
  0xb8   :  { %v301_v35 = vadd.f32 %v6001_v45, %v6000_v57  ;;  %v612_v13 = vsel %vm609_vm2, %v610_v5, %v611_v20  ;;  %v876_v27 = vsel %vm609_vm2, %v874_v63, %v875_v51  ;;  %v879_v38 = vsel %vm609_vm2, %v877_v40, %v878_v52  ;;  %v6003_v40 = vld [vmem:[#allocation91_spill] sm:$0xff] }
  0xb9   :  { %v3823_v29 = vand.u32 2147483647, %v5996_v59  ;;  %v615_v23 = vsel %vm609_vm2, %v613_v24, %v614_v28  ;;  %v882_v54 = vsel %vm609_vm2, %v880_v53, %v881_v17  ;;  %v885_v19 = vsel %vm609_vm2, %v883_v2, %v884_v31  ;;  %v6002_v28 = vld [vmem:[#allocation101_spill] sm:$0xff] }
  0xba   :  { %v888_v9 = vsel %vm609_vm2, %v886_v3, %v887_v4  ;;  %v618_v59 = vsel %vm609_vm2, %v616_v1, %v617_v15  ;;  %v621_v16 = vsel %vm609_vm2, %v619_v36, %v620_v62  ;;  %v624_v25 = vsel %vm609_vm2, %v622_v43, %v623_v6  ;;  %v6006_v36 = vld [vmem:[#allocation13_spill] sm:$0xff]  ;;  %v6007_v4 = vld [vmem:[#allocation14_spill] sm:$0xff] }
  0xbb   :  { %5997 = vst [vmem:[#allocation24_spill] sm:$0xff] %v3823_v29  ;;  %v891_v5 = vsel %vm609_vm2, %v889_v11, %v890_v47  ;;  %v627_v20 = vsel %vm609_vm2, %v625_v37, %v626_v50  ;;  %v634_v63 = vadd.f32 %v612_v13, %v5993_v7  ;;  %v898_v51 = vadd.f32 %v876_v27, %v850_v12  ;;  %v3894_v47 = vld [vmem:[%s5448_s0 + $0x10] sm:$0xff]  ;;  %v3934_v27 = vld [vmem:[%s5448_s0 + $0x28] sm:$0xff] }
  0xbc   :  { %v899_v24 = vadd.f32 %v879_v38, %v852_v49  ;;  %v6004_v52 = vsub.f32 %v6002_v28, %v6003_v40  ;;  %v900_v17 = vadd.f32 %v882_v54, %v854_v60  ;;  %v901_v1 = vadd.f32 %v885_v19, %v856_v34  ;;  %v3981_v40 = vld [vmem:[%s5448_s0 + $0x60] sm:$0xff]  ;;  %v2703_v54 = vld [vmem:[%s5448_s0 + $0xd8] sm:$0xff] }
  0xbd   :  { %v902_v15 = vadd.f32 %v888_v9, %v858_v39  ;;  %v315_v62 = vadd.f32 %v314_v21, %v6006_v36  ;;  %v635_v2 = vadd.f32 %v615_v23, %v3738_v42  ;;  %v636_v31 = vadd.f32 %v618_v59, %v3765_v22  ;;  %v3863_v42 = vld [vmem:[%s5448_s0] sm:$0xff]  ;;  %v3940_v23 = vld [vmem:[%s5448_s0 + $0x30] sm:$0xff]  ;;  %v3951_v9 = vld [vmem:[%s5448_s0 + $0x38] sm:$0xff] }
  0xbe   :  { %v3846_v53 = vand.u32 2147483647, %v6004_v52  ;;  %v903_v3 = vadd.f32 %v891_v5, %v860_v30  ;;  %v3852_v7 = vadd.f32 %v301_v35, %v6007_v4  ;;  %v637_v12 = vadd.f32 %v621_v16, %v3779_v10  ;;  %v3957_v16 = vld [vmem:[%s5448_s0 + $0x40] sm:$0xff]  ;;  %v3963_v5 = vld [vmem:[%s5448_s0 + $0x48] sm:$0xff] }
  0xbf   :  { %v638_v49 = vadd.f32 %v624_v25, %v3788_v56  ;;  %v639_v43 = vadd.f32 %v627_v20, %v3794_v41  ;;  %v640_v60 = vadd.f32 %v634_v63, %v3607_v33  ;;  %v904_v34 = vadd.f32 %v898_v51, %v3741_v44  ;;  %v3872_v33 = vld [vmem:[%s5448_s0 + $0x8] sm:$0xff]  ;;  %v3969_v63 = vld [vmem:[%s5448_s0 + $0x50] sm:$0xff] }
  0xc0   :  { %6005 = vst [vmem:[#allocation25_spill] sm:$0xff] %v3846_v53  ;;  %6008 = vst [vmem:[#allocation26_spill] sm:$0xff] %v3852_v7  ;;  %v905_v39 = vadd.f32 %v899_v24, %v3743_v32  ;;  %v5567_v22 = vrot.slane %v3863_v42, 7  ;;  %v906_v30 = vadd.f32 %v900_v17, %v3745_v14  ;;  %v907_v10 = vadd.f32 %v901_v1, %v3747_v61  ;;  %v6009_v32 = vld [vmem:[#allocation15_spill] sm:$0xff]  ;;  %v3975_v24 = vld [vmem:[%s5448_s0 + $0x58] sm:$0xff] }
  0xc1   :  { %v908_v56 = vadd.f32 %v902_v15, %v3749_v8  ;;  %v950_v44 = vrot.slane %v3872_v33, 7  ;;  %v3876_v41 = vadd.f32 %v315_v62, %v6009_v32  ;;  %v3879_v6 = vadd.f32 %v635_v2, %v3613_v46  ;;  %v3900_v46 = vld [vmem:[%s5448_s0 + $0x18] sm:$0xff]  ;;  %6023 = vst [vmem:[#allocation40_spill] sm:$0xff] %v3975_v24  ;;  %v3987_v17 = vld [vmem:[%s5448_s0 + $0x68] sm:$0xff]  ;;  %v3993_v15 = vld [vmem:[%s5448_s0 + $0x70] sm:$0xff] }
  0xc2   :  { %v3882_v11 = vadd.f32 %v636_v31, %v3617_v18  ;;  %v909_v14 = vadd.f32 %v903_v3, %v3761_v0  ;;  %v3886_v61 = vadd.f32 %v637_v12, %v5989_v58  ;;  %v3889_v8 = vadd.f32 %v638_v49, %v3639_v48  ;;  %6024 = vst [vmem:[#allocation41_spill] sm:$0xff] %v3987_v17  ;;  %v3999_v62 = vld [vmem:[%s5448_s0 + $0x78] sm:$0xff]  ;;  %v2692_v31 = vld [vmem:[%s5448_s0 + $0x80] sm:$0xff]  ;;  %v2693_v4 = vld [vmem:[%s5448_s0 + $0x88] sm:$0xff] }
  0xc3   :  { %6010 = vst [vmem:[#allocation27_spill] sm:$0xff] %v3876_v41  ;;  %6011 = vst [vmem:[#allocation28_spill] sm:$0xff] %v3879_v6  ;;  %v5566_v55 = vrot.slane %v3894_v47, 7  ;;  %v953_v18 = vrot.slane %v3900_v46, 7  ;;  %v3904_v0 = vadd.f32 %v639_v43, %v3661_v26  ;;  %v3906_v58 = vmul.f32 0.01, %v640_v60 }
  0xc4   :  { %6012 = vst [vmem:[#allocation29_spill] sm:$0xff] %v3882_v11  ;;  %6013 = vst [vmem:[#allocation30_spill] sm:$0xff] %v3886_v61  ;;  %v3908_v48 = vmul.f32 0.01, %v904_v34  ;;  %v3910_v21 = vmul.f32 0.01, %v905_v39  ;;  %v3921_v45 = vsel %vm948_vm3, %v5567_v22, %v950_v44 }
  0xc5   :  { %6014 = vst [vmem:[#allocation31_spill] sm:$0xff] %v3889_v8  ;;  %6015 = vst [vmem:[#allocation32_spill] sm:$0xff] %v3904_v0  ;;  %v3912_v37 = vmul.f32 0.01, %v906_v30  ;;  %v3914_v50 = vmul.f32 0.01, %v907_v10  ;;  %v3946_v19 = vsel %vm948_vm3, %v5566_v55, %v953_v18 }
  0xc6   :  { %6016 = vst [vmem:[#allocation33_spill] sm:$0xff] %v3906_v58  ;;  %6017 = vst [vmem:[#allocation34_spill] sm:$0xff] %v3908_v48  ;;  %v3916_v57 = vmul.f32 0.01, %v908_v56  ;;  %v3923_v35 = vmul.f32 0.01, %v909_v14 }
  0xc7   :  { %6018 = vst [vmem:[#allocation35_spill] sm:$0xff] %v3910_v21  ;;  %6019 = vst [vmem:[#allocation36_spill] sm:$0xff] %v3912_v37  ;;  %v3928_v26 = vld [vmem:[%s5448_s0 + $0x20] sm:$0xff]  ;;  %v956_v38 = vrot.slane %v3934_v27, 7  ;;  %v959_v59 = vrot.slane %v3951_v9, 7  ;;  %v962_v20 = vrot.slane %v3963_v5, 7 }
  0xc8   :  { %6020 = vst [vmem:[#allocation37_spill] sm:$0xff] %v3914_v50  ;;  %6021 = vst [vmem:[#allocation38_spill] sm:$0xff] %v3916_v57  ;;  %v965_v28 = vrot.slane %v3975_v24, 7  ;;  %v968_v1 = vrot.slane %v3987_v17, 7  ;;  %v971_v2 = vrot.slane %v3999_v62, 7  ;;  %v973_v3 = vrot.slane %v2692_v31, 7 }
  0xc9   :  { %6022 = vst [vmem:[#allocation39_spill] sm:$0xff] %v3923_v35  ;;  %6025 = vst [vmem:[#allocation42_spill] sm:$0xff] %v3999_v62  ;;  %v974_v12 = vrot.slane %v2693_v4, 7  ;;  %v2694_v49 = vld [vmem:[%s5448_s0 + $0x90] sm:$0xff]  ;;  %v2695_v60 = vld [vmem:[%s5448_s0 + $0x98] sm:$0xff]  ;;  %v989_v13 = vrot.slane %v2703_v54, 7 }
  0xca   :  { %v976_v43 = vrot.slane %v2694_v49, 7  ;;  %v977_v34 = vrot.slane %v2695_v60, 7  ;;  %v2696_v39 = vld [vmem:[%s5448_s0 + $0xa0] sm:$0xff]  ;;  %v2697_v10 = vld [vmem:[%s5448_s0 + $0xa8] sm:$0xff]  ;;  %v2698_v44 = vld [vmem:[%s5448_s0 + $0xb0] sm:$0xff]  ;;  %v6026_v41 = vrot.slane %v3928_v26, 7 }
  0xcb   :  { %v979_v30 = vrot.slane %v2696_v39, 7  ;;  %v980_v56 = vrot.slane %v2697_v10, 7  ;;  %v982_v32 = vrot.slane %v2698_v44, 7  ;;  %v2699_v14 = vld [vmem:[%s5448_s0 + $0xb8] sm:$0xff]  ;;  %v2700_v55 = vld [vmem:[%s5448_s0 + $0xc0] sm:$0xff]  ;;  %v2701_v36 = vld [vmem:[%s5448_s0 + $0xc8] sm:$0xff]  ;;  %v975_v62 = vsel %vm948_vm3, %v973_v3, %v974_v12 }
  0xcc   :  { %v983_v18 = vrot.slane %v2699_v14, 7  ;;  %v985_v22 = vrot.slane %v2700_v55, 7  ;;  %v986_v52 = vrot.slane %v2701_v36, 7  ;;  %v2702_v51 = vld [vmem:[%s5448_s0 + $0xd0] sm:$0xff]  ;;  %v2704_v58 = vld [vmem:[%s5448_s0 + $0xe0] sm:$0xff]  ;;  %v2705_v8 = vld [vmem:[%s5448_s0 + $0xe8] sm:$0xff]  ;;  %v957_v53 = vsel %vm948_vm3, %v6026_v41, %v956_v38 }
  0xcd   :  { %v988_v25 = vrot.slane %v2702_v51, 7  ;;  %v991_v0 = vrot.slane %v2704_v58, 7  ;;  %v992_v61 = vrot.slane %v2705_v8, 7  ;;  %v6027_v7 = vrot.slane %v3940_v23, 7  ;;  %v2706_v11 = vld [vmem:[%s5448_s0 + $0xf0] sm:$0xff]  ;;  %v2707_v35 = vld [vmem:[%s5448_s0 + $0xf8] sm:$0xff] }
  0xce   :  { %v994_v6 = vrot.slane %v2706_v11, 7  ;;  %v995_v57 = vrot.slane %v2707_v35, 7  ;;  %v6028_v50 = vrot.slane %v3957_v16, 7  ;;  %v6029_v41 = vrot.slane %v3969_v63, 7 }
  0xcf   :  { %v960_v29 = vsel %vm948_vm3, %v6027_v7, %v959_v59  ;;  %v6030_v7 = vrot.slane %v3981_v40, 7  ;;  %v6031_v21 = vrot.slane %v3993_v15, 7  ;;  %v978_v17 = vsel %vm948_vm3, %v976_v43, %v977_v34 }
  0xd0   :  { %v963_v37 = vsel %vm948_vm3, %v6028_v50, %v962_v20  ;;  %v966_v38 = vsel %vm948_vm3, %v6029_v41, %v965_v28  ;;  %v981_v24 = vsel %vm948_vm3, %v979_v30, %v980_v56  ;;  %v984_v50 = vsel %vm948_vm3, %v982_v32, %v983_v18 }
  0xd1   :  { %v969_v59 = vsel %vm948_vm3, %v6030_v7, %v968_v1  ;;  %v972_v48 = vsel %vm948_vm3, %v6031_v21, %v971_v2  ;;  %v987_v20 = vsel %vm948_vm3, %v985_v22, %v986_v52  ;;  %v990_v28 = vsel %vm948_vm3, %v988_v25, %v989_v13 }
  0xd2   :  { %v993_v41 = vsel %vm948_vm3, %v991_v0, %v992_v61  ;;  %v6032_v1 = vrot.slane %v3863_v42, 7  ;;  %v996_v21 = vsel %vm948_vm3, %v994_v6, %v995_v57  ;;  %v4083_v2 = vsub.f32 %v3872_v33, %v3921_v45 }
  0xd3   :  { %v6035_v12 = vrot.slane %v3894_v47, 7  ;;  %v4092_v13 = vsub.f32 %v3900_v46, %v3946_v19  ;;  %v6038_v61 = vrot.slane %v3928_v26, 7  ;;  %v4100_v57 = vsub.f32 %v3934_v27, %v957_v53  ;;  %v6049_v27 = vld [vmem:[#allocation40_spill] sm:$0xff] }
  0xd4   :  { %v4078_v7 = vsub.f32 %v3863_v42, %v6032_v1  ;;  %6034 = vst [vmem:[#allocation44_spill] sm:$0xff] %v4083_v2  ;;  %v6041_v33 = vrot.slane %v3940_v23, 7  ;;  %v6044_v52 = vrot.slane %v3957_v16, 7  ;;  %v4116_v19 = vsub.f32 %v3963_v5, %v963_v37  ;;  %v6057_v5 = vld [vmem:[#allocation42_spill] sm:$0xff] }
  0xd5   :  { %v4088_v34 = vsub.f32 %v3894_v47, %v6035_v12  ;;  %6037 = vst [vmem:[#allocation46_spill] sm:$0xff] %v4092_v13  ;;  %v4097_v42 = vsub.f32 %v3928_v26, %v6038_v61  ;;  %6040 = vst [vmem:[#allocation2_spill] sm:$0xff] %v4100_v57  ;;  %v4108_v47 = vsub.f32 %v3951_v9, %v960_v29  ;;  %v6047_v26 = vrot.slane %v3969_v63, 7  ;;  %v6053_v9 = vld [vmem:[#allocation41_spill] sm:$0xff] }
  0xd6   :  { %6033 = vst [vmem:[#allocation43_spill] sm:$0xff] %v4078_v7  ;;  %v4105_v45 = vsub.f32 %v3940_v23, %v6041_v33  ;;  %v4113_v46 = vsub.f32 %v3957_v16, %v6044_v52  ;;  %6046 = vst [vmem:[#allocation6_spill] sm:$0xff] %v4116_v19  ;;  %v4124_v56 = vsub.f32 %v6049_v27, %v966_v38  ;;  %v6051_v23 = vrot.slane %v3981_v40, 7  ;;  %v2725_v27 = vld [vmem:[%s5449_s1 + $0x88] sm:$0xff]  ;;  %v2739_v57 = vld [vmem:[%s5449_s1 + $0xf8] sm:$0xff] }
  0xd7   :  { %6036 = vst [vmem:[#allocation45_spill] sm:$0xff] %v4088_v34  ;;  %6039 = vst [vmem:[#allocation47_spill] sm:$0xff] %v4097_v42  ;;  %v4121_v53 = vsub.f32 %v3969_v63, %v6047_v26  ;;  %v4132_v18 = vsub.f32 %v6053_v9, %v969_v59  ;;  %v6055_v16 = vrot.slane %v3993_v15, 7  ;;  %v4140_v1 = vsub.f32 %v6057_v5, %v972_v48  ;;  %v4259_v26 = vld [vmem:[%s5449_s1 + $0x60] sm:$0xff]  ;;  %v2726_v5 = vld [vmem:[%s5449_s1 + $0x90] sm:$0xff] }
  0xd8   :  { %6042 = vst [vmem:[#allocation3_spill] sm:$0xff] %v4105_v45  ;;  %6043 = vst [vmem:[#allocation4_spill] sm:$0xff] %v4108_v47  ;;  %v4129_v29 = vsub.f32 %v3981_v40, %v6051_v23  ;;  %v4142_v63 = vsub.f32 %v2692_v31, %v973_v3  ;;  %v4144_v38 = vsub.f32 %v2693_v4, %v975_v62  ;;  %v4163_v62 = vld [vmem:[%s5449_s1 + $0x8] sm:$0xff]  ;;  %v2738_v47 = vld [vmem:[%s5449_s1 + $0xf0] sm:$0xff]  ;;  %v1139_v42 = vrot.slane %v2739_v57, 7 }
  0xd9   :  { %6045 = vst [vmem:[#allocation5_spill] sm:$0xff] %v4113_v46  ;;  %6048 = vst [vmem:[#allocation7_spill] sm:$0xff] %v4121_v53  ;;  %v4137_v37 = vsub.f32 %v3993_v15, %v6055_v16  ;;  %v4146_v12 = vsub.f32 %v2694_v49, %v976_v43  ;;  %v4148_v61 = vsub.f32 %v2695_v60, %v978_v17  ;;  %v4157_v15 = vld [vmem:[%s5449_s1] sm:$0xff]  ;;  %v1094_v31 = vrot.slane %v4163_v62, 7  ;;  %v4179_v49 = vld [vmem:[%s5449_s1 + $0x18] sm:$0xff] }
  0xda   :  { %6050 = vst [vmem:[#allocation8_spill] sm:$0xff] %v4124_v56  ;;  %6052 = vst [vmem:[#allocation9_spill] sm:$0xff] %v4129_v29  ;;  %v4150_v40 = vsub.f32 %v2696_v39, %v979_v30  ;;  %v4152_v59 = vsub.f32 %v2697_v10, %v981_v24  ;;  %v5572_v48 = vrot.slane %v4157_v15, 7  ;;  %v4166_v17 = vsub.f32 %v2698_v44, %v982_v32  ;;  %v4173_v24 = vld [vmem:[%s5449_s1 + $0x10] sm:$0xff]  ;;  %v4265_v23 = vld [vmem:[%s5449_s1 + $0x68] sm:$0xff] }
  0xdb   :  { %6054 = vst [vmem:[#allocation10_spill] sm:$0xff] %v4132_v18  ;;  %6056 = vst [vmem:[#allocation11_spill] sm:$0xff] %v4137_v37  ;;  %v4168_v3 = vsub.f32 %v2699_v14, %v984_v50  ;;  %v5571_v4 = vrot.slane %v4173_v24, 7  ;;  %v1097_v43 = vrot.slane %v4179_v49, 7  ;;  %v4182_v60 = vsub.f32 %v2700_v55, %v985_v22  ;;  %v4206_v22 = vld [vmem:[%s5449_s1 + $0x20] sm:$0xff]  ;;  %v4271_v16 = vld [vmem:[%s5449_s1 + $0x70] sm:$0xff] }
  0xdc   :  { %6058 = vst [vmem:[#allocation12_spill] sm:$0xff] %v4140_v1  ;;  %6059 = vst [vmem:[#allocation19_spill] sm:$0xff] %v4142_v63  ;;  %v4184_v39 = vsub.f32 %v2701_v36, %v987_v20  ;;  %v4186_v30 = vsub.f32 %v2702_v51, %v988_v25  ;;  %v4188_v10 = vsub.f32 %v2703_v54, %v990_v28  ;;  %v4235_v25 = vld [vmem:[%s5449_s1 + $0x40] sm:$0xff]  ;;  %v4241_v36 = vld [vmem:[%s5449_s1 + $0x48] sm:$0xff]  ;;  %v1112_v9 = vrot.slane %v4265_v23, 7 }
  0xdd   :  { %6060 = vst [vmem:[#allocation20_spill] sm:$0xff] %v4144_v38  ;;  %6061 = vst [vmem:[#allocation21_spill] sm:$0xff] %v4146_v12  ;;  %v4190_v44 = vsub.f32 %v2704_v58, %v991_v0  ;;  %v4192_v32 = vsub.f32 %v2705_v8, %v993_v41  ;;  %v4194_v14 = vsub.f32 %v2706_v11, %v994_v6  ;;  %v4212_v8 = vld [vmem:[%s5449_s1 + $0x28] sm:$0xff]  ;;  %v4218_v11 = vld [vmem:[%s5449_s1 + $0x30] sm:$0xff]  ;;  %v1106_v20 = vrot.slane %v4241_v36, 7 }
  0xde   :  { %6062 = vst [vmem:[#allocation48_spill] sm:$0xff] %v4148_v61  ;;  %6063 = vst [vmem:[#allocation22_spill] sm:$0xff] %v4150_v40  ;;  %v4196_v50 = vsub.f32 %v2707_v35, %v996_v21  ;;  %v4201_v33 = vsel %vm948_vm3, %v5572_v48, %v1094_v31  ;;  %v1100_v6 = vrot.slane %v4212_v8, 7  ;;  %v4224_v58 = vsel %vm948_vm3, %v5571_v4, %v1097_v43  ;;  %v4229_v35 = vld [vmem:[%s5449_s1 + $0x38] sm:$0xff]  ;;  %v4247_v28 = vld [vmem:[%s5449_s1 + $0x50] sm:$0xff] }
  0xdf   :  { %6064 = vst [vmem:[#allocation49_spill] sm:$0xff] %v4152_v59  ;;  %6065 = vst [vmem:[#allocation75_spill] sm:$0xff] %v4166_v17  ;;  %v1103_v54 = vrot.slane %v4229_v35, 7  ;;  %v4253_v21 = vld [vmem:[%s5449_s1 + $0x58] sm:$0xff]  ;;  %v2724_v4 = vld [vmem:[%s5449_s1 + $0x80] sm:$0xff]  ;;  %v1118_v41 = vrot.slane %v2725_v27, 7 }
  0xe0   :  { %6066 = vst [vmem:[#allocation72_spill] sm:$0xff] %v4168_v3  ;;  %6067 = vst [vmem:[#allocation50_spill] sm:$0xff] %v4182_v60  ;;  %v1109_v52 = vrot.slane %v4253_v21, 7  ;;  %v4277_v31 = vld [vmem:[%s5449_s1 + $0x78] sm:$0xff]  ;;  %v1117_v48 = vrot.slane %v2724_v4, 7  ;;  %v1120_v51 = vrot.slane %v2726_v5, 7 }
  0xe1   :  { %6068 = vst [vmem:[#allocation55_spill] sm:$0xff] %v4184_v39  ;;  %6069 = vst [vmem:[#allocation79_spill] sm:$0xff] %v4186_v30  ;;  %v1115_v43 = vrot.slane %v4277_v31, 7  ;;  %v2727_v0 = vld [vmem:[%s5449_s1 + $0x98] sm:$0xff]  ;;  %v2732_v3 = vld [vmem:[%s5449_s1 + $0xc0] sm:$0xff]  ;;  %v6078_v56 = vrot.slane %v4206_v22, 7 }
  0xe2   :  { %6070 = vst [vmem:[#allocation73_spill] sm:$0xff] %v4188_v10  ;;  %6071 = vst [vmem:[#allocation51_spill] sm:$0xff] %v4190_v44  ;;  %v1121_v55 = vrot.slane %v2727_v0, 7  ;;  %v2730_v10 = vld [vmem:[%s5449_s1 + $0xb0] sm:$0xff]  ;;  %v2731_v39 = vld [vmem:[%s5449_s1 + $0xb8] sm:$0xff]  ;;  %v1129_v17 = vrot.slane %v2732_v3, 7 }
  0xe3   :  { %6072 = vst [vmem:[#allocation59_spill] sm:$0xff] %v4192_v32  ;;  %6073 = vst [vmem:[#allocation83_spill] sm:$0xff] %v4194_v14  ;;  %v2729_v32 = vld [vmem:[%s5449_s1 + $0xa8] sm:$0xff]  ;;  %v1126_v30 = vrot.slane %v2730_v10, 7  ;;  %v1127_v60 = vrot.slane %v2731_v39, 7  ;;  %v2734_v61 = vld [vmem:[%s5449_s1 + $0xd0] sm:$0xff]  ;;  %v1101_v53 = vsel %vm948_vm3, %v6078_v56, %v1100_v6 }
  0xe4   :  { %6074 = vst [vmem:[#allocation74_spill] sm:$0xff] %v4196_v50  ;;  %6075 = vst [vmem:[#allocation88_spill] sm:$0xff] %v4253_v21  ;;  %v2728_v50 = vld [vmem:[%s5449_s1 + $0xa0] sm:$0xff]  ;;  %v1124_v44 = vrot.slane %v2729_v32, 7  ;;  %v2733_v59 = vld [vmem:[%s5449_s1 + $0xc8] sm:$0xff]  ;;  %v1132_v12 = vrot.slane %v2734_v61, 7 }
  0xe5   :  { %6076 = vst [vmem:[#allocation99_spill] sm:$0xff] %v4265_v23  ;;  %6077 = vst [vmem:[#allocation87_spill] sm:$0xff] %v4277_v31  ;;  %v1123_v14 = vrot.slane %v2728_v50, 7  ;;  %v1130_v40 = vrot.slane %v2733_v59, 7  ;;  %v2735_v38 = vld [vmem:[%s5449_s1 + $0xd8] sm:$0xff]  ;;  %v2736_v1 = vld [vmem:[%s5449_s1 + $0xe0] sm:$0xff]  ;;  %v1119_v31 = vsel %vm948_vm3, %v1117_v48, %v1118_v41  ;;  %v1122_v23 = vsel %vm948_vm3, %v1120_v51, %v1121_v55 }
  0xe6   :  { %v1133_v63 = vrot.slane %v2735_v38, 7  ;;  %v1135_v37 = vrot.slane %v2736_v1, 7  ;;  %v2737_v18 = vld [vmem:[%s5449_s1 + $0xe8] sm:$0xff]  ;;  %v6079_v19 = vrot.slane %v4218_v11, 7  ;;  %v1138_v45 = vrot.slane %v2738_v47, 7 }
  0xe7   :  { %v1136_v29 = vrot.slane %v2737_v18, 7  ;;  %v6080_v13 = vrot.slane %v4235_v25, 7  ;;  %v6081_v56 = vrot.slane %v4247_v28, 7  ;;  %v6083_v2 = vrot.slane %v4271_v16, 7 }
  0xe8   :  { %v1104_v46 = vsel %vm948_vm3, %v6079_v19, %v1103_v54  ;;  %v6082_v19 = vrot.slane %v4259_v26, 7  ;;  %v1125_v21 = vsel %vm948_vm3, %v1123_v14, %v1124_v44  ;;  %v4361_v55 = vsub.f32 %v4163_v62, %v4201_v33 }
  0xe9   :  { %v1107_v34 = vsel %vm948_vm3, %v6080_v13, %v1106_v20  ;;  %v1110_v6 = vsel %vm948_vm3, %v6081_v56, %v1109_v52  ;;  %v1116_v7 = vsel %vm948_vm3, %v6083_v2, %v1115_v43  ;;  %v1128_v13 = vsel %vm948_vm3, %v1126_v30, %v1127_v60 }
  0xea   :  { %v1113_v54 = vsel %vm948_vm3, %v6082_v19, %v1112_v9  ;;  %v1131_v20 = vsel %vm948_vm3, %v1129_v17, %v1130_v40  ;;  %v1134_v52 = vsel %vm948_vm3, %v1132_v12, %v1133_v63  ;;  %v1137_v56 = vsel %vm948_vm3, %v1135_v37, %v1136_v29  ;;  %6086 = vst [vmem:[#allocation89_spill] sm:$0xff] %v4361_v55 }
  0xeb   :  { %v6084_v9 = vrot.slane %v4157_v15, 7  ;;  %v1140_v2 = vsel %vm948_vm3, %v1138_v45, %v1139_v42  ;;  %v6087_v44 = vrot.slane %v4173_v24, 7  ;;  %v4370_v63 = vsub.f32 %v4179_v49, %v4224_v58 }
  0xec   :  { %v6090_v29 = vrot.slane %v4206_v22, 7  ;;  %v4378_v42 = vsub.f32 %v4212_v8, %v1101_v53  ;;  %v6096_v33 = vrot.slane %v4235_v25, 7  ;;  %v4394_v58 = vsub.f32 %v4241_v36, %v1107_v34  ;;  %v6101_v8 = vld [vmem:[#allocation88_spill] sm:$0xff]  ;;  %v6109_v36 = vld [vmem:[#allocation87_spill] sm:$0xff] }
  0xed   :  { %v4356_v19 = vsub.f32 %v4157_v15, %v6084_v9  ;;  %v4366_v60 = vsub.f32 %v4173_v24, %v6087_v44  ;;  %6089 = vst [vmem:[#allocation92_spill] sm:$0xff] %v4370_v63  ;;  %v6093_v15 = vrot.slane %v4218_v11, 7  ;;  %v4386_v24 = vsub.f32 %v4229_v35, %v1104_v46  ;;  %v6105_v35 = vld [vmem:[#allocation99_spill] sm:$0xff] }
  0xee   :  { %v4375_v40 = vsub.f32 %v4206_v22, %v6090_v29  ;;  %6092 = vst [vmem:[#allocation93_spill] sm:$0xff] %v4378_v42  ;;  %v4391_v49 = vsub.f32 %v4235_v25, %v6096_v33  ;;  %6098 = vst [vmem:[#allocation95_spill] sm:$0xff] %v4394_v58  ;;  %v6099_v22 = vrot.slane %v4247_v28, 7  ;;  %v4402_v41 = vsub.f32 %v6101_v8, %v1110_v6  ;;  %v2757_v8 = vld [vmem:[%s5450_s2 + $0x88] sm:$0xff] }
  0xef   :  { %6085 = vst [vmem:[#allocation76_spill] sm:$0xff] %v4356_v19  ;;  %6088 = vst [vmem:[#allocation77_spill] sm:$0xff] %v4366_v60  ;;  %v4383_v62 = vsub.f32 %v4218_v11, %v6093_v15  ;;  %v6103_v11 = vrot.slane %v4259_v26, 7  ;;  %v4410_v43 = vsub.f32 %v6105_v35, %v1113_v54  ;;  %v6107_v25 = vrot.slane %v4271_v16, 7 }
  0xf0   :  { %6091 = vst [vmem:[#allocation78_spill] sm:$0xff] %v4375_v40  ;;  %6095 = vst [vmem:[#allocation94_spill] sm:$0xff] %v4386_v24  ;;  %v4399_v53 = vsub.f32 %v4247_v28, %v6099_v22  ;;  %v4418_v9 = vsub.f32 %v6109_v36, %v1116_v7  ;;  %v4420_v28 = vsub.f32 %v2724_v4, %v1117_v48  ;;  %v4441_v48 = vld [vmem:[%s5450_s2 + $0x8] sm:$0xff]  ;;  %v4537_v22 = vld [vmem:[%s5450_s2 + $0x60] sm:$0xff] }
  0xf1   :  { %6094 = vst [vmem:[#allocation80_spill] sm:$0xff] %v4383_v62  ;;  %6097 = vst [vmem:[#allocation81_spill] sm:$0xff] %v4391_v49  ;;  %v4407_v46 = vsub.f32 %v4259_v26, %v6103_v11  ;;  %v4415_v34 = vsub.f32 %v4271_v16, %v6107_v25  ;;  %v4422_v6 = vsub.f32 %v2725_v27, %v1119_v31  ;;  %v4435_v16 = vld [vmem:[%s5450_s2] sm:$0xff]  ;;  %v1238_v4 = vrot.slane %v4441_v48, 7  ;;  %v4543_v11 = vld [vmem:[%s5450_s2 + $0x68] sm:$0xff] }
  0xf2   :  { %6100 = vst [vmem:[#allocation82_spill] sm:$0xff] %v4399_v53  ;;  %6102 = vst [vmem:[#allocation96_spill] sm:$0xff] %v4402_v41  ;;  %v4424_v44 = vsub.f32 %v2726_v5, %v1120_v51  ;;  %v4426_v29 = vsub.f32 %v2727_v0, %v1122_v23  ;;  %v4428_v26 = vsub.f32 %v2728_v50, %v1123_v14  ;;  %v5609_v7 = vrot.slane %v4435_v16, 7  ;;  %v4457_v51 = vld [vmem:[%s5450_s2 + $0x18] sm:$0xff]  ;;  %v4549_v25 = vld [vmem:[%s5450_s2 + $0x70] sm:$0xff] }
  0xf3   :  { %6104 = vst [vmem:[#allocation84_spill] sm:$0xff] %v4407_v46  ;;  %6106 = vst [vmem:[#allocation97_spill] sm:$0xff] %v4410_v43  ;;  %v4430_v54 = vsub.f32 %v2729_v32, %v1125_v21  ;;  %v4444_v0 = vsub.f32 %v2730_v10, %v1126_v30  ;;  %v4446_v14 = vsub.f32 %v2731_v39, %v1128_v13  ;;  %v4451_v32 = vld [vmem:[%s5450_s2 + $0x10] sm:$0xff]  ;;  %v1241_v21 = vrot.slane %v4457_v51, 7  ;;  %v4603_v43 = vld [vmem:[%s5450_s2 + $0xe8] sm:$0xff] }
  0xf4   :  { %6108 = vst [vmem:[#allocation85_spill] sm:$0xff] %v4415_v34  ;;  %6110 = vst [vmem:[#allocation98_spill] sm:$0xff] %v4418_v9  ;;  %v5608_v50 = vrot.slane %v4451_v32, 7  ;;  %v4460_v27 = vsub.f32 %v2732_v3, %v1129_v17  ;;  %v4462_v30 = vsub.f32 %v2733_v59, %v1131_v20  ;;  %v4464_v39 = vsub.f32 %v2734_v61, %v1132_v12  ;;  %v4484_v12 = vld [vmem:[%s5450_s2 + $0x20] sm:$0xff]  ;;  %v4519_v3 = vld [vmem:[%s5450_s2 + $0x48] sm:$0xff] }
  0xf5   :  { %6111 = vst [vmem:[#allocation86_spill] sm:$0xff] %v4420_v28  ;;  %6112 = vst [vmem:[#allocation52_spill] sm:$0xff] %v4422_v6  ;;  %v4466_v10 = vsub.f32 %v2735_v38, %v1134_v52  ;;  %v4468_v23 = vsub.f32 %v2736_v1, %v1135_v37  ;;  %v4470_v5 = vsub.f32 %v2737_v18, %v1137_v56  ;;  %v4490_v18 = vld [vmem:[%s5450_s2 + $0x28] sm:$0xff]  ;;  %v4507_v1 = vld [vmem:[%s5450_s2 + $0x38] sm:$0xff]  ;;  %v1250_v20 = vrot.slane %v4519_v3, 7 }
  0xf6   :  { %6113 = vst [vmem:[#allocation53_spill] sm:$0xff] %v4424_v44  ;;  %6114 = vst [vmem:[#allocation54_spill] sm:$0xff] %v4426_v29  ;;  %v4472_v31 = vsub.f32 %v2738_v47, %v1138_v45  ;;  %v4474_v13 = vsub.f32 %v2739_v57, %v1140_v2  ;;  %v4479_v15 = vsel %vm948_vm3, %v5609_v7, %v1238_v4  ;;  %v1244_v57 = vrot.slane %v4490_v18, 7  ;;  %v4496_v45 = vld [vmem:[%s5450_s2 + $0x30] sm:$0xff]  ;;  %v4513_v59 = vld [vmem:[%s5450_s2 + $0x40] sm:$0xff] }
  0xf7   :  { %6115 = vst [vmem:[#allocation56_spill] sm:$0xff] %v4428_v26  ;;  %6116 = vst [vmem:[#allocation57_spill] sm:$0xff] %v4430_v54  ;;  %v4502_v37 = vsel %vm948_vm3, %v5608_v50, %v1241_v21  ;;  %v1247_v61 = vrot.slane %v4507_v1, 7  ;;  %v4525_v52 = vld [vmem:[%s5450_s2 + $0x50] sm:$0xff]  ;;  %v4531_v2 = vld [vmem:[%s5450_s2 + $0x58] sm:$0xff]  ;;  %v1256_v35 = vrot.slane %v4543_v11, 7 }
  0xf8   :  { %6117 = vst [vmem:[#allocation58_spill] sm:$0xff] %v4444_v0  ;;  %6118 = vst [vmem:[#allocation60_spill] sm:$0xff] %v4446_v14  ;;  %v1253_v33 = vrot.slane %v4531_v2, 7  ;;  %v4555_v4 = vld [vmem:[%s5450_s2 + $0x78] sm:$0xff]  ;;  %v2756_v50 = vld [vmem:[%s5450_s2 + $0x80] sm:$0xff]  ;;  %v1262_v56 = vrot.slane %v2757_v8, 7 }
  0xf9   :  { %6119 = vst [vmem:[#allocation61_spill] sm:$0xff] %v4460_v27  ;;  %6120 = vst [vmem:[#allocation62_spill] sm:$0xff] %v4462_v30  ;;  %v1259_v21 = vrot.slane %v4555_v4, 7  ;;  %v1261_v7 = vrot.slane %v2756_v50, 7  ;;  %v2758_v36 = vld [vmem:[%s5450_s2 + $0x90] sm:$0xff]  ;;  %v2759_v47 = vld [vmem:[%s5450_s2 + $0x98] sm:$0xff] }
  0xfa   :  { %6121 = vst [vmem:[#allocation64_spill] sm:$0xff] %v4464_v39  ;;  %6122 = vst [vmem:[#allocation65_spill] sm:$0xff] %v4466_v10  ;;  %v1264_v17 = vrot.slane %v2758_v36, 7  ;;  %v1265_v38 = vrot.slane %v2759_v47, 7  ;;  %v2762_v10 = vld [vmem:[%s5450_s2 + $0xb0] sm:$0xff]  ;;  %v2763_v30 = vld [vmem:[%s5450_s2 + $0xb8] sm:$0xff] }
  0xfb   :  { %6123 = vst [vmem:[#allocation66_spill] sm:$0xff] %v4468_v23  ;;  %6124 = vst [vmem:[#allocation68_spill] sm:$0xff] %v4470_v5  ;;  %v2761_v5 = vld [vmem:[%s5450_s2 + $0xa8] sm:$0xff]  ;;  %v1270_v39 = vrot.slane %v2762_v10, 7  ;;  %v1271_v27 = vrot.slane %v2763_v30, 7  ;;  %v2764_v14 = vld [vmem:[%s5450_s2 + $0xc0] sm:$0xff]  ;;  %v1263_v60 = vsel %vm948_vm3, %v1261_v7, %v1262_v56 }
  0xfc   :  { %6125 = vst [vmem:[#allocation69_spill] sm:$0xff] %v4472_v31  ;;  %6126 = vst [vmem:[#allocation70_spill] sm:$0xff] %v4474_v13  ;;  %v2760_v13 = vld [vmem:[%s5450_s2 + $0xa0] sm:$0xff]  ;;  %v1268_v23 = vrot.slane %v2761_v5, 7  ;;  %v1273_v0 = vrot.slane %v2764_v14, 7  ;;  %v2765_v54 = vld [vmem:[%s5450_s2 + $0xc8] sm:$0xff] }
  0xfd   :  { %v1267_v31 = vrot.slane %v2760_v13, 7  ;;  %v1274_v26 = vrot.slane %v2765_v54, 7  ;;  %v2766_v29 = vld [vmem:[%s5450_s2 + $0xd0] sm:$0xff]  ;;  %v2767_v6 = vld [vmem:[%s5450_s2 + $0xd8] sm:$0xff]  ;;  %v4597_v9 = vld [vmem:[%s5450_s2 + $0xe0] sm:$0xff]  ;;  %6128 = vst [vmem:[#allocation63_spill] sm:$0xff] %v4603_v43 }
  0xfe   :  { %v1276_v44 = vrot.slane %v2766_v29, 7  ;;  %v1277_v28 = vrot.slane %v2767_v6, 7  ;;  %6127 = vst [vmem:[#allocation18_spill] sm:$0xff] %v4597_v9  ;;  %v1280_v46 = vrot.slane %v4603_v43, 7  ;;  %v6129_v41 = vrot.slane %v4484_v12, 7  ;;  %v4615_v24 = vld [vmem:[%s5450_s2 + $0xf0] sm:$0xff] }
  0xff   :  { %v6130_v58 = vrot.slane %v4496_v45, 7  ;;  %6131 = vst [vmem:[#allocation23_spill] sm:$0xff] %v4615_v24  ;;  %v4621_v62 = vld [vmem:[%s5450_s2 + $0xf8] sm:$0xff]  ;;  %v6135_v42 = vrot.slane %v4537_v22, 7  ;;  %v6136_v34 = vrot.slane %v4549_v25, 7  ;;  %v1269_v55 = vsel %vm948_vm3, %v1267_v31, %v1268_v23 }
 0x100   :  { %v1245_v53 = vsel %vm948_vm3, %v6129_v41, %v1244_v57  ;;  %6132 = vst [vmem:[#allocation100_spill] sm:$0xff] %v4621_v62  ;;  %v1283_v43 = vrot.slane %v4621_v62, 7  ;;  %v6133_v41 = vrot.slane %v4513_v59, 7  ;;  %v1266_v62 = vsel %vm948_vm3, %v1264_v17, %v1265_v38 }
 0x101   :  { %v1248_v49 = vsel %vm948_vm3, %v6130_v58, %v1247_v61  ;;  %v6134_v58 = vrot.slane %v4525_v52, 7  ;;  %v1257_v40 = vsel %vm948_vm3, %v6135_v42, %v1256_v35  ;;  %v1260_v63 = vsel %vm948_vm3, %v6136_v34, %v1259_v21 }
 0x102   :  { %v1251_v57 = vsel %vm948_vm3, %v6133_v41, %v1250_v20  ;;  %v1272_v20 = vsel %vm948_vm3, %v1270_v39, %v1271_v27  ;;  %v1275_v41 = vsel %vm948_vm3, %v1273_v0, %v1274_v26  ;;  %v6139_v35 = vrot.slane %v4435_v16, 7 }
 0x103   :  { %v1254_v61 = vsel %vm948_vm3, %v6134_v58, %v1253_v33  ;;  %v1278_v33 = vsel %vm948_vm3, %v1276_v44, %v1277_v28  ;;  %v6137_v58 = vrot.slane %v4597_v9, 7  ;;  %v6141_v38 = vrot.slane %v4615_v24, 7  ;;  %v6216_v24 = vld [vmem:[#allocation22_spill] sm:$0xff]  ;;  %v6220_v9 = vld [vmem:[#allocation75_spill] sm:$0xff] }
 0x104   :  { %v4650_v34 = vsub.f32 %v4435_v16, %v6139_v35  ;;  %v4659_v26 = vsub.f32 %v4441_v48, %v4479_v15  ;;  %v6144_v28 = vrot.slane %v4451_v32, 7  ;;  %v6147_v16 = vrot.slane %v4484_v12, 7 }
 0x105   :  { %v4645_v42 = vsel %vm948_vm3, %v6137_v58, %v1280_v46  ;;  %v4655_v23 = vsel %vm948_vm3, %v6141_v38, %v1283_v43  ;;  %v4668_v46 = vsub.f32 %v4457_v51, %v4502_v37  ;;  %v4676_v43 = vsub.f32 %v4490_v18, %v1245_v53  ;;  %v6192_v38 = vld [vmem:[#allocation5_spill] sm:$0xff] }
 0x106   :  { %6138 = vst [vmem:[#allocation90_spill] sm:$0xff] %v4645_v42  ;;  %6140 = vst [vmem:[#allocation67_spill] sm:$0xff] %v4650_v34  ;;  %v4664_v27 = vsub.f32 %v4451_v32, %v6144_v28  ;;  %v4673_v56 = vsub.f32 %v4484_v12, %v6147_v16  ;;  %v6150_v48 = vrot.slane %v4496_v45, 7  ;;  %v4684_v32 = vsub.f32 %v4507_v1, %v1248_v49  ;;  %v6193_v28 = vld [vmem:[#allocation81_spill] sm:$0xff] }
 0x107   :  { %6142 = vst [vmem:[#allocation17_spill] sm:$0xff] %v4655_v23  ;;  %6143 = vst [vmem:[#allocation71_spill] sm:$0xff] %v4659_v26  ;;  %v6153_v21 = vrot.slane %v4513_v59, 7  ;;  %v4692_v37 = vsub.f32 %v4519_v3, %v1251_v57  ;;  %v6156_v12 = vrot.slane %v4525_v52, 7  ;;  %v4700_v18 = vsub.f32 %v4531_v2, %v1254_v61  ;;  %v6210_v23 = vld [vmem:[#allocation20_spill] sm:$0xff]  ;;  %v6218_v42 = vld [vmem:[#allocation49_spill] sm:$0xff] }
 0x108   :  { %6145 = vst [vmem:[#allocation16_spill] sm:$0xff] %v4664_v27  ;;  %6146 = vst [vmem:[#allocation101_spill] sm:$0xff] %v4668_v46  ;;  %v4681_v15 = vsub.f32 %v4496_v45, %v6150_v48  ;;  %v6159_v45 = vrot.slane %v4537_v22, 7  ;;  %v4708_v1 = vsub.f32 %v4543_v11, %v1257_v40  ;;  %v4716_v57 = vsub.f32 %v4555_v4, %v1260_v63  ;;  %v6194_v48 = vld [vmem:[#allocation6_spill] sm:$0xff] }
 0x109   :  { %6148 = vst [vmem:[#allocation91_spill] sm:$0xff] %v4673_v56  ;;  %6149 = vst [vmem:[#allocation13_spill] sm:$0xff] %v4676_v43  ;;  %v4689_v51 = vsub.f32 %v4513_v59, %v6153_v21  ;;  %v4697_v53 = vsub.f32 %v4525_v52, %v6156_v12  ;;  %v6162_v59 = vrot.slane %v4549_v25, 7  ;;  %v4718_v52 = vsub.f32 %v2756_v50, %v1261_v7  ;;  %v6177_v50 = vld [vmem:[#allocation43_spill] sm:$0xff] }
 0x10a   :  { %6151 = vst [vmem:[#allocation14_spill] sm:$0xff] %v4681_v15  ;;  %6152 = vst [vmem:[#allocation15_spill] sm:$0xff] %v4684_v32  ;;  %v4705_v49 = vsub.f32 %v4537_v22, %v6159_v45  ;;  %v4720_v2 = vsub.f32 %v2757_v8, %v1263_v60  ;;  %v4722_v61 = vsub.f32 %v2758_v36, %v1264_v17  ;;  %v6186_v8 = vld [vmem:[#allocation2_spill] sm:$0xff]  ;;  %v6189_v36 = vld [vmem:[#allocation80_spill] sm:$0xff] }
 0x10b   :  { %6154 = vst [vmem:[#allocation40_spill] sm:$0xff] %v4689_v51  ;;  %6155 = vst [vmem:[#allocation41_spill] sm:$0xff] %v4692_v37  ;;  %v4713_v3 = vsub.f32 %v4549_v25, %v6162_v59  ;;  %v4724_v58 = vsub.f32 %v2759_v47, %v1266_v62  ;;  %v4726_v22 = vsub.f32 %v2760_v13, %v1267_v31  ;;  %v6178_v47 = vld [vmem:[#allocation44_spill] sm:$0xff]  ;;  %v6179_v31 = vld [vmem:[#allocation89_spill] sm:$0xff] }
 0x10c   :  { %6157 = vst [vmem:[#allocation42_spill] sm:$0xff] %v4697_v53  ;;  %6158 = vst [vmem:[#allocation88_spill] sm:$0xff] %v4700_v18  ;;  %v4728_v40 = vsub.f32 %v2761_v5, %v1269_v55  ;;  %v4730_v11 = vsub.f32 %v2762_v10, %v1270_v39  ;;  %v4732_v35 = vsub.f32 %v2763_v30, %v1272_v20  ;;  %v6180_v55 = vld [vmem:[#allocation45_spill] sm:$0xff]  ;;  %v6182_v10 = vld [vmem:[#allocation46_spill] sm:$0xff] }
 0x10d   :  { %6160 = vst [vmem:[#allocation99_spill] sm:$0xff] %v4705_v49  ;;  %6161 = vst [vmem:[#allocation87_spill] sm:$0xff] %v4708_v1  ;;  %v4734_v25 = vsub.f32 %v2764_v14, %v1273_v0  ;;  %v4736_v63 = vsub.f32 %v2765_v54, %v1275_v41  ;;  %v4738_v7 = vsub.f32 %v2766_v29, %v1276_v44  ;;  %v6181_v5 = vld [vmem:[#allocation77_spill] sm:$0xff]  ;;  %v6183_v30 = vld [vmem:[#allocation92_spill] sm:$0xff] }
 0x10e   :  { %6163 = vst [vmem:[#allocation102_spill] sm:$0xff] %v4713_v3  ;;  %6164 = vst [vmem:[#allocation103_spill] sm:$0xff] %v4716_v57  ;;  %v4740_v60 = vsub.f32 %v2767_v6, %v1278_v33  ;;  %v1349_v62 = vadd.f32 %v4356_v19, %v6177_v50  ;;  %v1350_v13 = vadd.f32 %v6179_v31, %v6178_v47  ;;  %v6184_v0 = vld [vmem:[#allocation47_spill] sm:$0xff]  ;;  %v6185_v14 = vld [vmem:[#allocation78_spill] sm:$0xff] }
 0x10f   :  { %6165 = vst [vmem:[#allocation104_spill] sm:$0xff] %v4718_v52  ;;  %6166 = vst [vmem:[#allocation105_spill] sm:$0xff] %v4720_v2  ;;  %v1351_v39 = vadd.f32 %v6181_v5, %v6180_v55  ;;  %v1352_v17 = vadd.f32 %v6183_v30, %v6182_v10  ;;  %v1353_v54 = vadd.f32 %v6185_v14, %v6184_v0  ;;  %v6187_v44 = vld [vmem:[#allocation93_spill] sm:$0xff]  ;;  %v6188_v6 = vld [vmem:[#allocation3_spill] sm:$0xff] }
 0x110   :  { %6167 = vst [vmem:[#allocation106_spill] sm:$0xff] %v4722_v61  ;;  %6168 = vst [vmem:[#allocation107_spill] sm:$0xff] %v4724_v58  ;;  %v1354_v29 = vadd.f32 %v6187_v44, %v6186_v8  ;;  %v1355_v4 = vadd.f32 %v6189_v36, %v6188_v6  ;;  %v6190_v20 = vld [vmem:[#allocation4_spill] sm:$0xff]  ;;  %v6191_v41 = vld [vmem:[#allocation94_spill] sm:$0xff]  ;;  %v1357_v16 = vadd.f32 %v6193_v28, %v6192_v38 }
 0x111   :  { %6169 = vst [vmem:[#allocation108_spill] sm:$0xff] %v4726_v22  ;;  %6170 = vst [vmem:[#allocation109_spill] sm:$0xff] %v4728_v40  ;;  %v1356_v33 = vadd.f32 %v6191_v41, %v6190_v20  ;;  %v6195_v21 = vld [vmem:[#allocation95_spill] sm:$0xff]  ;;  %v6197_v59 = vld [vmem:[#allocation82_spill] sm:$0xff] }
 0x112   :  { %6171 = vst [vmem:[#allocation110_spill] sm:$0xff] %v4730_v11  ;;  %6172 = vst [vmem:[#allocation111_spill] sm:$0xff] %v4732_v35  ;;  %v1358_v12 = vadd.f32 %v6195_v21, %v6194_v48  ;;  %v6196_v45 = vld [vmem:[#allocation7_spill] sm:$0xff]  ;;  %v6198_v30 = vld [vmem:[#allocation8_spill] sm:$0xff] }
 0x113   :  { %6173 = vst [vmem:[#allocation112_spill] sm:$0xff] %v4734_v25  ;;  %6174 = vst [vmem:[#allocation113_spill] sm:$0xff] %v4736_v63  ;;  %v6199_v14 = vld [vmem:[#allocation96_spill] sm:$0xff]  ;;  %v6200_v31 = vld [vmem:[#allocation9_spill] sm:$0xff] }
 0x114   :  { %6175 = vst [vmem:[#allocation114_spill] sm:$0xff] %v4738_v7  ;;  %6176 = vst [vmem:[#allocation115_spill] sm:$0xff] %v4740_v60  ;;  %v1359_v60 = vadd.f32 %v6197_v59, %v6196_v45  ;;  %v1360_v5 = vadd.f32 %v6199_v14, %v6198_v30  ;;  %v6201_v44 = vld [vmem:[#allocation84_spill] sm:$0xff]  ;;  %v6202_v8 = vld [vmem:[#allocation10_spill] sm:$0xff] }
 0x115   :  { %v1361_v19 = vadd.f32 %v6201_v44, %v6200_v31  ;;  %v6203_v36 = vld [vmem:[#allocation97_spill] sm:$0xff]  ;;  %v6204_v0 = vld [vmem:[#allocation11_spill] sm:$0xff]  ;;  %v6206_v10 = vld [vmem:[#allocation12_spill] sm:$0xff] }
 0x116   :  { %v1362_v6 = vadd.f32 %v6203_v36, %v6202_v8  ;;  %v6205_v41 = vld [vmem:[#allocation85_spill] sm:$0xff]  ;;  %v6207_v28 = vld [vmem:[#allocation98_spill] sm:$0xff]  ;;  %v6208_v55 = vld [vmem:[#allocation19_spill] sm:$0xff] }
 0x117   :  { %v1363_v20 = vadd.f32 %v6205_v41, %v6204_v0  ;;  %v1364_v38 = vadd.f32 %v6207_v28, %v6206_v10  ;;  %v6209_v21 = vld [vmem:[#allocation86_spill] sm:$0xff]  ;;  %v6211_v59 = vld [vmem:[#allocation52_spill] sm:$0xff]  ;;  %v6212_v47 = vld [vmem:[#allocation21_spill] sm:$0xff] }
 0x118   :  { %v1365_v48 = vadd.f32 %v6209_v21, %v6208_v55  ;;  %v1366_v45 = vadd.f32 %v6211_v59, %v6210_v23  ;;  %v6213_v14 = vld [vmem:[#allocation53_spill] sm:$0xff]  ;;  %v6214_v50 = vld [vmem:[#allocation48_spill] sm:$0xff]  ;;  %v6215_v44 = vld [vmem:[#allocation54_spill] sm:$0xff] }
 0x119   :  { %v1367_v30 = vadd.f32 %v6213_v14, %v6212_v47  ;;  %v1368_v31 = vadd.f32 %v6215_v44, %v6214_v50  ;;  %v6217_v36 = vld [vmem:[#allocation56_spill] sm:$0xff]  ;;  %v6219_v41 = vld [vmem:[#allocation57_spill] sm:$0xff]  ;;  %v6221_v28 = vld [vmem:[#allocation58_spill] sm:$0xff] }
 0x11a   :  { %v1369_v8 = vadd.f32 %v6217_v36, %v6216_v24  ;;  %v1370_v0 = vadd.f32 %v6219_v41, %v6218_v42  ;;  %v1371_v10 = vadd.f32 %v6221_v28, %v6220_v9  ;;  %v6222_v7 = vld [vmem:[#allocation72_spill] sm:$0xff]  ;;  %v6224_v63 = vld [vmem:[#allocation50_spill] sm:$0xff]  ;;  %v6225_v59 = vld [vmem:[#allocation61_spill] sm:$0xff]  ;;  %v1381_v36 = vsub.f32 %v1349_v62, %v4650_v34 }
 0x11b   :  { %v6223_v21 = vld [vmem:[#allocation60_spill] sm:$0xff]  ;;  %v1373_v23 = vadd.f32 %v6225_v59, %v6224_v63  ;;  %v6226_v25 = vld [vmem:[#allocation55_spill] sm:$0xff]  ;;  %v6227_v14 = vld [vmem:[#allocation62_spill] sm:$0xff]  ;;  %v1382_v24 = vsub.f32 %v1350_v13, %v4659_v26  ;;  %v1383_v41 = vsub.f32 %v1351_v39, %v4664_v27  ;;  %v1384_v28 = vsub.f32 %v1352_v17, %v4668_v46 }
 0x11c   :  { %v1372_v55 = vadd.f32 %v6223_v21, %v6222_v7  ;;  %v1374_v47 = vadd.f32 %v6227_v14, %v6226_v25  ;;  %v6228_v35 = vld [vmem:[#allocation79_spill] sm:$0xff]  ;;  %v6229_v44 = vld [vmem:[#allocation64_spill] sm:$0xff]  ;;  %v1385_v9 = vsub.f32 %v1353_v54, %v4673_v56  ;;  %v1386_v21 = vsub.f32 %v1354_v29, %v4676_v43  ;;  %v6275_v56 = vld [vmem:[#allocation10_spill] sm:$0xff] }
 0x11d   :  { %v1375_v50 = vadd.f32 %v6229_v44, %v6228_v35  ;;  %v1387_v59 = vsub.f32 %v1355_v4, %v4681_v15  ;;  %v1388_v63 = vsub.f32 %v1356_v33, %v4684_v32  ;;  %v1389_v14 = vsub.f32 %v1357_v16, %v4689_v51  ;;  %v6273_v32 = vld [vmem:[#allocation8_spill] sm:$0xff]  ;;  %v6274_v15 = vld [vmem:[#allocation9_spill] sm:$0xff]  ;;  %v6276_v27 = vld [vmem:[#allocation51_spill] sm:$0xff] }
 0x11e   :  { %v1390_v44 = vsub.f32 %v1358_v12, %v4692_v37  ;;  %v1391_v62 = vsub.f32 %v1359_v60, %v4697_v53  ;;  %v1392_v13 = vsub.f32 %v1360_v5, %v4700_v18  ;;  %v1393_v39 = vsub.f32 %v1361_v19, %v4705_v49  ;;  %v6270_v53 = vld [vmem:[#allocation5_spill] sm:$0xff]  ;;  %v6282_v37 = vld [vmem:[#allocation59_spill] sm:$0xff]  ;;  %v6297_v34 = vld [vmem:[#allocation76_spill] sm:$0xff] }
 0x11f   :  { %v1394_v17 = vsub.f32 %v1362_v6, %v4708_v1  ;;  %v1395_v54 = vsub.f32 %v1363_v20, %v4713_v3  ;;  %v1396_v29 = vsub.f32 %v1364_v38, %v4716_v57  ;;  %v1397_v4 = vsub.f32 %v1365_v48, %v4718_v52  ;;  %v6230_v1 = vld [vmem:[#allocation111_spill] sm:$0xff]  ;;  %v6231_v48 = vld [vmem:[#allocation112_spill] sm:$0xff]  ;;  %v6301_v35 = vld [vmem:[#allocation78_spill] sm:$0xff] }
 0x120   :  { %v1398_v33 = vsub.f32 %v1366_v45, %v4720_v2  ;;  %v1399_v16 = vsub.f32 %v1367_v30, %v4722_v61  ;;  %v1400_v12 = vsub.f32 %v1368_v31, %v4724_v58  ;;  %v1401_v60 = vsub.f32 %v1369_v8, %v4726_v22  ;;  %v6232_v61 = vld [vmem:[#allocation113_spill] sm:$0xff]  ;;  %v6310_v7 = vld [vmem:[#allocation84_spill] sm:$0xff] }
 0x121   :  { %v1402_v5 = vsub.f32 %v1370_v0, %v4728_v40  ;;  %v1403_v19 = vsub.f32 %v1371_v10, %v4730_v11  ;;  %v1413_v49 = vand.u32 2147483647, %v1381_v36  ;;  %v1414_v6 = vand.u32 2147483647, %v1382_v24  ;;  %v6233_v0 = vld [vmem:[#allocation114_spill] sm:$0xff]  ;;  %v6269_v11 = vld [vmem:[#allocation4_spill] sm:$0xff] }
 0x122   :  { %v1404_v20 = vsub.f32 %v1372_v55, %v6230_v1  ;;  %v1415_v3 = vand.u32 2147483647, %v1383_v41  ;;  %v1416_v38 = vand.u32 2147483647, %v1384_v28  ;;  %v1417_v57 = vand.u32 2147483647, %v1385_v9 }
 0x123   :  { %v1405_v52 = vsub.f32 %v1373_v23, %v6231_v48  ;;  %v1418_v45 = vand.u32 2147483647, %v1386_v21  ;;  %v1419_v2 = vand.u32 2147483647, %v1387_v59  ;;  %v1420_v30 = vand.u32 2147483647, %v1388_v63 }
 0x124   :  { %v1406_v31 = vsub.f32 %v1374_v47, %v6232_v61  ;;  %v1421_v58 = vand.u32 2147483647, %v1389_v14  ;;  %v1422_v8 = vand.u32 2147483647, %v1390_v44  ;;  %v1423_v22 = vand.u32 2147483647, %v1391_v62 }
 0x125   :  { %v1407_v40 = vsub.f32 %v1375_v50, %v6233_v0  ;;  %v4823_v10 = vand.u32 2147483647, %v1392_v13  ;;  %v1425_v24 = vand.u32 2147483647, %v1393_v39  ;;  %v4825_v36 = vand.u32 2147483647, %v1394_v17 }
 0x126   :  { %v4827_v55 = vand.u32 2147483647, %v1395_v54  ;;  %v4829_v9 = vand.u32 2147483647, %v1396_v29  ;;  %v4831_v23 = vand.u32 2147483647, %v1397_v4  ;;  %v1477_v41 = vadd.f32 %v1416_v38, %v1414_v6 }
 0x127   :  { %v6236_v63 = vld [vmem:[#allocation18_spill] sm:$0xff]  ;;  %v4838_v14 = vand.u32 2147483647, %v1398_v33  ;;  %v4840_v50 = vand.u32 2147483647, %v1399_v16  ;;  %v6242_v21 = vld [vmem:[#allocation63_spill] sm:$0xff] }
 0x128   :  { %6234 = vst [vmem:[#allocation116_spill] sm:$0xff] %v4827_v55  ;;  %6235 = vst [vmem:[#allocation117_spill] sm:$0xff] %v4831_v23  ;;  %v6237_v28 = vrot.slane %v6236_v63, 7  ;;  %v6241_v44 = vld [vmem:[#allocation90_spill] sm:$0xff]  ;;  %v4846_v62 = vand.u32 2147483647, %v1400_v12 }
 0x129   :  { %6239 = vst [vmem:[#allocation118_spill] sm:$0xff] %v4838_v14  ;;  %6240 = vst [vmem:[#allocation119_spill] sm:$0xff] %v4840_v50  ;;  %v4844_v59 = vsub.f32 %v6242_v21, %v6241_v44  ;;  %v4848_v13 = vand.u32 2147483647, %v1401_v60  ;;  %v4850_v39 = vand.u32 2147483647, %v1402_v5  ;;  %v1478_v60 = vadd.f32 %v1477_v41, %v1418_v45 }
 0x12a   :  { %v4836_v47 = vsub.f32 %v6236_v63, %v6237_v28  ;;  %6244 = vst [vmem:[#allocation63_spill] sm:$0xff] %v4846_v62  ;;  %v6247_v17 = vld [vmem:[#allocation23_spill] sm:$0xff]  ;;  %v4857_v4 = vand.u32 2147483647, %v1403_v19  ;;  %v4859_v33 = vand.u32 2147483647, %v1404_v20 }
 0x12b   :  { %6243 = vst [vmem:[#allocation90_spill] sm:$0xff] %v4844_v59  ;;  %6245 = vst [vmem:[#allocation120_spill] sm:$0xff] %v4848_v13  ;;  %v6248_v54 = vrot.slane %v6247_v17, 7  ;;  %v4861_v16 = vand.u32 2147483647, %v1405_v52  ;;  %v1446_v12 = vsel %vm1445_vm4, %v1413_v49, 0.0  ;;  %v1479_v18 = vadd.f32 %v1478_v60, %v1420_v30 }
 0x12c   :  { %6238 = vst [vmem:[#allocation18_spill] sm:$0xff] %v4836_v47  ;;  %6246 = vst [vmem:[#allocation121_spill] sm:$0xff] %v4850_v39  ;;  %v4863_v6 = vand.u32 2147483647, %v1406_v31  ;;  %v4865_v38 = vand.u32 2147483647, %v1407_v40 }
 0x12d   :  { %v4855_v29 = vsub.f32 %v6247_v17, %v6248_v54  ;;  %6250 = vst [vmem:[#allocation122_spill] sm:$0xff] %v4857_v4  ;;  %6251 = vst [vmem:[#allocation123_spill] sm:$0xff] %v4859_v33  ;;  %v1447_v5 = vsel %vm1445_vm4, %v1415_v3, 0.0  ;;  %v1449_v63 = vsel %vm1445_vm4, %v1417_v57, 0.0  ;;  %v1451_v28 = vsel %vm1445_vm4, %v1419_v2, 0.0  ;;  %v6256_v40 = vld [vmem:[#allocation43_spill] sm:$0xff] }
 0x12e   :  { %6252 = vst [vmem:[#allocation124_spill] sm:$0xff] %v4861_v16  ;;  %6253 = vst [vmem:[#allocation125_spill] sm:$0xff] %v4863_v6  ;;  %v4872_v19 = vsel %vm1445_vm4, %v1421_v58, 0.0  ;;  %v4875_v20 = vsel %vm1445_vm4, %v1423_v22, 0.0  ;;  %v4878_v52 = vsel %vm1445_vm4, %v1425_v24, 0.0  ;;  %v6257_v44 = vld [vmem:[#allocation44_spill] sm:$0xff]  ;;  %v1448_v17 = vadd.f32 %v1447_v5, %v1446_v12 }
 0x12f   :  { %6249 = vst [vmem:[#allocation23_spill] sm:$0xff] %v4855_v29  ;;  %6254 = vst [vmem:[#allocation126_spill] sm:$0xff] %v4865_v38  ;;  %v6258_v45 = vld [vmem:[#allocation17_spill] sm:$0xff]  ;;  %v6259_v41 = vld [vmem:[#allocation100_spill] sm:$0xff]  ;;  %v1480_v33 = vadd.f32 %v1479_v18, %v1422_v8  ;;  %v1539_v43 = vand.u32 2147483647, %v6297_v34 }
 0x130   :  { %6255 = vst [vmem:[#allocation127_spill] sm:$0xff] %v4878_v52  ;;  %v4884_v3 = vsub.f32 %v6259_v41, %v6258_v45  ;;  %v6261_v57 = vld [vmem:[#allocation45_spill] sm:$0xff]  ;;  %v6262_v2 = vld [vmem:[#allocation46_spill] sm:$0xff]  ;;  %v6263_v58 = vld [vmem:[#allocation47_spill] sm:$0xff]  ;;  %v1450_v60 = vadd.f32 %v1449_v63, %v1448_v17  ;;  %v1543_v25 = vand.u32 2147483647, %v6301_v35 }
 0x131   :  { %v6264_v0 = vld [vmem:[#allocation73_spill] sm:$0xff]  ;;  %v6267_v24 = vld [vmem:[#allocation2_spill] sm:$0xff]  ;;  %v6268_v1 = vld [vmem:[#allocation3_spill] sm:$0xff]  ;;  %v1481_v62 = vadd.f32 %v1480_v33, %v4823_v10  ;;  %v1551_v49 = vand.u32 2147483647, %v6310_v7 }
 0x132   :  { %6260 = vst [vmem:[#allocation43_spill] sm:$0xff] %v4884_v3  ;;  %v6265_v22 = vld [vmem:[#allocation65_spill] sm:$0xff]  ;;  %v6271_v41 = vld [vmem:[#allocation6_spill] sm:$0xff]  ;;  %v6272_v21 = vld [vmem:[#allocation7_spill] sm:$0xff] }
 0x133   :  { %v4891_v61 = vadd.f32 %v6265_v22, %v6264_v0  ;;  %v6277_v48 = vld [vmem:[#allocation66_spill] sm:$0xff]  ;;  %v6279_v31 = vld [vmem:[#allocation11_spill] sm:$0xff]  ;;  %v6280_v30 = vld [vmem:[#allocation12_spill] sm:$0xff]  ;;  %v1452_v0 = vadd.f32 %v1451_v28, %v1450_v60 }
 0x134   :  { %v4904_v26 = vadd.f32 %v6277_v48, %v6276_v27  ;;  %v6281_v45 = vld [vmem:[#allocation19_spill] sm:$0xff]  ;;  %v6283_v6 = vld [vmem:[#allocation68_spill] sm:$0xff]  ;;  %v6292_v5 = vld [vmem:[#allocation69_spill] sm:$0xff] }
 0x135   :  { %6266 = vst [vmem:[#allocation44_spill] sm:$0xff] %v4891_v61  ;;  %v4911_v51 = vadd.f32 %v6283_v6, %v6282_v37  ;;  %v6291_v55 = vld [vmem:[#allocation83_spill] sm:$0xff]  ;;  %v6294_v13 = vld [vmem:[#allocation74_spill] sm:$0xff]  ;;  %v6298_v14 = vld [vmem:[#allocation89_spill] sm:$0xff] }
 0x136   :  { %6278 = vst [vmem:[#allocation17_spill] sm:$0xff] %v4904_v26  ;;  %v4924_v3 = vadd.f32 %v6292_v5, %v6291_v55  ;;  %v6295_v4 = vld [vmem:[#allocation70_spill] sm:$0xff]  ;;  %v1540_v46 = vand.u32 2147483647, %v6298_v14  ;;  %v6299_v52 = vld [vmem:[#allocation77_spill] sm:$0xff]  ;;  %v6300_v8 = vld [vmem:[#allocation92_spill] sm:$0xff] }
 0x137   :  { %6284 = vst [vmem:[#allocation100_spill] sm:$0xff] %v4911_v51  ;;  %v4931_v39 = vadd.f32 %v6295_v4, %v6294_v13  ;;  %v1541_v18 = vand.u32 2147483647, %v6299_v52  ;;  %v1542_v27 = vand.u32 2147483647, %v6300_v8  ;;  %v6304_v55 = vld [vmem:[#allocation80_spill] sm:$0xff] }
 0x138   :  { %6293 = vst [vmem:[#allocation45_spill] sm:$0xff] %v4924_v3  ;;  %v1545_v23 = vand.u32 2147483647, %v6304_v55  ;;  %v6305_v13 = vld [vmem:[#allocation94_spill] sm:$0xff]  ;;  %v6306_v33 = vld [vmem:[#allocation81_spill] sm:$0xff]  ;;  %v6307_v52 = vld [vmem:[#allocation95_spill] sm:$0xff] }
 0x139   :  { %6296 = vst [vmem:[#allocation46_spill] sm:$0xff] %v4931_v39  ;;  %v6302_v39 = vld [vmem:[#allocation93_spill] sm:$0xff]  ;;  %v1546_v10 = vand.u32 2147483647, %v6305_v13  ;;  %v1547_v34 = vand.u32 2147483647, %v6306_v33  ;;  %v1454_v13 = vadd.f32 %v4872_v19, %v1452_v0 }
 0x13a   :  { %v1544_v50 = vand.u32 2147483647, %v6302_v39  ;;  %v1548_v28 = vand.u32 2147483647, %v6307_v52  ;;  %v6308_v60 = vld [vmem:[#allocation82_spill] sm:$0xff]  ;;  %v6309_v37 = vld [vmem:[#allocation96_spill] sm:$0xff]  ;;  %v1482_v39 = vadd.f32 %v1481_v62, %v4825_v36 }
 0x13b   :  { %v1549_v8 = vand.u32 2147483647, %v6308_v60  ;;  %v1550_v35 = vand.u32 2147483647, %v6309_v37  ;;  %v6311_v17 = vld [vmem:[#allocation97_spill] sm:$0xff]  ;;  %v6313_v33 = vld [vmem:[#allocation98_spill] sm:$0xff] }
 0x13c   :  { %v1552_v63 = vand.u32 2147483647, %v6311_v17  ;;  %v6312_v55 = vld [vmem:[#allocation85_spill] sm:$0xff]  ;;  %v1554_v42 = vand.u32 2147483647, %v6313_v33  ;;  %v6314_v16 = vld [vmem:[#allocation86_spill] sm:$0xff] }
 0x13d   :  { %v1553_v61 = vand.u32 2147483647, %v6312_v55  ;;  %v1555_v14 = vand.u32 2147483647, %v6314_v16  ;;  %v6315_v47 = vld [vmem:[#allocation52_spill] sm:$0xff]  ;;  %v6316_v37 = vld [vmem:[#allocation53_spill] sm:$0xff] }
 0x13e   :  { %v1556_v52 = vand.u32 2147483647, %v6315_v47  ;;  %v1557_v26 = vand.u32 2147483647, %v6316_v37  ;;  %v6317_v36 = vld [vmem:[#allocation54_spill] sm:$0xff]  ;;  %v6318_v7 = vld [vmem:[#allocation56_spill] sm:$0xff]  ;;  %v4972_v47 = vadd.f32 %v1482_v39, %v4829_v9 }
 0x13f   :  { %v1558_v62 = vand.u32 2147483647, %v6317_v36  ;;  %v1559_v38 = vand.u32 2147483647, %v6318_v7  ;;  %v6319_v55 = vld [vmem:[#allocation57_spill] sm:$0xff]  ;;  %v6320_v19 = vld [vmem:[#allocation58_spill] sm:$0xff]  ;;  %v4978_v7 = vadd.f32 %v4875_v20, %v1454_v13 }
 0x140   :  { %v1560_v0 = vand.u32 2147483647, %v6319_v55  ;;  %v1561_v33 = vand.u32 2147483647, %v6320_v19  ;;  %v6321_v54 = vld [vmem:[#allocation60_spill] sm:$0xff]  ;;  %6322 = vst [vmem:[#allocation47_spill] sm:$0xff] %v4972_v47 }
 0x141   :  { %v1562_v16 = vand.u32 2147483647, %v6321_v54  ;;  %v6323_v12 = vld [vmem:[#allocation61_spill] sm:$0xff]  ;;  %v6324_v59 = vld [vmem:[#allocation62_spill] sm:$0xff]  ;;  %v6325_v51 = vld [vmem:[#allocation64_spill] sm:$0xff] }
 0x142   :  { %v1563_v60 = vand.u32 2147483647, %v6323_v12  ;;  %v1564_v37 = vand.u32 2147483647, %v6324_v59  ;;  %v1565_v36 = vand.u32 2147483647, %v6325_v51 }
 0x143   :  { %v1566_v17 = vand.u32 2147483647, %v6265_v22  ;;  %v1567_v55 = vand.u32 2147483647, %v6277_v48  ;;  %v1568_v19 = vand.u32 2147483647, %v6283_v6 }
 0x144   :  { %v1569_v54 = vand.u32 2147483647, %v6292_v5  ;;  %v1570_v9 = vand.u32 2147483647, %v6295_v4  ;;  %v6326_v39 = vand.u32 2147483647, %v6256_v40 }
 0x145   :  { %v6327_v59 = vand.u32 2147483647, %v6257_v44  ;;  %v6328_v51 = vand.u32 2147483647, %v6261_v57  ;;  %v6329_v13 = vand.u32 2147483647, %v6262_v2 }
 0x146   :  { %v1571_v12 = vadd.f32 %v1539_v43, %v6326_v39  ;;  %v6330_v48 = vand.u32 2147483647, %v6263_v58  ;;  %v6331_v6 = vand.u32 2147483647, %v6267_v24  ;;  %v6332_v4 = vand.u32 2147483647, %v6268_v1 }
 0x147   :  { %v1572_v29 = vadd.f32 %v1540_v46, %v6327_v59  ;;  %v1573_v20 = vadd.f32 %v1541_v18, %v6328_v51  ;;  %v1574_v22 = vadd.f32 %v1542_v27, %v6329_v13  ;;  %v6333_v43 = vand.u32 2147483647, %v6269_v11 }
 0x148   :  { %v1575_v3 = vadd.f32 %v1543_v25, %v6330_v48  ;;  %v1576_v5 = vadd.f32 %v1544_v50, %v6331_v6  ;;  %v1577_v47 = vadd.f32 %v1545_v23, %v6332_v4  ;;  %v6334_v46 = vand.u32 2147483647, %v6270_v53 }
 0x149   :  { %v1578_v40 = vadd.f32 %v1546_v10, %v6333_v43  ;;  %v6335_v57 = vand.u32 2147483647, %v6271_v41  ;;  %v6336_v27 = vand.u32 2147483647, %v6272_v21  ;;  %v6337_v25 = vand.u32 2147483647, %v6273_v32 }
 0x14a   :  { %v1579_v44 = vadd.f32 %v1547_v34, %v6334_v46  ;;  %v6338_v50 = vand.u32 2147483647, %v6274_v15  ;;  %v6339_v1 = vand.u32 2147483647, %v6275_v56  ;;  %v6340_v11 = vand.u32 2147483647, %v6279_v31 }
 0x14b   :  { %v1580_v18 = vadd.f32 %v1548_v28, %v6335_v57  ;;  %v1581_v2 = vadd.f32 %v1549_v8, %v6336_v27  ;;  %v1582_v58 = vadd.f32 %v1550_v35, %v6337_v25  ;;  %v6341_v53 = vand.u32 2147483647, %v6280_v30  ;;  %v6343_v21 = vld [vmem:[#allocation20_spill] sm:$0xff]  ;;  %v6345_v32 = vld [vmem:[#allocation21_spill] sm:$0xff]  ;;  %v6349_v56 = vld [vmem:[#allocation22_spill] sm:$0xff] }
 0x14c   :  { %v1583_v24 = vadd.f32 %v1551_v49, %v6338_v50  ;;  %v1584_v23 = vadd.f32 %v1552_v63, %v6339_v1  ;;  %v1585_v10 = vadd.f32 %v1553_v61, %v6340_v11  ;;  %v6342_v41 = vand.u32 2147483647, %v6281_v45  ;;  %v6347_v15 = vld [vmem:[#allocation48_spill] sm:$0xff]  ;;  %v6351_v31 = vld [vmem:[#allocation49_spill] sm:$0xff]  ;;  %v6353_v30 = vld [vmem:[#allocation75_spill] sm:$0xff] }
 0x14d   :  { %v1586_v34 = vadd.f32 %v1554_v42, %v6341_v53  ;;  %v6344_v8 = vand.u32 2147483647, %v6343_v21  ;;  %v6346_v35 = vand.u32 2147483647, %v6345_v32  ;;  %v6348_v49 = vand.u32 2147483647, %v6347_v15 }
 0x14e   :  { %v1587_v28 = vadd.f32 %v1555_v14, %v6342_v41  ;;  %v6350_v63 = vand.u32 2147483647, %v6349_v56  ;;  %v6352_v61 = vand.u32 2147483647, %v6351_v31  ;;  %v6354_v42 = vand.u32 2147483647, %v6353_v30 }
 0x14f   :  { %v1588_v39 = vadd.f32 %v1556_v52, %v6344_v8  ;;  %v1589_v59 = vadd.f32 %v1557_v26, %v6346_v35  ;;  %v1590_v51 = vadd.f32 %v1558_v62, %v6348_v49  ;;  %v6355_v45 = vld [vmem:[#allocation72_spill] sm:$0xff]  ;;  %v6357_v43 = vld [vmem:[#allocation50_spill] sm:$0xff]  ;;  %v6359_v57 = vld [vmem:[#allocation55_spill] sm:$0xff]  ;;  %v1604_v56 = vadd.f32 %v1574_v22, %v1572_v29 }
 0x150   :  { %v1591_v13 = vadd.f32 %v1559_v38, %v6350_v63  ;;  %v1592_v48 = vadd.f32 %v1560_v0, %v6352_v61  ;;  %v1593_v6 = vadd.f32 %v1561_v33, %v6354_v42  ;;  %v6356_v14 = vand.u32 2147483647, %v6355_v45  ;;  %v6361_v25 = vld [vmem:[#allocation79_spill] sm:$0xff]  ;;  %v6363_v1 = vld [vmem:[#allocation73_spill] sm:$0xff] }
 0x151   :  { %v6358_v52 = vand.u32 2147483647, %v6357_v43  ;;  %v6360_v26 = vand.u32 2147483647, %v6359_v57  ;;  %v6362_v62 = vand.u32 2147483647, %v6361_v25  ;;  %v1606_v63 = vadd.f32 %v1576_v5, %v1574_v22 }
 0x152   :  { %v1594_v4 = vadd.f32 %v1562_v16, %v6356_v14  ;;  %v6364_v38 = vand.u32 2147483647, %v6363_v1  ;;  %v6365_v53 = vld [vmem:[#allocation51_spill] sm:$0xff]  ;;  %v1607_v31 = vadd.f32 %v1577_v47, %v1575_v3  ;;  %v1609_v61 = vadd.f32 %v1579_v44, %v1577_v47 }
 0x153   :  { %v1595_v46 = vadd.f32 %v1563_v60, %v6358_v52  ;;  %v1596_v27 = vadd.f32 %v1564_v37, %v6360_v26  ;;  %v1597_v50 = vadd.f32 %v1565_v36, %v6362_v62  ;;  %v6366_v0 = vand.u32 2147483647, %v6365_v53  ;;  %v6367_v21 = vld [vmem:[#allocation59_spill] sm:$0xff]  ;;  %v6371_v60 = vld [vmem:[#allocation74_spill] sm:$0xff] }
 0x154   :  { %v1598_v11 = vadd.f32 %v1566_v17, %v6364_v38  ;;  %v6368_v33 = vand.u32 2147483647, %v6367_v21  ;;  %v6369_v16 = vld [vmem:[#allocation83_spill] sm:$0xff]  ;;  %v6372_v15 = vand.u32 2147483647, %v6371_v60  ;;  %v1603_v37 = vadd.f32 %v1573_v20, %v1571_v12 }
 0x155   :  { %v1599_v41 = vadd.f32 %v1567_v55, %v6366_v0  ;;  %v6370_v32 = vand.u32 2147483647, %v6369_v16  ;;  %v1605_v36 = vadd.f32 %v1575_v3, %v1573_v20  ;;  %v1608_v17 = vadd.f32 %v1578_v40, %v1576_v5 }
 0x156   :  { %v5045_v8 = vadd.f32 %v1568_v19, %v6368_v33  ;;  %v5051_v49 = vadd.f32 %v1570_v9, %v6372_v15  ;;  %v1610_v30 = vadd.f32 %v1580_v18, %v1578_v40  ;;  %v1611_v55 = vadd.f32 %v1581_v2, %v1579_v44 }
 0x157   :  { %v1601_v35 = vadd.f32 %v1569_v54, %v6370_v32  ;;  %v1612_v42 = vadd.f32 %v1582_v58, %v1580_v18  ;;  %v1613_v45 = vadd.f32 %v1583_v24, %v1581_v2  ;;  %v1614_v19 = vadd.f32 %v1584_v23, %v1582_v58 }
 0x158   :  { %v1615_v14 = vadd.f32 %v1585_v10, %v1583_v24  ;;  %v1616_v43 = vadd.f32 %v1586_v34, %v1584_v23  ;;  %v1617_v52 = vadd.f32 %v1587_v28, %v1585_v10  ;;  %v1618_v54 = vadd.f32 %v1588_v39, %v1586_v34 }
 0x159   :  { %v1619_v57 = vadd.f32 %v1589_v59, %v1587_v28  ;;  %v1620_v26 = vadd.f32 %v1590_v51, %v1588_v39  ;;  %v1621_v9 = vadd.f32 %v1591_v13, %v1589_v59  ;;  %v1622_v25 = vadd.f32 %v1592_v48, %v1590_v51 }
 0x15a   :  { %v1623_v12 = vadd.f32 %v1593_v6, %v1591_v13  ;;  %v1624_v29 = vadd.f32 %v1594_v4, %v1592_v48  ;;  %v1625_v20 = vadd.f32 %v1595_v46, %v1593_v6  ;;  %v1626_v22 = vadd.f32 %v1596_v27, %v1594_v4 }
 0x15b   :  { %v1627_v3 = vadd.f32 %v1597_v50, %v1595_v46  ;;  %v1628_v5 = vadd.f32 %v1598_v11, %v1596_v27  ;;  %v1629_v47 = vadd.f32 %v1599_v41, %v1597_v50  ;;  %v1630_v40 = vadd.f32 %v5045_v8, %v1598_v11 }
 0x15c   :  { %v1631_v44 = vadd.f32 %v1601_v35, %v1599_v41  ;;  %v1633_v18 = vadd.f32 %v1607_v31, %v1603_v37  ;;  %v1634_v2 = vadd.f32 %v1608_v17, %v1604_v56  ;;  %v1635_v58 = vadd.f32 %v1609_v61, %v1605_v36 }
 0x15d   :  { %v1636_v24 = vadd.f32 %v1610_v30, %v1606_v63  ;;  %v1637_v23 = vadd.f32 %v1611_v55, %v1607_v31  ;;  %v1638_v10 = vadd.f32 %v1612_v42, %v1608_v17  ;;  %v1639_v34 = vadd.f32 %v1613_v45, %v1609_v61 }
 0x15e   :  { %v1640_v28 = vadd.f32 %v1614_v19, %v1610_v30  ;;  %v1641_v39 = vadd.f32 %v1615_v14, %v1611_v55  ;;  %v1642_v59 = vadd.f32 %v1616_v43, %v1612_v42  ;;  %v1643_v51 = vadd.f32 %v1617_v52, %v1613_v45 }
 0x15f   :  { %v1644_v13 = vadd.f32 %v1618_v54, %v1614_v19  ;;  %v1645_v48 = vadd.f32 %v1619_v57, %v1615_v14  ;;  %v1646_v6 = vadd.f32 %v1620_v26, %v1616_v43  ;;  %v1647_v4 = vadd.f32 %v1621_v9, %v1617_v52 }
 0x160   :  { %v1648_v46 = vadd.f32 %v1622_v25, %v1618_v54  ;;  %v1649_v27 = vadd.f32 %v1623_v12, %v1619_v57  ;;  %v1650_v62 = vadd.f32 %v1624_v29, %v1620_v26  ;;  %v1651_v50 = vadd.f32 %v1625_v20, %v1621_v9 }
 0x161   :  { %v1652_v1 = vadd.f32 %v1626_v22, %v1622_v25  ;;  %v1653_v38 = vadd.f32 %v1627_v3, %v1623_v12  ;;  %v1654_v11 = vadd.f32 %v1628_v5, %v1624_v29  ;;  %v1655_v53 = vadd.f32 %v1641_v39, %v1633_v18 }
 0x162   :  { %v1656_v0 = vadd.f32 %v1642_v59, %v1634_v2  ;;  %v1657_v41 = vadd.f32 %v1643_v51, %v1635_v58  ;;  %v1658_v21 = vadd.f32 %v1644_v13, %v1636_v24  ;;  %v1659_v33 = vadd.f32 %v1645_v48, %v1637_v23  ;;  %v6373_v2 = vld [vmem:[#allocation127_spill] sm:$0xff]  ;;  %v6374_v24 = vld [vmem:[#allocation118_spill] sm:$0xff] }
 0x163   :  { %v1660_v16 = vadd.f32 %v1646_v6, %v1638_v10  ;;  %v1661_v32 = vadd.f32 %v1647_v4, %v1639_v34  ;;  %v1662_v35 = vadd.f32 %v1648_v46, %v1640_v28  ;;  %v1663_v60 = vadd.f32 %v1649_v27, %v1641_v39  ;;  %v6376_v34 = vld [vmem:[#allocation43_spill] sm:$0xff]  ;;  %v6377_v28 = vld [vmem:[#allocation46_spill] sm:$0xff]  ;;  %v6378_v39 = vld [vmem:[#allocation44_spill] sm:$0xff] }
 0x164   :  { %v1664_v15 = vadd.f32 %v1650_v62, %v1642_v59  ;;  %v1665_v37 = vadd.f32 %v1651_v50, %v1643_v51  ;;  %v1632_v56 = vadd.f32 %v5051_v49, %v5045_v8  ;;  %v1666_v36 = vadd.f32 %v1652_v1, %v1644_v13  ;;  %v6375_v8 = vld [vmem:[#allocation47_spill] sm:$0xff]  ;;  %v6381_v13 = vld [vmem:[#allocation17_spill] sm:$0xff]  ;;  %v6384_v46 = vld [vmem:[#allocation116_spill] sm:$0xff] }
 0x165   :  { %v1667_v63 = vadd.f32 %v1653_v38, %v1645_v48  ;;  %v1668_v31 = vadd.f32 %v1654_v11, %v1646_v6  ;;  %v1669_v17 = vadd.f32 %v1655_v53, %v1619_v57  ;;  %v1670_v61 = vadd.f32 %v1656_v0, %v1620_v26  ;;  %v6379_v59 = vld [vmem:[#allocation115_spill] sm:$0xff]  ;;  %v6382_v48 = vld [vmem:[#allocation18_spill] sm:$0xff]  ;;  %v6385_v11 = vld [vmem:[#allocation100_spill] sm:$0xff] }
 0x166   :  { %v1671_v30 = vadd.f32 %v1657_v41, %v1621_v9  ;;  %v1672_v55 = vadd.f32 %v1658_v21, %v1622_v25  ;;  %v1673_v42 = vadd.f32 %v1659_v33, %v1623_v12  ;;  %v1674_v45 = vadd.f32 %v1660_v16, %v1624_v29  ;;  %v6386_v53 = vld [vmem:[#allocation90_spill] sm:$0xff]  ;;  %v6389_v21 = vld [vmem:[#allocation117_spill] sm:$0xff]  ;;  %v6390_v16 = vld [vmem:[#allocation63_spill] sm:$0xff] }
 0x167   :  { %v1675_v19 = vadd.f32 %v1661_v32, %v1625_v20  ;;  %v1676_v14 = vadd.f32 %v1662_v35, %v1626_v22  ;;  %v1677_v43 = vadd.f32 %v1663_v60, %v1627_v3  ;;  %v1678_v52 = vadd.f32 %v1664_v15, %v1628_v5 }
 0x168   :  { %v1679_v54 = vadd.f32 %v1665_v37, %v1629_v47  ;;  %v1680_v18 = vadd.f32 %v1666_v36, %v1630_v40  ;;  %v1458_v58 = vadd.f32 %v6373_v2, %v4978_v7  ;;  %v1484_v49 = vadd.f32 %v6375_v8, %v6374_v24  ;;  %v6393_v24 = vld [vmem:[#allocation119_spill] sm:$0xff] }
 0x169   :  { %v1681_v23 = vadd.f32 %v1667_v63, %v1631_v44  ;;  %v1682_v10 = vadd.f32 %v1668_v31, %v1632_v56  ;;  %v1697_v57 = vrot.slane %v1669_v17, 1  ;;  %v1698_v26 = vrot.slane %v1670_v61, 1 }
 0x16a   :  { %v1700_v9 = vrot.slane %v1671_v30, 1  ;;  %v1701_v25 = vrot.slane %v1672_v55, 1  ;;  %v1703_v12 = vrot.slane %v1673_v42, 1  ;;  %v1704_v29 = vrot.slane %v1674_v45, 1 }
 0x16b   :  { %v1706_v20 = vrot.slane %v1675_v19, 1  ;;  %v1707_v22 = vrot.slane %v1676_v14, 1  ;;  %v1709_v3 = vrot.slane %v1677_v43, 1  ;;  %v1710_v5 = vrot.slane %v1678_v52, 1 }
 0x16c   :  { %v1712_v47 = vrot.slane %v1679_v54, 1  ;;  %v1713_v40 = vrot.slane %v1680_v18, 1  ;;  %v1412_v7 = vsub.f32 %v6377_v28, %v6376_v34  ;;  %v6380_v51 = vsub.f32 %v6378_v39, %v6379_v59 }
 0x16d   :  { %v6383_v6 = vsub.f32 %v6381_v13, %v6382_v48  ;;  %v1459_v27 = vsel %vm1445_vm4, %v6384_v46, 0.0  ;;  %v1699_v62 = vsel %vm499_vm0, %v1697_v57, %v1698_v26  ;;  %v1702_v50 = vsel %vm499_vm0, %v1700_v9, %v1701_v25  ;;  %v6404_v13 = vld [vmem:[#allocation120_spill] sm:$0xff] }
 0x16e   :  { %v5065_v44 = vand.u32 2147483647, %v6380_v51  ;;  %v1715_v1 = vrot.slane %v1681_v23, 1  ;;  %v1716_v38 = vrot.slane %v1682_v10, 1  ;;  %v6387_v0 = vsub.f32 %v6385_v11, %v6386_v53  ;;  %v6406_v46 = vld [vmem:[#allocation124_spill] sm:$0xff] }
 0x16f   :  { %v5070_v4 = vand.u32 2147483647, %v6383_v6  ;;  %v1461_v33 = vsel %vm1445_vm4, %v6389_v21, 0.0  ;;  %v1485_v32 = vadd.f32 %v1484_v49, %v6390_v16  ;;  %v1705_v35 = vsel %vm499_vm0, %v1703_v12, %v1704_v29 }
 0x170   :  { %v5079_v41 = vand.u32 2147483647, %v6387_v0  ;;  %v1460_v60 = vadd.f32 %v1459_v27, %v1458_v58  ;;  %v1708_v15 = vsel %vm499_vm0, %v1706_v20, %v1707_v22  ;;  %v1711_v37 = vsel %vm499_vm0, %v1709_v3, %v1710_v5 }
 0x171   :  { %v1714_v56 = vsel %vm499_vm0, %v1712_v47, %v1713_v40  ;;  %v1732_v36 = vadd.f32 %v1699_v62, %v1669_v17  ;;  %v5088_v63 = vadd.f32 %v1698_v26, %v1670_v61  ;;  %v1734_v31 = vadd.f32 %v1702_v50, %v1671_v30  ;;  %v6397_v61 = vld [vmem:[#allocation121_spill] sm:$0xff]  ;;  %v6408_v62 = vld [vmem:[#allocation123_spill] sm:$0xff] }
 0x172   :  { %6388 = vst [vmem:[#allocation65_spill] sm:$0xff] %v5079_v41  ;;  %v5090_v2 = vadd.f32 %v1701_v25, %v1672_v55  ;;  %v1463_v8 = vsel %vm1445_vm4, %v6393_v24, 0.0  ;;  %v1717_v49 = vsel %vm499_vm0, %v1715_v1, %v1716_v38  ;;  %v1736_v57 = vadd.f32 %v1705_v35, %v1673_v42  ;;  %v6410_v24 = vld [vmem:[#allocation126_spill] sm:$0xff] }
 0x173   :  { %6391 = vst [vmem:[#allocation2_spill] sm:$0xff] %v5088_v63  ;;  %v5095_v9 = vadd.f32 %v1704_v29, %v1674_v45  ;;  %v1738_v58 = vadd.f32 %v1708_v15, %v1675_v19  ;;  %v5097_v12 = vadd.f32 %v1707_v22, %v1676_v14  ;;  %v1740_v20 = vadd.f32 %v1711_v37, %v1677_v43 }
 0x174   :  { %6392 = vst [vmem:[#allocation3_spill] sm:$0xff] %v5090_v2  ;;  %v5099_v3 = vadd.f32 %v1710_v5, %v1678_v52  ;;  %v1462_v17 = vadd.f32 %v1461_v33, %v1460_v60  ;;  %v1486_v26 = vadd.f32 %v1485_v32, %v6397_v61  ;;  %v1742_v30 = vadd.f32 %v1714_v56, %v1679_v54  ;;  %v6401_v5 = vld [vmem:[#allocation23_spill] sm:$0xff] }
 0x175   :  { %6394 = vst [vmem:[#allocation4_spill] sm:$0xff] %v5095_v9  ;;  %6395 = vst [vmem:[#allocation5_spill] sm:$0xff] %v5097_v12  ;;  %v5102_v55 = vadd.f32 %v1713_v40, %v1680_v18  ;;  %v1760_v25 = vrot.slane %v1732_v36, 2  ;;  %v1761_v47 = vrot.slane %v5088_v63, 2  ;;  %v1763_v28 = vrot.slane %v1734_v31, 2  ;;  %v6400_v18 = vld [vmem:[#allocation45_spill] sm:$0xff] }
 0x176   :  { %6396 = vst [vmem:[#allocation6_spill] sm:$0xff] %v5099_v3  ;;  %v1764_v42 = vrot.slane %v5090_v2, 2  ;;  %v1744_v45 = vadd.f32 %v1717_v49, %v1681_v23  ;;  %v5106_v29 = vadd.f32 %v1716_v38, %v1682_v10  ;;  %v1766_v19 = vrot.slane %v1736_v57, 2  ;;  %v6405_v10 = vld [vmem:[#allocation122_spill] sm:$0xff] }
 0x177   :  { %6398 = vst [vmem:[#allocation7_spill] sm:$0xff] %v5102_v55  ;;  %v1767_v14 = vrot.slane %v5095_v9, 2  ;;  %v1769_v43 = vrot.slane %v1738_v58, 2  ;;  %v1770_v52 = vrot.slane %v5097_v12, 2  ;;  %v1772_v22 = vrot.slane %v1740_v20, 2 }
 0x178   :  { %6399 = vst [vmem:[#allocation8_spill] sm:$0xff] %v5106_v29  ;;  %v1773_v54 = vrot.slane %v5099_v3, 2  ;;  %v6402_v40 = vsub.f32 %v6400_v18, %v6401_v5  ;;  %v5114_v51 = vand.u32 2147483647, %v1412_v7  ;;  %v1465_v23 = vsel %vm1445_vm4, %v6404_v13, 0.0 }
 0x179   :  { %v1467_v6 = vsel %vm1445_vm4, %v6405_v10, 0.0  ;;  %v5122_v27 = vsel %vm1445_vm4, %v6406_v46, 0.0  ;;  %v1487_v50 = vadd.f32 %v1486_v26, %v6408_v62  ;;  %v1762_v1 = vsel %vm554_vm1, %v1760_v25, %v1761_v47 }
 0x17a   :  { %v1443_v39 = vand.u32 2147483647, %v6402_v40  ;;  %6403 = vst [vmem:[#allocation9_spill] sm:$0xff] %v5114_v51  ;;  %6407 = vst [vmem:[#allocation10_spill] sm:$0xff] %v5122_v27  ;;  %v1765_v38 = vsel %vm554_vm1, %v1763_v28, %v1764_v42  ;;  %v1464_v11 = vadd.f32 %v1463_v8, %v1462_v17  ;;  %v1768_v7 = vsel %vm554_vm1, %v1766_v19, %v1767_v14 }
 0x17b   :  { %v1775_v0 = vrot.slane %v1742_v30, 2  ;;  %v1776_v21 = vrot.slane %v5102_v55, 2  ;;  %v1771_v33 = vsel %vm554_vm1, %v1769_v43, %v1770_v52  ;;  %v1774_v16 = vsel %vm554_vm1, %v1772_v22, %v1773_v54 }
 0x17c   :  { %v1778_v32 = vrot.slane %v1744_v45, 2  ;;  %v1779_v35 = vrot.slane %v5106_v29, 2  ;;  %v5132_v60 = vadd.f32 %v1762_v1, %v1732_v36  ;;  %v1796_v15 = vadd.f32 %v1761_v47, %v5088_v63  ;;  %v6414_v36 = vld [vmem:[#allocation125_spill] sm:$0xff] }
 0x17d   :  { %v5135_v37 = vadd.f32 %v1765_v38, %v1734_v31  ;;  %v1798_v56 = vadd.f32 %v1764_v42, %v5090_v2  ;;  %v5140_v8 = vsel %vm1445_vm4, %v6410_v24, 0.0  ;;  %v5144_v49 = vsel %vm1445_vm4, %v5070_v4, 0.0  ;;  %v6427_v24 = vld [vmem:[#allocation13_spill] sm:$0xff] }
 0x17e   :  { %6409 = vst [vmem:[#allocation66_spill] sm:$0xff] %v5132_v60  ;;  %6411 = vst [vmem:[#allocation11_spill] sm:$0xff] %v5140_v8  ;;  %v5146_v17 = vadd.f32 %v1768_v7, %v1736_v57  ;;  %v1800_v61 = vadd.f32 %v1767_v14, %v5095_v9  ;;  %v1488_v26 = vadd.f32 %v1487_v50, %v6414_v36  ;;  %v1823_v57 = vrot.slane %v5132_v60, 4  ;;  %v6428_v36 = vld [vmem:[#allocation14_spill] sm:$0xff] }
 0x17f   :  { %6412 = vst [vmem:[#allocation12_spill] sm:$0xff] %v5144_v49  ;;  %v1777_v25 = vsel %vm554_vm1, %v1775_v0, %v1776_v21  ;;  %v5151_v31 = vadd.f32 %v1771_v33, %v1738_v58  ;;  %v1802_v47 = vadd.f32 %v1770_v52, %v5097_v12  ;;  %v1466_v28 = vadd.f32 %v1465_v23, %v1464_v11  ;;  %v6422_v11 = vld [vmem:[#allocation71_spill] sm:$0xff]  ;;  %v6423_v0 = vld [vmem:[#allocation16_spill] sm:$0xff] }
 0x180   :  { %6413 = vst [vmem:[#allocation19_spill] sm:$0xff] %v5146_v17  ;;  %v1780_v42 = vsel %vm554_vm1, %v1778_v32, %v1779_v35  ;;  %v5155_v19 = vadd.f32 %v1774_v16, %v1740_v20  ;;  %v5158_v4 = vadd.f32 %v1773_v54, %v5099_v3  ;;  %v1824_v43 = vrot.slane %v1796_v15, 4  ;;  %v6425_v32 = vld [vmem:[#allocation101_spill] sm:$0xff]  ;;  %v6426_v15 = vld [vmem:[#allocation91_spill] sm:$0xff] }
 0x181   :  { %6415 = vst [vmem:[#allocation68_spill] sm:$0xff] %v5151_v31  ;;  %v1826_v14 = vrot.slane %v5135_v37, 4  ;;  %v1827_v22 = vrot.slane %v1798_v56, 4  ;;  %v5163_v18 = vsel %vm1445_vm4, %v1443_v39, 0.0  ;;  %v5165_v58 = vadd.f32 %v1777_v25, %v1742_v30  ;;  %v6419_v30 = vld [vmem:[#allocation67_spill] sm:$0xff] }
 0x182   :  { %6416 = vst [vmem:[#allocation69_spill] sm:$0xff] %v5163_v18  ;;  %v1829_v52 = vrot.slane %v5146_v17, 4  ;;  %v1830_v40 = vrot.slane %v1800_v61, 4  ;;  %v5169_v20 = vadd.f32 %v1488_v26, %v5065_v44  ;;  %v5172_v54 = vadd.f32 %v1776_v21, %v5102_v55  ;;  %v6429_v25 = vld [vmem:[#allocation15_spill] sm:$0xff] }
 0x183   :  { %v1832_v13 = vrot.slane %v5151_v31, 4  ;;  %v1833_v23 = vrot.slane %v1802_v47, 4  ;;  %v5175_v10 = vadd.f32 %v1467_v6, %v1466_v28  ;;  %v5177_v46 = vadd.f32 %v1780_v42, %v1744_v45  ;;  %v6430_v42 = vld [vmem:[#allocation40_spill] sm:$0xff] }
 0x184   :  { %6417 = vst [vmem:[#allocation70_spill] sm:$0xff] %v5169_v20  ;;  %v5180_v39 = vadd.f32 %v1779_v35, %v5106_v29  ;;  %v1872_v62 = vand.u32 2147483647, %v6419_v30  ;;  %v5184_v50 = vsel %vm609_vm2, %v1823_v57, %v1824_v43  ;;  %v5187_v44 = vsel %vm609_vm2, %v1826_v14, %v1827_v22  ;;  %v6431_v43 = vld [vmem:[#allocation41_spill] sm:$0xff]  ;;  %v6432_v22 = vld [vmem:[#allocation42_spill] sm:$0xff]  ;;  %v6434_v30 = vld [vmem:[#allocation99_spill] sm:$0xff] }
 0x185   :  { %6418 = vst [vmem:[#allocation76_spill] sm:$0xff] %v5175_v10  ;;  %6420 = vst [vmem:[#allocation89_spill] sm:$0xff] %v5184_v50  ;;  %v5192_v6 = vsel %vm609_vm2, %v1829_v52, %v1830_v40  ;;  %v1873_v7 = vand.u32 2147483647, %v6422_v11  ;;  %v1874_v21 = vand.u32 2147483647, %v6423_v0  ;;  %v5198_v33 = vsel %vm609_vm2, %v1832_v13, %v1833_v23 }
 0x186   :  { %6421 = vst [vmem:[#allocation77_spill] sm:$0xff] %v5192_v6  ;;  %6424 = vst [vmem:[#allocation92_spill] sm:$0xff] %v5198_v33  ;;  %v1875_v35 = vand.u32 2147483647, %v6425_v32  ;;  %v1876_v56 = vand.u32 2147483647, %v6426_v15 }
 0x187   :  { %v1877_v61 = vand.u32 2147483647, %v6427_v24  ;;  %v1878_v26 = vand.u32 2147483647, %v6428_v36  ;;  %v1879_v47 = vand.u32 2147483647, %v6429_v25  ;;  %v1904_v28 = vadd.f32 %v1874_v21, %v1872_v62 }
 0x188   :  { %v1880_v57 = vand.u32 2147483647, %v6430_v42  ;;  %v1881_v14 = vand.u32 2147483647, %v6431_v43  ;;  %v1882_v52 = vand.u32 2147483647, %v6432_v22  ;;  %v1905_v40 = vadd.f32 %v1875_v35, %v1873_v7 }
 0x189   :  { %v6433_v13 = vld [vmem:[#allocation88_spill] sm:$0xff]  ;;  %v1884_v11 = vand.u32 2147483647, %v6434_v30  ;;  %v6435_v0 = vld [vmem:[#allocation87_spill] sm:$0xff]  ;;  %v1906_v15 = vadd.f32 %v1876_v56, %v1874_v21  ;;  %v6436_v24 = vld [vmem:[#allocation102_spill] sm:$0xff]  ;;  %v1907_v1 = vadd.f32 %v1877_v61, %v1875_v35  ;;  %v1908_v49 = vadd.f32 %v1878_v26, %v1876_v56 }
 0x18a   :  { %v1883_v23 = vand.u32 2147483647, %v6433_v13  ;;  %v1885_v32 = vand.u32 2147483647, %v6435_v0  ;;  %v1886_v45 = vand.u32 2147483647, %v6436_v24  ;;  %v1909_v29 = vadd.f32 %v1879_v47, %v1877_v61 }
 0x18b   :  { %v6437_v36 = vld [vmem:[#allocation103_spill] sm:$0xff]  ;;  %v6438_v25 = vld [vmem:[#allocation104_spill] sm:$0xff]  ;;  %v6439_v42 = vld [vmem:[#allocation105_spill] sm:$0xff]  ;;  %v1910_v8 = vadd.f32 %v1880_v57, %v1878_v26  ;;  %v1900_v56 = vand.u32 2147483647, %v6382_v48  ;;  %v1914_v9 = vadd.f32 %v1884_v11, %v1882_v52 }
 0x18c   :  { %v1887_v16 = vand.u32 2147483647, %v6437_v36  ;;  %v1888_v62 = vand.u32 2147483647, %v6438_v25  ;;  %v1889_v38 = vand.u32 2147483647, %v6439_v42  ;;  %v1916_v2 = vadd.f32 %v1886_v45, %v1884_v11 }
 0x18d   :  { %v6440_v43 = vld [vmem:[#allocation106_spill] sm:$0xff]  ;;  %v6441_v22 = vld [vmem:[#allocation107_spill] sm:$0xff]  ;;  %v6442_v13 = vld [vmem:[#allocation108_spill] sm:$0xff]  ;;  %v1903_v61 = vand.u32 2147483647, %v6376_v34  ;;  %v1936_v11 = vadd.f32 %v1910_v8, %v1906_v15 }
 0x18e   :  { %v1890_v18 = vand.u32 2147483647, %v6440_v43  ;;  %v1891_v7 = vand.u32 2147483647, %v6441_v22  ;;  %v1892_v51 = vand.u32 2147483647, %v6442_v13  ;;  %v1911_v22 = vadd.f32 %v1881_v14, %v1879_v47 }
 0x18f   :  { %v6443_v30 = vld [vmem:[#allocation109_spill] sm:$0xff]  ;;  %v6444_v0 = vld [vmem:[#allocation110_spill] sm:$0xff]  ;;  %v6445_v24 = vld [vmem:[#allocation111_spill] sm:$0xff]  ;;  %v1899_v43 = vand.u32 2147483647, %v6379_v59  ;;  %v1918_v26 = vadd.f32 %v1888_v62, %v1886_v45  ;;  %v1919_v50 = vadd.f32 %v1889_v38, %v1887_v16 }
 0x190   :  { %v1893_v63 = vand.u32 2147483647, %v6443_v30  ;;  %v1894_v21 = vand.u32 2147483647, %v6444_v0  ;;  %v1895_v55 = vand.u32 2147483647, %v6445_v24  ;;  %v1912_v0 = vadd.f32 %v1882_v52, %v1880_v57 }
 0x191   :  { %v6446_v36 = vld [vmem:[#allocation112_spill] sm:$0xff]  ;;  %v6447_v25 = vld [vmem:[#allocation113_spill] sm:$0xff]  ;;  %v6448_v42 = vld [vmem:[#allocation114_spill] sm:$0xff]  ;;  %v1901_v13 = vand.u32 2147483647, %v6386_v53  ;;  %v1913_v24 = vadd.f32 %v1883_v23, %v1881_v14  ;;  %v1921_v60 = vadd.f32 %v1891_v7, %v1889_v38  ;;  %v1922_v59 = vadd.f32 %v1892_v51, %v1890_v18 }
 0x192   :  { %v1896_v3 = vand.u32 2147483647, %v6446_v36  ;;  %v1897_v35 = vand.u32 2147483647, %v6447_v25  ;;  %v1898_v12 = vand.u32 2147483647, %v6448_v42  ;;  %v1915_v36 = vadd.f32 %v1885_v32, %v1883_v23 }
 0x193   :  { %v1902_v30 = vand.u32 2147483647, %v6401_v5  ;;  %v1917_v25 = vadd.f32 %v1887_v16, %v1885_v32  ;;  %v1920_v42 = vadd.f32 %v1890_v18, %v1888_v62  ;;  %v1923_v20 = vadd.f32 %v1893_v63, %v1891_v7 }
 0x194   :  { %v1924_v48 = vadd.f32 %v1894_v21, %v1892_v51  ;;  %v1925_v47 = vadd.f32 %v1895_v55, %v1893_v63  ;;  %v1926_v41 = vadd.f32 %v1896_v3, %v1894_v21  ;;  %v1927_v53 = vadd.f32 %v1897_v35, %v1895_v55 }
 0x195   :  { %v1928_v27 = vadd.f32 %v1898_v12, %v1896_v3  ;;  %v1929_v5 = vadd.f32 %v1899_v43, %v1897_v35  ;;  %v1930_v10 = vadd.f32 %v1900_v56, %v1898_v12  ;;  %v1931_v34 = vadd.f32 %v1901_v13, %v1899_v43 }
 0x196   :  { %v1932_v57 = vadd.f32 %v1902_v30, %v1900_v56  ;;  %v1933_v14 = vadd.f32 %v1903_v61, %v1901_v13  ;;  %v1934_v52 = vadd.f32 %v1908_v49, %v1904_v28  ;;  %v1935_v23 = vadd.f32 %v1909_v29, %v1905_v40 }
 0x197   :  { %v1937_v32 = vadd.f32 %v1911_v22, %v1907_v1  ;;  %v1938_v45 = vadd.f32 %v1912_v0, %v1908_v49  ;;  %v1939_v16 = vadd.f32 %v1913_v24, %v1909_v29  ;;  %v1940_v62 = vadd.f32 %v1914_v9, %v1910_v8 }
 0x198   :  { %v1941_v38 = vadd.f32 %v1915_v36, %v1911_v22  ;;  %v1942_v18 = vadd.f32 %v1916_v2, %v1912_v0  ;;  %v1943_v7 = vadd.f32 %v1917_v25, %v1913_v24  ;;  %v1944_v51 = vadd.f32 %v1918_v26, %v1914_v9 }
 0x199   :  { %v1945_v63 = vadd.f32 %v1919_v50, %v1915_v36  ;;  %v1946_v21 = vadd.f32 %v1920_v42, %v1916_v2  ;;  %v1947_v55 = vadd.f32 %v1921_v60, %v1917_v25  ;;  %v1948_v3 = vadd.f32 %v1922_v59, %v1918_v26 }
 0x19a   :  { %v1949_v35 = vadd.f32 %v1923_v20, %v1919_v50  ;;  %v1950_v12 = vadd.f32 %v1924_v48, %v1920_v42  ;;  %v1951_v43 = vadd.f32 %v1925_v47, %v1921_v60  ;;  %v1952_v56 = vadd.f32 %v1926_v41, %v1922_v59 }
 0x19b   :  { %v1953_v13 = vadd.f32 %v1927_v53, %v1923_v20  ;;  %v1954_v28 = vadd.f32 %v1928_v27, %v1924_v48  ;;  %v1955_v40 = vadd.f32 %v1929_v5, %v1925_v47  ;;  %v1956_v15 = vadd.f32 %v1942_v18, %v1934_v52 }
 0x19c   :  { %v1957_v1 = vadd.f32 %v1943_v7, %v1935_v23  ;;  %v1958_v49 = vadd.f32 %v1944_v51, %v1936_v11  ;;  %v1959_v29 = vadd.f32 %v1945_v63, %v1937_v32  ;;  %v1960_v8 = vadd.f32 %v1946_v21, %v1938_v45 }
 0x19d   :  { %v1961_v22 = vadd.f32 %v1947_v55, %v1939_v16  ;;  %v1962_v30 = vadd.f32 %v1948_v3, %v1940_v62  ;;  %v1963_v61 = vadd.f32 %v1949_v35, %v1941_v38  ;;  %v1964_v9 = vadd.f32 %v1950_v12, %v1942_v18 }
 0x19e   :  { %v1965_v0 = vadd.f32 %v1951_v43, %v1943_v7  ;;  %v1966_v2 = vadd.f32 %v1952_v56, %v1944_v51  ;;  %v1967_v24 = vadd.f32 %v1953_v13, %v1945_v63  ;;  %v1968_v36 = vadd.f32 %v1954_v28, %v1946_v21 }
 0x19f   :  { %v1969_v50 = vadd.f32 %v1955_v40, %v1947_v55  ;;  %v1970_v25 = vadd.f32 %v1956_v15, %v1920_v42  ;;  %v1971_v26 = vadd.f32 %v1957_v1, %v1921_v60  ;;  %v1972_v33 = vadd.f32 %v1958_v49, %v1922_v59 }
 0x1a0   :  { %v1973_v31 = vadd.f32 %v1959_v29, %v1923_v20  ;;  %v1974_v6 = vadd.f32 %v1960_v8, %v1924_v48  ;;  %v1975_v17 = vadd.f32 %v1961_v22, %v1925_v47  ;;  %v1976_v52 = vadd.f32 %v1962_v30, %v1926_v41 }
 0x1a1   :  { %v1977_v23 = vadd.f32 %v1963_v61, %v1927_v53  ;;  %v1978_v11 = vadd.f32 %v1964_v9, %v1928_v27  ;;  %v1979_v32 = vadd.f32 %v1965_v0, %v1929_v5  ;;  %v1980_v45 = vadd.f32 %v1966_v2, %v1930_v10 }
 0x1a2   :  { %v1981_v16 = vadd.f32 %v1967_v24, %v1931_v34  ;;  %v1982_v62 = vadd.f32 %v1968_v36, %v1932_v57  ;;  %v1983_v38 = vadd.f32 %v1969_v50, %v1933_v14  ;;  %v1998_v18 = vrot.slane %v1970_v25, 1 }
 0x1a3   :  { %v1999_v7 = vrot.slane %v1971_v26, 1  ;;  %v2001_v51 = vrot.slane %v1972_v33, 1  ;;  %v2002_v63 = vrot.slane %v1973_v31, 1  ;;  %v2004_v21 = vrot.slane %v1974_v6, 1 }
 0x1a4   :  { %v2005_v55 = vrot.slane %v1975_v17, 1  ;;  %v2007_v42 = vrot.slane %v1976_v52, 1  ;;  %v2008_v60 = vrot.slane %v1977_v23, 1  ;;  %v2010_v59 = vrot.slane %v1978_v11, 1 }
 0x1a5   :  { %v2000_v20 = vsel %vm499_vm0, %v1998_v18, %v1999_v7  ;;  %v2003_v41 = vsel %vm499_vm0, %v2001_v51, %v2002_v63  ;;  %v2011_v48 = vrot.slane %v1979_v32, 1  ;;  %v2013_v27 = vrot.slane %v1980_v45, 1 }
 0x1a6   :  { %v2006_v10 = vsel %vm499_vm0, %v2004_v21, %v2005_v55  ;;  %v2009_v47 = vsel %vm499_vm0, %v2007_v42, %v2008_v60  ;;  %v2014_v53 = vrot.slane %v1981_v16, 1  ;;  %v2016_v5 = vrot.slane %v1982_v62, 1 }
 0x1a7   :  { %v2012_v34 = vsel %vm499_vm0, %v2010_v59, %v2011_v48  ;;  %v2017_v57 = vrot.slane %v1983_v38, 1  ;;  %v2033_v14 = vadd.f32 %v2000_v20, %v1970_v25  ;;  %v5235_v3 = vadd.f32 %v1999_v7, %v1971_v26 }
 0x1a8   :  { %v2015_v35 = vsel %vm499_vm0, %v2013_v27, %v2014_v53  ;;  %v2035_v12 = vadd.f32 %v2003_v41, %v1972_v33  ;;  %v5238_v43 = vadd.f32 %v2002_v63, %v1973_v31  ;;  %v2037_v56 = vadd.f32 %v2006_v10, %v1974_v6 }
 0x1a9   :  { %v2018_v13 = vsel %vm499_vm0, %v2016_v5, %v2017_v57  ;;  %v5241_v28 = vadd.f32 %v2005_v55, %v1975_v17  ;;  %v2039_v40 = vadd.f32 %v2009_v47, %v1976_v52  ;;  %v5243_v15 = vadd.f32 %v2008_v60, %v1977_v23 }
 0x1aa   :  { %v2041_v1 = vadd.f32 %v2012_v34, %v1978_v11  ;;  %v5245_v49 = vadd.f32 %v2011_v48, %v1979_v32  ;;  %v2043_v29 = vadd.f32 %v2015_v35, %v1980_v45  ;;  %v5247_v8 = vadd.f32 %v2014_v53, %v1981_v16 }
 0x1ab   :  { %v2045_v22 = vadd.f32 %v2018_v13, %v1982_v62  ;;  %v5249_v30 = vadd.f32 %v2017_v57, %v1983_v38  ;;  %v2061_v33 = vrot.slane %v2033_v14, 2  ;;  %v2062_v31 = vrot.slane %v5235_v3, 2 }
 0x1ac   :  { %v2064_v6 = vrot.slane %v2035_v12, 2  ;;  %v2065_v61 = vrot.slane %v5238_v43, 2  ;;  %v2067_v17 = vrot.slane %v2037_v56, 2  ;;  %v2068_v9 = vrot.slane %v5241_v28, 2 }
 0x1ad   :  { %v1841_v0 = vrot.slane %v5177_v46, 4  ;;  %v2063_v2 = vsel %vm554_vm1, %v2061_v33, %v2062_v31  ;;  %v2070_v24 = vrot.slane %v2039_v40, 2  ;;  %v2071_v36 = vrot.slane %v5243_v15, 2  ;;  %v6455_v33 = vld [vmem:[#allocation68_spill] sm:$0xff] }
 0x1ae   :  { %v6449_v50 = vrot.slane %v5158_v4, 4  ;;  %v6450_v25 = vrot.slane %v5155_v19, 4  ;;  %v2073_v52 = vrot.slane %v2041_v1, 2  ;;  %v2074_v23 = vrot.slane %v5245_v49, 2 }
 0x1af   :  { %v2076_v11 = vrot.slane %v2043_v29, 2  ;;  %v2066_v32 = vsel %vm554_vm1, %v2064_v6, %v2065_v61  ;;  %v2077_v45 = vrot.slane %v5247_v8, 2  ;;  %v2079_v16 = vrot.slane %v2045_v22, 2 }
 0x1b0   :  { %v1837_v26 = vsel %vm609_vm2, %v6450_v25, %v6449_v50  ;;  %v2080_v62 = vrot.slane %v5249_v30, 2  ;;  %v2069_v38 = vsel %vm554_vm1, %v2067_v17, %v2068_v9  ;;  %v2072_v18 = vsel %vm554_vm1, %v2070_v24, %v2071_v36 }
 0x1b1   :  { %v2096_v4 = vadd.f32 %v2063_v2, %v2033_v14  ;;  %v2097_v7 = vadd.f32 %v2062_v31, %v5235_v3  ;;  %v6451_v51 = vrot.slane %v5172_v54, 4  ;;  %v6452_v63 = vrot.slane %v5165_v58, 4 }
 0x1b2   :  { %v1842_v55 = vrot.slane %v5180_v39, 4  ;;  %v1852_v42 = vadd.f32 %v5187_v44, %v5135_v37  ;;  %v2078_v60 = vsel %vm554_vm1, %v2076_v11, %v2077_v45  ;;  %v2075_v59 = vsel %vm554_vm1, %v2073_v52, %v2074_v23  ;;  %v6457_v52 = vld [vmem:[#allocation76_spill] sm:$0xff] }
 0x1b3   :  { %v1840_v21 = vsel %vm609_vm2, %v6452_v63, %v6451_v51  ;;  %v2081_v20 = vsel %vm554_vm1, %v2079_v16, %v2080_v62  ;;  %v2098_v41 = vadd.f32 %v2066_v32, %v2035_v12  ;;  %v2099_v48 = vadd.f32 %v2065_v61, %v5238_v43  ;;  %v6453_v12 = vld [vmem:[#allocation19_spill] sm:$0xff]  ;;  %v6459_v32 = vld [vmem:[#allocation65_spill] sm:$0xff] }
 0x1b4   :  { %v2100_v27 = vadd.f32 %v2069_v38, %v2037_v56  ;;  %v2101_v54 = vadd.f32 %v2068_v9, %v5241_v28  ;;  %v2102_v10 = vadd.f32 %v2072_v18, %v2039_v40  ;;  %v2103_v47 = vadd.f32 %v2071_v36, %v5243_v15  ;;  %v6454_v56 = vld [vmem:[#allocation77_spill] sm:$0xff]  ;;  %v6456_v40 = vld [vmem:[#allocation92_spill] sm:$0xff] }
 0x1b5   :  { %v2106_v53 = vadd.f32 %v2078_v60, %v2043_v29  ;;  %v2107_v39 = vadd.f32 %v2077_v45, %v5247_v8  ;;  %v2124_v5 = vrot.slane %v2096_v4, 4  ;;  %v2125_v37 = vrot.slane %v2097_v7, 4  ;;  %v6460_v45 = vld [vmem:[#allocation70_spill] sm:$0xff]  ;;  %v6462_v38 = vld [vmem:[#allocation89_spill] sm:$0xff] }
 0x1b6   :  { %v2104_v44 = vadd.f32 %v2075_v59, %v2041_v1  ;;  %v2105_v34 = vadd.f32 %v2074_v23, %v5245_v49  ;;  %v2108_v57 = vadd.f32 %v2081_v20, %v2045_v22  ;;  %v2109_v14 = vadd.f32 %v2080_v62, %v5249_v30  ;;  %v6458_v23 = vld [vmem:[#allocation10_spill] sm:$0xff]  ;;  %v6463_v59 = vld [vmem:[#allocation3_spill] sm:$0xff] }
 0x1b7   :  { %v1843_v35 = vsel %vm609_vm2, %v1841_v0, %v1842_v55  ;;  %v1853_v13 = vadd.f32 %v6454_v56, %v6453_v12  ;;  %v1854_v31 = vadd.f32 %v6456_v40, %v6455_v33  ;;  %v2127_v6 = vrot.slane %v2098_v41, 4  ;;  %v6461_v62 = vld [vmem:[#allocation66_spill] sm:$0xff]  ;;  %v6469_v33 = vld [vmem:[#allocation8_spill] sm:$0xff] }
 0x1b8   :  { %v2128_v29 = vrot.slane %v2099_v48, 4  ;;  %v2130_v61 = vrot.slane %v2100_v27, 4  ;;  %v2133_v17 = vrot.slane %v2102_v10, 4  ;;  %v2134_v9 = vrot.slane %v2103_v47, 4 }
 0x1b9   :  { %v2126_v1 = vsel %vm609_vm2, %v2124_v5, %v2125_v37  ;;  %v2131_v2 = vrot.slane %v2101_v54, 4  ;;  %v2139_v24 = vrot.slane %v2106_v53, 4  ;;  %v2140_v22 = vrot.slane %v2107_v39, 4  ;;  %v6464_v39 = vld [vmem:[#allocation4_spill] sm:$0xff]  ;;  %v6465_v37 = vld [vmem:[#allocation5_spill] sm:$0xff] }
 0x1ba   :  { %v2136_v36 = vrot.slane %v2104_v44, 4  ;;  %v2137_v50 = vrot.slane %v2105_v34, 4  ;;  %v2142_v25 = vrot.slane %v2108_v57, 4  ;;  %v2143_v0 = vrot.slane %v2109_v14, 4 }
 0x1bb   :  { %v1470_v11 = vadd.f32 %v6458_v23, %v6457_v52  ;;  %v1490_v16 = vadd.f32 %v6460_v45, %v6459_v32  ;;  %v1851_v18 = vadd.f32 %v6462_v38, %v6461_v62  ;;  %v1855_v7 = vadd.f32 %v1837_v26, %v5155_v19 }
 0x1bc   :  { %v1856_v51 = vadd.f32 %v1840_v21, %v5165_v58  ;;  %v1857_v63 = vadd.f32 %v1843_v35, %v5177_v46  ;;  %v2129_v55 = vsel %vm609_vm2, %v2127_v6, %v2128_v29  ;;  %v2135_v60 = vsel %vm609_vm2, %v2133_v17, %v2134_v9  ;;  %v6466_v46 = vld [vmem:[#allocation11_spill] sm:$0xff]  ;;  %v6467_v21 = vld [vmem:[#allocation6_spill] sm:$0xff]  ;;  %v6471_v9 = vld [vmem:[#allocation9_spill] sm:$0xff] }
 0x1bd   :  { %v1859_v20 = vadd.f32 %v1852_v42, %v6463_v59  ;;  %v2132_v48 = vsel %vm609_vm2, %v2130_v61, %v2131_v2  ;;  %v2141_v54 = vsel %vm609_vm2, %v2139_v24, %v2140_v22  ;;  %v2152_v47 = vadd.f32 %v2126_v1, %v2096_v4  ;;  %v6468_v42 = vld [vmem:[#allocation7_spill] sm:$0xff]  ;;  %v6470_v29 = vld [vmem:[#allocation2_spill] sm:$0xff] }
 0x1be   :  { %v1860_v5 = vadd.f32 %v1853_v13, %v6464_v39  ;;  %v1861_v34 = vadd.f32 %v1854_v31, %v6465_v37  ;;  %v2138_v19 = vsel %vm609_vm2, %v2136_v36, %v2137_v50  ;;  %v2144_v58 = vsel %vm609_vm2, %v2142_v25, %v2143_v0 }
 0x1bf   :  { %v1472_v26 = vadd.f32 %v6466_v46, %v1470_v11  ;;  %v1862_v14 = vadd.f32 %v1855_v7, %v6467_v21  ;;  %v2153_v35 = vadd.f32 %v2129_v55, %v2098_v41  ;;  %v2155_v12 = vadd.f32 %v2135_v60, %v2102_v10  ;;  %v6472_v10 = vld [vmem:[#allocation12_spill] sm:$0xff] }
 0x1c0   :  { %v1863_v56 = vadd.f32 %v1856_v51, %v6468_v42  ;;  %v1864_v40 = vadd.f32 %v1857_v63, %v6469_v33  ;;  %v2154_v6 = vadd.f32 %v2132_v48, %v2100_v27  ;;  %v2157_v4 = vadd.f32 %v2141_v54, %v2106_v53 }
 0x1c1   :  { %v1858_v13 = vadd.f32 %v1851_v18, %v6470_v29  ;;  %v2156_v61 = vadd.f32 %v2138_v19, %v2104_v44  ;;  %v2158_v31 = vadd.f32 %v2144_v58, %v2108_v57  ;;  %v2159_v17 = vadd.f32 %v2152_v47, %v5235_v3 }
 0x1c2   :  { %v5317_v1 = vadd.f32 %v1490_v16, %v6471_v9  ;;  %v5319_v2 = vmul.f32 0.01, %v1859_v20  ;;  %v5321_v24 = vmul.f32 0.01, %v1860_v5  ;;  %v5323_v41 = vmul.f32 0.01, %v1861_v34 }
 0x1c3   :  { %v5326_v22 = vadd.f32 %v6472_v10, %v1472_v26  ;;  %v5328_v27 = vmul.f32 0.01, %v1862_v14  ;;  %v2160_v53 = vadd.f32 %v2153_v35, %v5238_v43  ;;  %v2162_v44 = vadd.f32 %v2155_v12, %v5243_v15 }
 0x1c4   :  { %v5332_v57 = vmul.f32 0.01, %v1863_v56  ;;  %v5334_v3 = vmul.f32 0.01, %v1864_v40  ;;  %v2161_v36 = vadd.f32 %v2154_v6, %v5241_v28  ;;  %v2164_v50 = vadd.f32 %v2157_v4, %v5247_v8 }
 0x1c5   :  { %v5338_v25 = vmul.f32 0.01, %v1858_v13  ;;  %v2163_v0 = vadd.f32 %v2156_v61, %v5245_v49  ;;  %v2165_v52 = vadd.f32 %v2158_v31, %v5249_v30  ;;  %v2166_v23 = vmul.f32 0.01, %v2159_v17 }
 0x1c6   :  { %v2180_v11 = vrot.slane %v5319_v2, 1  ;;  %v2181_v43 = vrot.slane %v5321_v24, 1  ;;  %v2193_v15 = vrot.slane %v5321_v24, 3  ;;  %v2194_v32 = vrot.slane %v5323_v41, 3 }
 0x1c7   :  { %v2167_v45 = vmul.f32 0.01, %v2160_v53  ;;  %v2169_v16 = vmul.f32 0.01, %v2162_v44  ;;  %v2182_v28 = vrot.slane %v5323_v41, 1  ;;  %v2195_v8 = vrot.slane %v5328_v27, 3 }
 0x1c8   :  { %v2168_v62 = vmul.f32 0.01, %v2161_v36  ;;  %v2171_v38 = vmul.f32 0.01, %v2164_v50  ;;  %v2184_v49 = vrot.slane %v5332_v57, 1  ;;  %v2197_v30 = vrot.slane %v5334_v3, 3 }
 0x1c9   :  { %v2170_v18 = vmul.f32 0.01, %v2163_v0  ;;  %v2172_v7 = vmul.f32 0.01, %v2165_v52  ;;  %v2183_v51 = vrot.slane %v5328_v27, 1  ;;  %v2196_v63 = vrot.slane %v5332_v57, 3 }
 0x1ca   :  { %v5355_v55 = vsel %vm554_vm1, %v2180_v11, %v2193_v15  ;;  %v5360_v60 = vsel %vm554_vm1, %v2181_v43, %v2194_v32  ;;  %v2398_v59 = vrot.slane %v2166_v23, 1  ;;  %v5363_v20 = vsel %vm554_vm1, %v2182_v28, %v2195_v8  ;;  %v6488_v57 = vld [vmem:[#allocation32_spill] sm:$0xff] }
 0x1cb   :  { %v2399_v48 = vrot.slane %v2167_v45, 1  ;;  %v2400_v54 = vrot.slane %v2168_v62, 1  ;;  %v2401_v47 = vrot.slane %v2169_v16, 1  ;;  %v5368_v39 = vsel %vm554_vm1, %v2184_v49, %v2197_v30 }
 0x1cc   :  { %v2402_v5 = vrot.slane %v2170_v18, 1  ;;  %v2403_v37 = vrot.slane %v2171_v38, 1  ;;  %v2411_v34 = vrot.slane %v2167_v45, 3  ;;  %v2412_v19 = vrot.slane %v2168_v62, 3 }
 0x1cd   :  { %v2413_v58 = vrot.slane %v2169_v16, 3  ;;  %v2414_v46 = vrot.slane %v2170_v18, 3  ;;  %v2415_v26 = vrot.slane %v2171_v38, 3  ;;  %v2225_v21 = vrot.slane %v5363_v20, 1  ;;  %v6473_v38 = vld [vmem:[#allocation34_spill] sm:$0xff] }
 0x1ce   :  { %v2226_v14 = vrot.slane %v2195_v8, 1  ;;  %v2416_v35 = vrot.slane %v2172_v7, 3  ;;  %v2423_v12 = vsel %vm554_vm1, %v2398_v59, %v2411_v34  ;;  %v2424_v42 = vsel %vm554_vm1, %v2399_v48, %v2412_v19  ;;  %v6474_v59 = vld [vmem:[#allocation35_spill] sm:$0xff]  ;;  %v6476_v34 = vld [vmem:[#allocation37_spill] sm:$0xff] }
 0x1cf   :  { %v2425_v56 = vsel %vm554_vm1, %v2400_v54, %v2413_v58  ;;  %v2426_v33 = vsel %vm554_vm1, %v2401_v47, %v2414_v46  ;;  %v2427_v40 = vsel %vm554_vm1, %v2402_v5, %v2415_v26  ;;  %v2438_v4 = vrot.slane %v2424_v42, 1  ;;  %v6475_v54 = vld [vmem:[#allocation36_spill] sm:$0xff] }
 0x1d0   :  { %v2428_v6 = vsel %vm554_vm1, %v2403_v37, %v2416_v35  ;;  %v2439_v29 = vrot.slane %v2412_v19, 1  ;;  %v2444_v13 = vrot.slane %v2426_v33, 1  ;;  %v2445_v61 = vrot.slane %v2414_v46, 1  ;;  %v6477_v46 = vld [vmem:[#allocation38_spill] sm:$0xff] }
 0x1d1   :  { %v2450_v31 = vrot.slane %v2428_v6, 1  ;;  %v2451_v17 = vrot.slane %v2416_v35, 1  ;;  %v2468_v9 = vrot.slane %v2426_v33, 5  ;;  %v2470_v53 = vrot.slane %v2428_v6, 5  ;;  %v6478_v35 = vld [vmem:[#allocation39_spill] sm:$0xff] }
 0x1d2   :  { %v2440_v10 = vsel %vm499_vm0, %v2438_v4, %v2439_v29  ;;  %v2513_v44 = vrot.slane %v2425_v56, 2  ;;  %v2514_v36 = vrot.slane %v2413_v58, 2  ;;  %v2446_v50 = vsel %vm499_vm0, %v2444_v13, %v2445_v61  ;;  %v6479_v13 = vld [vmem:[#allocation69_spill] sm:$0xff] }
 0x1d3   :  { %v2452_v0 = vsel %vm499_vm0, %v2450_v31, %v2451_v17  ;;  %v2480_v52 = vsel %vm2258_vm5, %v2445_v61, %v2468_v9  ;;  %v2591_v23 = vrot.slane %v2427_v40, 4  ;;  %v2482_v11 = vsel %vm2258_vm5, %v2451_v17, %v2470_v53 }
 0x1d4   :  { %v2515_v43 = vsel %vm554_vm1, %v2513_v44, %v2514_v36  ;;  %v2516_v45 = vrot.slane %v2446_v50, 2  ;;  %v2517_v16 = vrot.slane %v2480_v52, 2  ;;  %v2592_v28 = vrot.slane %v2415_v26, 4  ;;  %v6481_v36 = vld [vmem:[#allocation29_spill] sm:$0xff]  ;;  %v6482_v52 = vld [vmem:[#allocation24_spill] sm:$0xff] }
 0x1d5   :  { %v2594_v8 = vrot.slane %v2452_v0, 4  ;;  %v2595_v62 = vrot.slane %v2482_v11, 4  ;;  %v2609_v49 = vadd.f32 %v2423_v12, %v6473_v38  ;;  %v2249_v18 = vrot.slane %v5363_v20, 5 }
 0x1d6   :  { %v2518_v7 = vsel %vm554_vm1, %v2516_v45, %v2517_v16  ;;  %v2610_v48 = vadd.f32 %v2440_v10, %v6474_v59  ;;  %v2611_v47 = vadd.f32 %v2515_v43, %v6475_v54  ;;  %v2593_v5 = vsel %vm609_vm2, %v2591_v23, %v2592_v28  ;;  %v6483_v23 = vld [vmem:[#allocation26_spill] sm:$0xff]  ;;  %v6484_v43 = vld [vmem:[#allocation25_spill] sm:$0xff] }
 0x1d7   :  { %v2596_v37 = vsel %vm609_vm2, %v2594_v8, %v2595_v62  ;;  %v2612_v19 = vadd.f32 %v2518_v7, %v6476_v34  ;;  %v2615_v58 = vadd.f32 1e-06, %v2609_v49  ;;  %v2613_v26 = vadd.f32 %v2593_v5, %v6477_v46  ;;  %v6486_v16 = vld [vmem:[#allocation30_spill] sm:$0xff]  ;;  %v6487_v62 = vld [vmem:[#allocation31_spill] sm:$0xff] }
 0x1d8   :  { %v2614_v42 = vadd.f32 %v2596_v37, %v6478_v35  ;;  %v2616_v12 = vadd.f32 1e-06, %v2610_v48  ;;  %v2617_v56 = vadd.f32 1e-06, %v2611_v47  ;;  %v2231_v20 = vrot.slane %v5368_v39, 1 }
 0x1d9   :  { %v2232_v33 = vrot.slane %v2197_v30, 1  ;;  %v2618_v40 = vadd.f32 1e-06, %v2612_v19  ;;  %2664 = vrcp.f32 %v2615_v58  ;;  %v2251_v6 = vrot.slane %v5368_v39, 5 }
 0x1da   :  { %v2619_v4 = vadd.f32 1e-06, %v2613_v26  ;;  %v2620_v29 = vadd.f32 1e-06, %v2614_v42  ;;  %2666 = vrcp.f32 %v2616_v12  ;;  %v1476_v61 = vadd.f32 %v6479_v13, %v5326_v22 }
 0x1db   :  { %v2179_v31 = vrot.slane %v5338_v25, 1  ;;  %v2192_v17 = vrot.slane %v5319_v2, 3  ;;  %2668 = vrcp.f32 %v2617_v56  ;;  %v2220_v9 = vrot.slane %v2193_v15, 1 }
 0x1dc   :  { %v2227_v3 = vsel %vm499_vm0, %v2225_v21, %v2226_v14  ;;  %v2262_v30 = vsel %vm2258_vm5, %v2226_v14, %v2249_v18  ;;  %2670 = vrcp.f32 %v2618_v40  ;;  %v2208_v39 = vsel %vm554_vm1, %v2183_v51, %v2196_v63  ;;  %v6480_v21 = vld [vmem:[#allocation28_spill] sm:$0xff]  ;;  %v6489_v18 = vld [vmem:[#allocation33_spill] sm:$0xff] }
 0x1dd   :  { %v2219_v22 = vrot.slane %v5355_v55, 1  ;;  %v2295_v25 = vrot.slane %v5360_v60, 2  ;;  %2672 = vrcp.f32 %v2619_v4  ;;  %v2233_v2 = vsel %vm499_vm0, %v2231_v20, %v2232_v33 }
 0x1de   :  { %v2264_v24 = vsel %vm2258_vm5, %v2232_v33, %v2251_v6  ;;  %v2296_v15 = vrot.slane %v2194_v32, 2  ;;  %2674 = vrcp.f32 %v2620_v29  ;;  %v647_v14 = vmul.f32 0.01, %v6480_v21 }
 0x1df   :  { %v1495_v10 = vrot.slane %v5317_v1, 1  ;;  %v2298_v27 = vrot.slane %v2227_v3, 2  ;;  %v2299_v53 = vrot.slane %v2262_v30, 2  ;;  %v1494_v51 = vrot.slane %v1476_v61, 1  ;;  %v6485_v1 = vld [vmem:[#allocation27_spill] sm:$0xff] }
 0x1e0   :  { %v2204_v55 = vsel %vm554_vm1, %v2179_v31, %v2192_v17  ;;  %v2374_v44 = vrot.slane %v2208_v39, 4  ;;  %v2375_v60 = vrot.slane %v2196_v63, 4  ;;  %v648_v50 = vmul.f32 0.01, %v6481_v36 }
 0x1e1   :  { %v2221_v0 = vsel %vm499_vm0, %v2219_v22, %v2220_v9  ;;  %v2377_v41 = vrot.slane %v2233_v2, 4  ;;  %v2378_v32 = vrot.slane %v2264_v24, 4  ;;  %v303_v11 = vadd.f32 %v6483_v23, %v6482_v52 }
 0x1e2   :  { %v317_v45 = vadd.f32 %v6485_v1, %v6484_v43  ;;  %v649_v28 = vmul.f32 0.01, %v6486_v16  ;;  %v2297_v8 = vsel %vm554_vm1, %v2295_v25, %v2296_v15  ;;  %v650_v38 = vmul.f32 0.01, %v6487_v62 }
 0x1e3   :  { %v651_v63 = vmul.f32 0.01, %v6488_v57  ;;  %v2300_v49 = vsel %vm554_vm1, %v2298_v27, %v2299_v53  ;;  %v2627_v7 = vadd.f32 %v2204_v55, %v6489_v18  ;;  %v1496_v59 = vsel %vm499_vm0, %v1494_v51, %v1495_v10 }
 0x1e4   :  { %v1499_v48 = vsel %vm499_vm0, %v1495_v10, 0.0  ;;  %v2376_v54 = vsel %vm609_vm2, %v2374_v44, %v2375_v60  ;;  %v2628_v47 = vadd.f32 %v2221_v0, %v647_v14  ;;  %v2379_v5 = vsel %vm609_vm2, %v2377_v41, %v2378_v32 }
 0x1e5   :  { %v2629_v37 = vadd.f32 %v2297_v8, %v648_v50  ;;  %v318_v19 = vadd.f32 %v317_v45, %v303_v11  ;;  %v2630_v58 = vadd.f32 %v2300_v49, %v649_v28  ;;  %v1500_v26 = vadd.f32 %v1499_v48, %v1496_v59 }
 0x1e6   :  { %v2665_v34 = vpop.eup %2664  ;;  %v2631_v35 = vadd.f32 %v2376_v54, %v650_v38  ;;  %v2632_v56 = vadd.f32 %v2379_v5, %v651_v63 }
 0x1e7   :  { %v2667_v46 = vpop.eup %2666  ;;  %v2633_v42 = vmul.f32 %v2665_v34, %v2627_v7  ;;  %v319_v29 = vrot.slane %v318_v19, 4  ;;  %v1501_v17 = vrot.slane %v1500_v26, 4 }
 0x1e8   :  { %v2669_v12 = vpop.eup %2668  ;;  %v2634_v20 = vmul.f32 %v2667_v46, %v2628_v47 }
 0x1e9   :  { %v2671_v33 = vpop.eup %2670  ;;  %v2635_v40 = vmul.f32 %v2669_v12, %v2629_v37  ;;  %v2639_v6 = vsel %vm499_vm0, %v2633_v42, 0.0  ;;  %v320_v2 = vadd.f32 %v319_v29, %v318_v19  ;;  %v1502_v15 = vadd.f32 %v1501_v17, %v1500_v26 }
 0x1ea   :  { %v2673_v4 = vpop.eup %2672  ;;  %v2636_v13 = vmul.f32 %v2671_v33, %v2630_v58  ;;  %v2640_v61 = vsel %vm499_vm0, %v2634_v20, 0.0 }
 0x1eb   :  { %v2675_v31 = vpop.eup %2674  ;;  %v2637_v9 = vmul.f32 %v2673_v4, %v2631_v35  ;;  %v2641_v3 = vadd.f32 %v2640_v61, %v2639_v6  ;;  %v2642_v30 = vsel %vm499_vm0, %v2635_v40, 0.0  ;;  %v321_v27 = vrot.slane %v320_v2, 2 }
 0x1ec   :  { %v2638_v39 = vmul.f32 %v2675_v31, %v2632_v56  ;;  %v2644_v22 = vsel %vm499_vm0, %v2636_v13, 0.0  ;;  %v1503_v53 = vrot.slane %v1502_v15, 2 }
 0x1ed   :  { %v2643_v25 = vadd.f32 %v2642_v30, %v2641_v3  ;;  %v2646_v24 = vsel %vm499_vm0, %v2637_v9, 0.0  ;;  %v322_v44 = vadd.f32 %v321_v27, %v320_v2 }
 0x1ee   :  { %v2648_v14 = vsel %vm499_vm0, %v2638_v39, 0.0  ;;  %v1504_v36 = vadd.f32 %v1503_v53, %v1502_v15 }
 0x1ef   :  { %v2645_v21 = vadd.f32 %v2644_v22, %v2643_v25  ;;  %v323_v0 = vrot.slane %v322_v44, 1 }
 0x1f0   :  { %v1505_v32 = vrot.slane %v1504_v36, 1 }
 0x1f1   :  { %v2647_v10 = vadd.f32 %v2646_v24, %v2645_v21  ;;  %v324_v23 = vadd.f32 %v323_v0, %v322_v44 }
 0x1f2   :  { %v1506_v43 = vadd.f32 %v1505_v32, %v1504_v36 }
 0x1f3   :  { %v2649_v51 = vadd.f32 %v2648_v14, %v2647_v10 }
 0x1f5   :  { %v2650_v55 = vsel %vm499_vm0, %v2649_v51, 0.0 }
 0x1f6   :  { %v2651_v60 = vrot.slane %v2650_v55, 4 }
 0x1f8   :  { %v2652_v50 = vadd.f32 %v2651_v60, %v2650_v55 }
 0x1fa   :  { %v2653_v41 = vrot.slane %v2652_v50, 2 }
 0x1fc   :  { %v2654_v52 = vadd.f32 %v2653_v41, %v2652_v50 }
 0x1fe   :  { %v2655_v11 = vrot.slane %v2654_v52, 1 }
 0x200   :  { %v2656_v1 = vadd.f32 %v2655_v11, %v2654_v52 }
 0x202   :  { %v2657_v45 = vsel %vm948_vm3, %v2656_v1, %v324_v23 }
 0x203   :  { %v2658_v16 = vsel %vm2331_vm6, %v2657_v45, %v1506_v43 }
 0x204   :  { %2659 = vst [vmem:[%s5451_s3] sm:$0x7] %v2658_v16 }

</bundles_post_ra>
